<compile_context>
chip_gen: v6e
topology: v6e:2x2x1
jax: 0.10.0
libtpu: 0.0.40
codegen_flags: <defaults>
</compile_context>

<pallas_src>
import functools

import jax
import jax.numpy as jnp
from jax.experimental import pallas as pl
from jax.experimental.pallas import tpu as pltpu


def _batch_tile(b, row_bytes, budget_bytes=4 << 20):
    """Pick a batch tile whose double-buffered input block stays under `budget_bytes`.

    Small batches use the full batch (block dim == array dim satisfies the (8,128)
    tiling rule); larger batches use an 8-aligned tile.
    """
    if b <= 8:
        return b
    tb = (budget_bytes // max(int(row_bytes), 1)) // 8 * 8
    tb = max(8, tb)
    return int(min(b, tb))


# ---------------------------------------------------------------------------
# Kernel 1: audio tail — adaptive_avg_pool2d(a, 1) + flatten == mean over H*W.
# Input view: (B, C, L) with L = H*W on lanes; grid tiled over batch ("parallel").
# ---------------------------------------------------------------------------
def _audio_pool_kernel(x_ref, o_ref, *, inv_l):
    x = x_ref[...].astype(jnp.float32)
    o_ref[...] = (jnp.sum(x, axis=-1) * inv_l).astype(o_ref.dtype)


def adaptive_avg_pool2d_flatten(x):
    """x: (B, C, H, W) -> (B, C) f32, mean over (H, W)."""
    B, C, H, W = x.shape
    L = H * W
    x3 = x.reshape(B, C, L)                       # free reshape (row-major contiguous)
    TB = _batch_tile(B, C * L * x.dtype.itemsize)
    kernel = functools.partial(_audio_pool_kernel, inv_l=1.0 / L)
    return pl.pallas_call(
        kernel,
        out_shape=jax.ShapeDtypeStruct((B, C), jnp.float32),
        grid=(pl.cdiv(B, TB),),
        in_specs=[pl.BlockSpec((TB, C, L), lambda i: (i, 0, 0))],
        out_specs=pl.BlockSpec((TB, C), lambda i: (i, 0)),
        compiler_params=pltpu.CompilerParams(dimension_semantics=("parallel",)),
    )(x3)


# ---------------------------------------------------------------------------
# Kernel 2: video tail — view(B, fps, C, H, W).permute(0,2,1,3,4) +
# adaptive_avg_pool3d(1) + flatten == mean over (fps, H, W).
# No XLA transpose: the fps axis is a reduction ("arbitrary") grid axis; the output
# block is resident across it and is used as the accumulator (pl.when init/finalize).
# ---------------------------------------------------------------------------
def _video_pool_kernel(x_ref, o_ref, *, inv_total):
    f = pl.program_id(1)

    @pl.when(f == 0)
    def _():
        o_ref[...] = jnp.zeros_like(o_ref)

    o_ref[...] = o_ref[...] + jnp.sum(x_ref[...].astype(jnp.float32), axis=-1)

    @pl.when(f == pl.num_programs(1) - 1)
    def _():
        o_ref[...] = o_ref[...] * inv_total


def adaptive_avg_pool3d_flatten(video_featmap, fps):
    """video_featmap: (B*fps, C, H, W) -> (B, C) f32, mean over (fps, H, W)."""
    BF, C, H, W = video_featmap.shape
    Bv = BF // fps
    L = H * W
    x4 = video_featmap.reshape(Bv, fps, C, L)     # free reshape, NO transpose
    TB = _batch_tile(Bv, C * L * video_featmap.dtype.itemsize)
    kernel = functools.partial(_video_pool_kernel, inv_total=1.0 / (fps * L))
    return pl.pallas_call(
        kernel,
        out_shape=jax.ShapeDtypeStruct((Bv, C), jnp.float32),
        grid=(pl.cdiv(Bv, TB), fps),              # reduction (fps) axis last
        in_specs=[pl.BlockSpec((TB, None, C, L), lambda b, f: (b, f, 0, 0))],
        out_specs=pl.BlockSpec((TB, C), lambda b, f: (b, 0)),
        compiler_params=pltpu.CompilerParams(
            dimension_semantics=("parallel", "arbitrary")),
    )(x4)


# ---------------------------------------------------------------------------
# Module forward (after the external resnet backbones).
# ---------------------------------------------------------------------------
def av_share_classifier_norein_forward(audio_featmap, video_featmap, fps):
    a_feature = adaptive_avg_pool2d_flatten(audio_featmap)
    v_feature = adaptive_avg_pool3d_flatten(video_featmap, fps)
    return a_feature, v_feature


# ---------------------------------------------------------------------------
# Kernel 3: `classfier` head (no additional_layers -> i == 0, boost_rate unused):
#   emb  = relu(x @ W_emb^T + b_emb)          (B, 256)
#   r    = mean(emb, axis=0, keepdims=True)   (1, 256)
#   feat = emb @ W_fc^T + b_fc                (B, num_class)
# Weights are pre-laid-out once (transposed + lane-dense zero padding of the fc columns).
# ---------------------------------------------------------------------------
def _classifier_kernel(x_ref, we_ref, be_ref, wf_ref, bf_ref, feat_ref, r_ref):
    x = x_ref[...]
    emb = jnp.dot(x, we_ref[...], preferred_element_type=jnp.float32) + be_ref[...]
    emb = jnp.maximum(emb, 0.0)                               # ReLU
    r_ref[...] = jnp.mean(emb, axis=0, keepdims=True)
    feat_ref[...] = (
        jnp.dot(emb, wf_ref[...], preferred_element_type=jnp.float32) + bf_ref[...]
    )


def prepare_classifier_params(w_emb, b_emb, w_fc, b_fc):
    """One-time parameter re-layout (do NOT call per-step).

    w_emb: (256, 512) PyTorch Linear layout  -> (512, 256)
    w_fc:  (NC, 256)                         -> (256, NC_pad) zero-padded, NC_pad % 128 == 0
    """
    NC = w_fc.shape[0]
    NC_pad = ((NC + 127) // 128) * 128
    w_emb_t = jnp.asarray(w_emb).T                                      # (512, 256)
    b_emb_r = jnp.asarray(b_emb).reshape(1, -1)                         # (1, 256)
    w_fc_t = jnp.zeros((w_fc.shape[1], NC_pad), w_fc.dtype).at[:, :NC].set(
        jnp.asarray(w_fc).T)                                            # (256, NC_pad)
    b_fc_r = jnp.zeros((1, NC_pad), b_fc.dtype).at[:, :NC].set(
        jnp.asarray(b_fc))                                              # (1, NC_pad)
    return (w_emb_t, b_emb_r, w_fc_t, b_fc_r, NC)


def classfier_pallas(x, params):
    """x: (B, 512). params from prepare_classifier_params."""
    w_emb_t, b_emb_r, w_fc_t, b_fc_r, NC = params
    B, H = x.shape
    E = w_emb_t.shape[1]
    NCp = w_fc_t.shape[1]
    cost = pl.CostEstimate(
        flops=2 * B * H * E + 2 * B * E * NCp,
        transcendentals=0,
        bytes_accessed=4 * (B * H + H * E + E + E * NCp + NCp + B * NCp + E),
    )
    feat_pad, r = pl.pallas_call(
        _classifier_kernel,
        out_shape=(
            jax.ShapeDtypeStruct((B, NCp), jnp.float32),
            jax.ShapeDtypeStruct((1, E), jnp.float32),
        ),
        grid=(1,),
        in_specs=[
            pl.BlockSpec((B, H), lambda i: (0, 0)),
            pl.BlockSpec((H, E), lambda i: (0, 0)),
            pl.BlockSpec((1, E), lambda i: (0, 0)),
            pl.BlockSpec((E, NCp), lambda i: (0, 0)),
            pl.BlockSpec((1, NCp), lambda i: (0, 0)),
        ],
        out_specs=(
            pl.BlockSpec((B, NCp), lambda i: (0, 0)),
            pl.BlockSpec((1, E), lambda i: (0, 0)),
        ),
        compiler_params=pltpu.CompilerParams(dimension_semantics=("arbitrary",)),
        cost_estimate=cost,
    )(x, w_emb_t, b_emb_r, w_fc_t, b_fc_r)
    # `feature = feature / (i + 1)` with zero additional layers == divide by 1 -> omitted.
    return feat_pad[:, :NC], r


# ---------------------------------------------------------------------------
# Demo / correctness check.
# ---------------------------------------------------------------------------
if __name__ == "__main__":
    key = jax.random.PRNGKey(0)
    k1, k2, k3, k4 = jax.random.split(key, 4)

    B, C, FPS = 2, 512, 2        # hidden_dim = 512 (fixed in the module)
    Ha = Wa = 8
    Hv = Wv = 8
    NUM_CLASS = 10               # config['setting']['num_class'] (small for demo)

    # Post-backbone feature maps (see TODO(synk) above).
    audio_featmap = jax.random.normal(k1, (B, C, Ha, Wa), dtype=jnp.float32)
    video_featmap = jax.random.normal(k2, (B * FPS, C, Hv, Wv), dtype=jnp.float32)

    # Parameters in PyTorch nn.Linear layout (shapes from __init__).
    w_emb_a = 0.02 * jax.random.normal(k3, (256, C), dtype=jnp.float32)       # embedding_a[0].weight
    b_emb_a = jnp.zeros((256,), dtype=jnp.float32)                            # embedding_a[0].bias
    w_fc = 0.02 * jax.random.normal(k4, (NUM_CLASS, 256), dtype=jnp.float32)  # fc_out.weight
    b_fc = jnp.zeros((NUM_CLASS,), dtype=jnp.float32)                         # fc_out.bias
    boost_rate = jnp.ones((2, 10), dtype=jnp.float32)                         # unused (no additional layers)

    # One-time parameter preprocessing for the classifier head.
    clf_params = prepare_classifier_params(w_emb_a, b_emb_a, w_fc, b_fc)

    # forward()
    a_feat, v_feat = av_share_classifier_norein_forward(audio_featmap, video_featmap, FPS)
    # classfier() head on the audio feature (is_a=True path)
    feat, r = classfier_pallas(a_feat, clf_params)
    jax.block_until_ready((a_feat, v_feat, feat, r))

    # Pure-JAX reference checks.
    a_ref = audio_featmap.mean(axis=(2, 3))
    v_ref = (
        video_featmap.reshape(B, FPS, C, Hv, Wv)
        .transpose(0, 2, 1, 3, 4)
        .mean(axis=(2, 3, 4))
    )
    emb_ref = jax.nn.relu(a_ref @ w_emb_a.T + b_emb_a)
    feat_ref = emb_ref @ w_fc.T + b_fc
    r_ref = emb_ref.mean(axis=0, keepdims=True)

    assert jnp.allclose(a_feat, a_ref, atol=1e-5, rtol=1e-5)
    assert jnp.allclose(v_feat, v_ref, atol=1e-5, rtol=1e-5)
    assert jnp.allclose(feat, feat_ref, atol=1e-4, rtol=1e-4)
    assert jnp.allclose(r, r_ref, atol=1e-4, rtol=1e-4)

    print("KERNEL_OK")
</pallas_src>

<mosaic_0001>
module attributes {stable_mosaic.version = 11 : i64} {
  func.func @_audio_pool_kernel(%arg0: i32, %arg1: memref<2x512x64xf32, #tpu.memory_space<vmem>>, %arg2: memref<2x512xf32, #tpu.memory_space<vmem>>) attributes {dimension_semantics = [#tpu.dimension_semantics<parallel>], iteration_bounds = array<i64: 1>, scalar_prefetch = 0 : i64, scratch_operands = 0 : i64, tpu.core_type = #tpu.core_type<tc>, window_params = [{transform_indices = @transform_0, window_bounds = array<i64: 2, 512, 64>}, {transform_indices = @transform_1, window_bounds = array<i64: 2, 512>}]} {
    %c0 = arith.constant 0 : index
    %c0_0 = arith.constant 0 : index
    %c0_1 = arith.constant 0 : index
    %0 = vector.load %arg1[%c0, %c0_0, %c0_1] : memref<2x512x64xf32, #tpu.memory_space<vmem>>, vector<2x512x64xf32>
    %cst = arith.constant dense<0.000000e+00> : vector<2x512xf32>
    %1 = vector.multi_reduction <add>, %0, %cst [2] : vector<2x512x64xf32> to vector<2x512xf32>
    %cst_2 = arith.constant 1.562500e-02 : f32
    %2 = vector.broadcast %cst_2 : f32 to vector<2x512xf32>
    %3 = arith.mulf %1, %2 : vector<2x512xf32>
    %c0_3 = arith.constant 0 : index
    %c0_4 = arith.constant 0 : index
    %4 = vector.load %arg2[%c0_3, %c0_4] : memref<2x512xf32, #tpu.memory_space<vmem>>, vector<2x512xf32>
    tpu.vector_store %arg2[%c0_3, %c0_4], %3 {strides = array<i32>} : memref<2x512xf32, #tpu.memory_space<vmem>>, vector<2x512xf32>,
    return
  }
  func.func @transform_0(%arg0: i32) -> (i32, i32, i32) {
    %c0_i32 = arith.constant 0 : i32
    %c0_i32_0 = arith.constant 0 : i32
    %c0_i32_1 = arith.constant 0 : i32
    return %arg0, %c0_i32, %c0_i32_0 : i32, i32, i32
  }
  func.func @transform_1(%arg0: i32) -> (i32, i32) {
    %c0_i32 = arith.constant 0 : i32
    %c0_i32_0 = arith.constant 0 : i32
    return %arg0, %c0_i32 : i32, i32
  }
}

</mosaic_0001>

<bundles_post_ra>
// kernel: tpu_custom_call.1
= control target key start
LH: loop header
LB: loop body
LE: loop exit
PB: predicated region body
PF: predicated region fallthrough
CT: control target
= control target key end

     0   :  { %vm137_vm0 = vcmask 523264   ;;  %s12201_s0 = inlined_call_operand.vmem [shape: f32[2,512,64], index: 0, kind: input, shape index: {}]   ;;  %s12202_s1 = inlined_call_operand.hbm [shape: f32[2,512], index: 1, kind: output, shape index: {}]  }
   0x1   :  { %v11_v0 = vld [vmem:[%s12201_s0 + $0x10] sm:$0xff]  ;;  %v9_v1 = vld [vmem:[%s12201_s0] sm:$0xff]  ;;  %v12_v2 = vld [vmem:[%s12201_s0 + $0x18] sm:$0xff] }
   0x2   :  { %v144_v3 = vsel %vm137_vm0, %v11_v0, 0.0  ;;  %v138_v4 = vsel %vm137_vm0, %v9_v1, 0.0  ;;  %v10_v5 = vld [vmem:[%s12201_s0 + $0x8] sm:$0xff]  ;;  %v147_v6 = vsel %vm137_vm0, %v12_v2, 0.0  ;;  %v13_v9 = vld [vmem:[%s12201_s0 + $0x20] sm:$0xff]  ;;  %v16_v12 = vld [vmem:[%s12201_s0 + $0x38] sm:$0xff] }
   0x3   :  { %145 = vadd.xlane.f32.xlu1 %v144_v3  ;;  %139 = vadd.xlane.f32.xlu0 %v138_v4  ;;  %v141_v7 = vsel %vm137_vm0, %v10_v5, 0.0  ;;  %v14_v8 = vld [vmem:[%s12201_s0 + $0x28] sm:$0xff]  ;;  %v150_v11 = vsel %vm137_vm0, %v13_v9, 0.0  ;;  %v15_v13 = vld [vmem:[%s12201_s0 + $0x30] sm:$0xff]  ;;  %v159_v14 = vsel %vm137_vm0, %v16_v12, 0.0  ;;  %v17_v17 = vld [vmem:[%s12201_s0 + $0x40] sm:$0xff] }
   0x4   :  { %v153_v10 = vsel %vm137_vm0, %v14_v8, 0.0  ;;  %v156_v15 = vsel %vm137_vm0, %v15_v13, 0.0  ;;  %v18_v16 = vld [vmem:[%s12201_s0 + $0x48] sm:$0xff]  ;;  %v162_v19 = vsel %vm137_vm0, %v17_v17, 0.0  ;;  %v20_v20 = vld [vmem:[%s12201_s0 + $0x58] sm:$0xff]  ;;  %v19_v21 = vld [vmem:[%s12201_s0 + $0x50] sm:$0xff] }
   0x5   :  { %v165_v18 = vsel %vm137_vm0, %v18_v16, 0.0  ;;  %v171_v22 = vsel %vm137_vm0, %v20_v20, 0.0  ;;  %v168_v23 = vsel %vm137_vm0, %v19_v21, 0.0  ;;  %v22_v24 = vld [vmem:[%s12201_s0 + $0x68] sm:$0xff]  ;;  %v21_v25 = vld [vmem:[%s12201_s0 + $0x60] sm:$0xff]  ;;  %v24_v28 = vld [vmem:[%s12201_s0 + $0x78] sm:$0xff] }
   0x6   :  { %v177_v26 = vsel %vm137_vm0, %v22_v24, 0.0  ;;  %v174_v27 = vsel %vm137_vm0, %v21_v25, 0.0  ;;  %v23_v29 = vld [vmem:[%s12201_s0 + $0x70] sm:$0xff]  ;;  %v183_v30 = vsel %vm137_vm0, %v24_v28, 0.0  ;;  %v26_v32 = vld [vmem:[%s12201_s0 + $0x88] sm:$0xff]  ;;  %v25_v33 = vld [vmem:[%s12201_s0 + $0x80] sm:$0xff] }
   0x7   :  { %148 = vadd.xlane.f32.xlu1 %v147_v6  ;;  %142 = vadd.xlane.f32.xlu0 %v141_v7  ;;  %v180_v31 = vsel %vm137_vm0, %v23_v29, 0.0 }
   0xb   :  { %154 = vadd.xlane.f32.xlu1 %v153_v10  ;;  %151 = vadd.xlane.f32.xlu0 %v150_v11 }
   0xf   :  { %160 = vadd.xlane.f32.xlu1 %v159_v14  ;;  %157 = vadd.xlane.f32.xlu0 %v156_v15 }
  0x13   :  { %166 = vadd.xlane.f32.xlu1 %v165_v18  ;;  %163 = vadd.xlane.f32.xlu0 %v162_v19 }
  0x17   :  { %172 = vadd.xlane.f32.xlu1 %v171_v22  ;;  %169 = vadd.xlane.f32.xlu0 %v168_v23 }
  0x1b   :  { %178 = vadd.xlane.f32.xlu1 %v177_v26  ;;  %175 = vadd.xlane.f32.xlu0 %v174_v27 }
  0x1c   :  { %6 = vsyncpa [#allocation3], 0  ;;  %v189_v34 = vsel %vm137_vm0, %v26_v32, 0.0  ;;  %v186_v35 = vsel %vm137_vm0, %v25_v33, 0.0  ;;  %v28_v36 = vld [vmem:[%s12201_s0 + $0x98] sm:$0xff]  ;;  %v27_v37 = vld [vmem:[%s12201_s0 + $0x90] sm:$0xff] }
  0x1d   :  { %v195_v38 = vsel %vm137_vm0, %v28_v36, 0.0  ;;  %v192_v39 = vsel %vm137_vm0, %v27_v37, 0.0  ;;  %v30_v40 = vld [vmem:[%s12201_s0 + $0xa8] sm:$0xff]  ;;  %v29_v41 = vld [vmem:[%s12201_s0 + $0xa0] sm:$0xff]  ;;  %v32_v44 = vld [vmem:[%s12201_s0 + $0xb8] sm:$0xff]  ;;  %vm6933_vm1 = vcmask 130112  }
  0x1e   :  { %v201_v42 = vsel %vm137_vm0, %v30_v40, 0.0  ;;  %v198_v43 = vsel %vm137_vm0, %v29_v41, 0.0  ;;  %v31_v45 = vld [vmem:[%s12201_s0 + $0xb0] sm:$0xff]  ;;  %v207_v46 = vsel %vm137_vm0, %v32_v44, 0.0  ;;  %v34_v48 = vld [vmem:[%s12201_s0 + $0xc8] sm:$0xff]  ;;  %v33_v49 = vld [vmem:[%s12201_s0 + $0xc0] sm:$0xff] }
  0x1f   :  { %184 = vadd.xlane.f32.xlu1 %v183_v30  ;;  %181 = vadd.xlane.f32.xlu0 %v180_v31  ;;  %v204_v47 = vsel %vm137_vm0, %v31_v45, 0.0  ;;  %v213_v50 = vsel %vm137_vm0, %v34_v48, 0.0  ;;  %v210_v51 = vsel %vm137_vm0, %v33_v49, 0.0  ;;  %v36_v52 = vld [vmem:[%s12201_s0 + $0xd8] sm:$0xff]  ;;  %v35_v53 = vld [vmem:[%s12201_s0 + $0xd0] sm:$0xff]  ;;  %v38_v56 = vld [vmem:[%s12201_s0 + $0xe8] sm:$0xff] }
  0x20   :  { %v219_v54 = vsel %vm137_vm0, %v36_v52, 0.0  ;;  %v216_v55 = vsel %vm137_vm0, %v35_v53, 0.0  ;;  %v37_v57 = vld [vmem:[%s12201_s0 + $0xe0] sm:$0xff]  ;;  %v225_v58 = vsel %vm137_vm0, %v38_v56, 0.0  ;;  %v40_v60 = vld [vmem:[%s12201_s0 + $0xf8] sm:$0xff]  ;;  %v39_v61 = vld [vmem:[%s12201_s0 + $0xf0] sm:$0xff] }
  0x21   :  { %v222_v59 = vsel %vm137_vm0, %v37_v57, 0.0  ;;  %v231_v62 = vsel %vm137_vm0, %v40_v60, 0.0  ;;  %v228_v63 = vsel %vm137_vm0, %v39_v61, 0.0  ;;  %v42_v0 = vld [vmem:[%s12201_s0 + $0x108] sm:$0xff]  ;;  %v41_v1 = vld [vmem:[%s12201_s0 + $0x100] sm:$0xff]  ;;  %v44_v4 = vld [vmem:[%s12201_s0 + $0x118] sm:$0xff] }
  0x22   :  { %v237_v2 = vsel %vm137_vm0, %v42_v0, 0.0  ;;  %v234_v3 = vsel %vm137_vm0, %v41_v1, 0.0  ;;  %v43_v5 = vld [vmem:[%s12201_s0 + $0x110] sm:$0xff]  ;;  %v243_v6 = vsel %vm137_vm0, %v44_v4, 0.0  ;;  %v46_v8 = vld [vmem:[%s12201_s0 + $0x128] sm:$0xff]  ;;  %v45_v9 = vld [vmem:[%s12201_s0 + $0x120] sm:$0xff] }
  0x23   :  { %190 = vadd.xlane.f32.xlu1 %v189_v34  ;;  %187 = vadd.xlane.f32.xlu0 %v186_v35  ;;  %v240_v7 = vsel %vm137_vm0, %v43_v5, 0.0  ;;  %v249_v10 = vsel %vm137_vm0, %v46_v8, 0.0  ;;  %v246_v11 = vsel %vm137_vm0, %v45_v9, 0.0  ;;  %v48_v12 = vld [vmem:[%s12201_s0 + $0x138] sm:$0xff]  ;;  %v47_v13 = vld [vmem:[%s12201_s0 + $0x130] sm:$0xff]  ;;  %v50_v16 = vld [vmem:[%s12201_s0 + $0x148] sm:$0xff] }
  0x24   :  { %v255_v14 = vsel %vm137_vm0, %v48_v12, 0.0  ;;  %v252_v15 = vsel %vm137_vm0, %v47_v13, 0.0  ;;  %v49_v17 = vld [vmem:[%s12201_s0 + $0x140] sm:$0xff]  ;;  %v261_v18 = vsel %vm137_vm0, %v50_v16, 0.0  ;;  %v52_v20 = vld [vmem:[%s12201_s0 + $0x158] sm:$0xff]  ;;  %v51_v21 = vld [vmem:[%s12201_s0 + $0x150] sm:$0xff] }
  0x25   :  { %v258_v19 = vsel %vm137_vm0, %v49_v17, 0.0  ;;  %v267_v22 = vsel %vm137_vm0, %v52_v20, 0.0  ;;  %v264_v23 = vsel %vm137_vm0, %v51_v21, 0.0  ;;  %v54_v24 = vld [vmem:[%s12201_s0 + $0x168] sm:$0xff]  ;;  %v53_v25 = vld [vmem:[%s12201_s0 + $0x160] sm:$0xff]  ;;  %v56_v28 = vld [vmem:[%s12201_s0 + $0x178] sm:$0xff] }
  0x26   :  { %v273_v26 = vsel %vm137_vm0, %v54_v24, 0.0  ;;  %v270_v27 = vsel %vm137_vm0, %v53_v25, 0.0  ;;  %v55_v29 = vld [vmem:[%s12201_s0 + $0x170] sm:$0xff]  ;;  %v279_v30 = vsel %vm137_vm0, %v56_v28, 0.0  ;;  %v58_v32 = vld [vmem:[%s12201_s0 + $0x188] sm:$0xff]  ;;  %v57_v33 = vld [vmem:[%s12201_s0 + $0x180] sm:$0xff] }
  0x27   :  { %196 = vadd.xlane.f32.xlu1 %v195_v38  ;;  %193 = vadd.xlane.f32.xlu0 %v192_v39  ;;  %v276_v31 = vsel %vm137_vm0, %v55_v29, 0.0  ;;  %v285_v34 = vsel %vm137_vm0, %v58_v32, 0.0  ;;  %v282_v35 = vsel %vm137_vm0, %v57_v33, 0.0  ;;  %v60_v36 = vld [vmem:[%s12201_s0 + $0x198] sm:$0xff]  ;;  %v59_v37 = vld [vmem:[%s12201_s0 + $0x190] sm:$0xff]  ;;  %v62_v40 = vld [vmem:[%s12201_s0 + $0x1a8] sm:$0xff] }
  0x28   :  { %v291_v38 = vsel %vm137_vm0, %v60_v36, 0.0  ;;  %v288_v39 = vsel %vm137_vm0, %v59_v37, 0.0  ;;  %v61_v41 = vld [vmem:[%s12201_s0 + $0x1a0] sm:$0xff]  ;;  %v64_v44 = vld [vmem:[%s12201_s0 + $0x1b8] sm:$0xff]  ;;  %v63_v45 = vld [vmem:[%s12201_s0 + $0x1b0] sm:$0xff]  ;;  %vm6940_vm2 = vcmask 195712  }
  0x29   :  { %v66_v48 = vld [vmem:[%s12201_s0 + $0x1c8] sm:$0xff]  ;;  %v65_v49 = vld [vmem:[%s12201_s0 + $0x1c0] sm:$0xff]  ;;  %v68_v52 = vld [vmem:[%s12201_s0 + $0x1d8] sm:$0xff]  ;;  %vm6947_vm3 = vcmask 261312   ;;  %vm6954_vm4 = vcmask 326912   ;;  %vm6961_vm5 = vcmask 392512  }
  0x2a   :  { %v67_v53 = vld [vmem:[%s12201_s0 + $0x1d0] sm:$0xff]  ;;  %v70_v56 = vld [vmem:[%s12201_s0 + $0x1e8] sm:$0xff]  ;;  %v69_v57 = vld [vmem:[%s12201_s0 + $0x1e0] sm:$0xff]  ;;  %vm6968_vm6 = vcmask 458112   ;;  %vm6975_vm7 = vcmask 523712   ;;  %vm6982_vm8 = vcmask 589312  }
  0x2b   :  { %202 = vadd.xlane.f32.xlu1 %v201_v42  ;;  %199 = vadd.xlane.f32.xlu0 %v198_v43  ;;  %v297_v42 = vsel %vm137_vm0, %v62_v40, 0.0  ;;  %v294_v43 = vsel %vm137_vm0, %v61_v41, 0.0  ;;  %v72_v60 = vld [vmem:[%s12201_s0 + $0x1f8] sm:$0xff]  ;;  %v71_v61 = vld [vmem:[%s12201_s0 + $0x1f0] sm:$0xff]  ;;  %v74_v0 = vld [vmem:[%s12201_s0 + $0x208] sm:$0xff]  ;;  %v12203_v40 = vlaneseq  ;;  %vm6989_vm9 = vcmask 654912  }
  0x2c   :  { %v73_v1 = vld [vmem:[%s12201_s0 + $0x200] sm:$0xff]  ;;  %v76_v4 = vld [vmem:[%s12201_s0 + $0x218] sm:$0xff]  ;;  %v75_v5 = vld [vmem:[%s12201_s0 + $0x210] sm:$0xff]  ;;  %vm6996_vm10 = vcmask 720512   ;;  %vm7003_vm11 = vcmask 786112   ;;  %vm7010_vm12 = vcmask 851712  }
  0x2d   :  { %v78_v8 = vld [vmem:[%s12201_s0 + $0x228] sm:$0xff]  ;;  %v77_v9 = vld [vmem:[%s12201_s0 + $0x220] sm:$0xff]  ;;  %v80_v12 = vld [vmem:[%s12201_s0 + $0x238] sm:$0xff]  ;;  %vm7017_vm13 = vcmask 917312   ;;  %vm7024_vm14 = vcmask 982912   ;;  %vm7031_vm15 = vcmask 1048512  }
  0x2e   :  { %v79_v13 = vld [vmem:[%s12201_s0 + $0x230] sm:$0xff]  ;;  %v84_v24 = vld [vmem:[%s12201_s0 + $0x258] sm:$0xff]  ;;  %v85_v32 = vld [vmem:[%s12201_s0 + $0x260] sm:$0xff] }
  0x2f   :  { %208 = vadd.xlane.f32.xlu1 %v207_v46  ;;  %205 = vadd.xlane.f32.xlu0 %v204_v47  ;;  %v303_v46 = vsel %vm137_vm0, %v64_v44, 0.0  ;;  %v300_v47 = vsel %vm137_vm0, %v63_v45, 0.0  ;;  %v348_v17 = vsel %vm137_vm0, %v79_v13, 0.0  ;;  %v83_v25 = vld [vmem:[%s12201_s0 + $0x250] sm:$0xff]  ;;  %v363_v28 = vsel %vm137_vm0, %v84_v24, 0.0  ;;  %v88_v37 = vld [vmem:[%s12201_s0 + $0x278] sm:$0xff] }
  0x30   :  { %v366_v36 = vsel %vm137_vm0, %v85_v32, 0.0  ;;  %v87_v41 = vld [vmem:[%s12201_s0 + $0x270] sm:$0xff]  ;;  %v7657_v45 = vmov 842150450   ;;  %v101_v13 = vld [vmem:[%s12201_s0 + $0x2e0] sm:$0xff] }
  0x31   :  { %v105_v24 = vld [vmem:[%s12201_s0 + $0x300] sm:$0xff] }
  0x33   :  { %214 = vadd.xlane.f32.xlu1 %v213_v50  ;;  %211 = vadd.xlane.f32.xlu0 %v210_v51  ;;  %v309_v50 = vsel %vm137_vm0, %v66_v48, 0.0  ;;  %v306_v51 = vsel %vm137_vm0, %v65_v49, 0.0  ;;  %v90_v48 = vld [vmem:[%s12201_s0 + $0x288] sm:$0xff] }
  0x37   :  { %220 = vadd.xlane.f32.xlu1 %v219_v54  ;;  %217 = vadd.xlane.f32.xlu0 %v216_v55  ;;  %v315_v54 = vsel %vm137_vm0, %v68_v52, 0.0  ;;  %v312_v55 = vsel %vm137_vm0, %v67_v53, 0.0  ;;  %v92_v52 = vld [vmem:[%s12201_s0 + $0x298] sm:$0xff]  ;;  %v91_v53 = vld [vmem:[%s12201_s0 + $0x290] sm:$0xff] }
  0x3b   :  { %226 = vadd.xlane.f32.xlu1 %v225_v58  ;;  %223 = vadd.xlane.f32.xlu0 %v222_v59  ;;  %v321_v58 = vsel %vm137_vm0, %v70_v56, 0.0  ;;  %v318_v59 = vsel %vm137_vm0, %v69_v57, 0.0  ;;  %v7658_v56 = vmov 1414812756  }
  0x3c   :  { %v8033_v57 = vunpack.c.l.s4 %v7658_v56  ;;  %v113_v56 = vld [vmem:[%s12201_s0 + $0x340] sm:$0xff] }
  0x3f   :  { %232 = vadd.xlane.f32.xlu1 %v231_v62  ;;  %229 = vadd.xlane.f32.xlu0 %v228_v63  ;;  %v327_v62 = vsel %vm137_vm0, %v72_v60, 0.0  ;;  %v324_v63 = vsel %vm137_vm0, %v71_v61, 0.0  ;;  %v96_v61 = vld [vmem:[%s12201_s0 + $0x2b8] sm:$0xff] }
  0x43   :  { %238 = vadd.xlane.f32.xlu1 %v237_v2  ;;  %235 = vadd.xlane.f32.xlu0 %v234_v3  ;;  %v333_v2 = vsel %vm137_vm0, %v74_v0, 0.0  ;;  %v330_v3 = vsel %vm137_vm0, %v73_v1, 0.0  ;;  %v7659_v1 = vmov 1987475062  }
  0x47   :  { %244 = vadd.xlane.f32.xlu1 %v243_v6  ;;  %241 = vadd.xlane.f32.xlu0 %v240_v7  ;;  %v339_v6 = vsel %vm137_vm0, %v76_v4, 0.0  ;;  %v336_v7 = vsel %vm137_vm0, %v75_v5, 0.0  ;;  %v387_v4 = vsel %vm137_vm0, %v92_v52, 0.0  ;;  %v97_v5 = vld [vmem:[%s12201_s0 + $0x2c0] sm:$0xff] }
  0x48   :  { %v8105_v32 = vsel %vm137_vm0, %v97_v5, 0.0 }
  0x4b   :  { %250 = vadd.xlane.f32.xlu1 %v249_v10  ;;  %247 = vadd.xlane.f32.xlu0 %v246_v11  ;;  %v345_v10 = vsel %vm137_vm0, %v78_v8, 0.0  ;;  %v342_v11 = vsel %vm137_vm0, %v77_v9, 0.0  ;;  %v384_v9 = vsel %vm137_vm0, %v91_v53, 0.0 }
  0x4f   :  { %256 = vadd.xlane.f32.xlu1 %v255_v14  ;;  %253 = vadd.xlane.f32.xlu0 %v252_v15  ;;  %v351_v15 = vsel %vm137_vm0, %v80_v12, 0.0  ;;  %v102_v12 = vld [vmem:[%s12201_s0 + $0x2e8] sm:$0xff] }
  0x53   :  { %262 = vadd.xlane.f32.xlu1 %v261_v18  ;;  %259 = vadd.xlane.f32.xlu0 %v258_v19  ;;  %v82_v18 = vld [vmem:[%s12201_s0 + $0x248] sm:$0xff]  ;;  %v81_v19 = vld [vmem:[%s12201_s0 + $0x240] sm:$0xff] }
  0x54   :  { %v357_v21 = vsel %vm137_vm0, %v82_v18, 0.0 }
  0x57   :  { %268 = vadd.xlane.f32.xlu1 %v267_v22  ;;  %265 = vadd.xlane.f32.xlu0 %v264_v23  ;;  %v354_v23 = vsel %vm137_vm0, %v81_v19, 0.0 }
  0x5b   :  { %274 = vadd.xlane.f32.xlu1 %v273_v26  ;;  %271 = vadd.xlane.f32.xlu0 %v270_v27  ;;  %v7655_v26 = vmov 0  }
  0x5c   :  { %7632 = vset.pattern.permute.xlu1 %v7655_v26  ;;  %7631 = vset.pattern.permute.xlu0 %v7655_v26 }
  0x5f   :  { %280 = vadd.xlane.f32.xlu1 %v279_v30  ;;  %277 = vadd.xlane.f32.xlu0 %v276_v31  ;;  %v360_v30 = vsel %vm137_vm0, %v83_v25, 0.0  ;;  %v86_v31 = vld [vmem:[%s12201_s0 + $0x268] sm:$0xff]  ;;  %v7660_v25 = vmov 1983009808  }
  0x60   :  { %v4365_v26 = vunpack.c.l.s4 %v7660_v25  ;;  %v8213_v25 = vsel %vm137_vm0, %v113_v56, 0.0  ;;  %v125_v56 = vld [vmem:[%s12201_s0 + $0x3a0] sm:$0xff] }
  0x63   :  { %286 = vadd.xlane.f32.xlu1 %v285_v34  ;;  %283 = vadd.xlane.f32.xlu0 %v282_v35  ;;  %v369_v34 = vsel %vm137_vm0, %v86_v31, 0.0 }
  0x67   :  { %292 = vadd.xlane.f32.xlu1 %v291_v38  ;;  %289 = vadd.xlane.f32.xlu0 %v288_v39  ;;  %v7656_v38 = vmov 269488144  }
  0x68   :  { %v779_v39 = vunpack.c.l.s4 %v7656_v38  ;;  %v107_v38 = vld [vmem:[%s12201_s0 + $0x310] sm:$0xff] }
  0x6a   :  { %v780_v49 = vunpack.c.0.s8 %v779_v39  ;;  %v110_v39 = vld [vmem:[%s12201_s0 + $0x328] sm:$0xff] }
  0x6b   :  { %298 = vadd.xlane.f32.xlu1 %v297_v42  ;;  %295 = vadd.xlane.f32.xlu0 %v294_v43  ;;  %v375_v43 = vsel %vm137_vm0, %v88_v37, 0.0  ;;  %v108_v37 = vld [vmem:[%s12201_s0 + $0x318] sm:$0xff] }
  0x6f   :  { %304 = vadd.xlane.f32.xlu1 %v303_v46  ;;  %301 = vadd.xlane.f32.xlu0 %v300_v47  ;;  %v786_v46 = vunpack.c.l.s4 %v7657_v45  ;;  %v372_v47 = vsel %vm137_vm0, %v87_v41, 0.0  ;;  %v8127_v45 = vsel %vm137_vm0, %v101_v13, 0.0  ;;  %v120_v13 = vld [vmem:[%s12201_s0 + $0x378] sm:$0xff] }
  0x71   :  { %v787_v0 = vunpack.c.0.s8 %v786_v46 }
  0x73   :  { %310 = vadd.xlane.f32.xlu1 %v309_v50  ;;  %307 = vadd.xlane.f32.xlu0 %v306_v51  ;;  %v8016_v50 = vshrl.u32 %v12203_v40, 7  ;;  %v89_v51 = vld [vmem:[%s12201_s0 + $0x280] sm:$0xff] }
  0x75   :  { %12299 = vst [vmem:[#allocation5_spill] sm:$0xff] %v8016_v50  ;;  %v8063_v8 = vsub.s32 %v780_v49, %v8016_v50  ;;  %v111_v49 = vld [vmem:[%s12201_s0 + $0x330] sm:$0xff] }
  0x77   :  { %316 = vadd.xlane.f32.xlu1 %v315_v54  ;;  %313 = vadd.xlane.f32.xlu0 %v312_v55  ;;  %v94_v54 = vld [vmem:[%s12201_s0 + $0x2a8] sm:$0xff]  ;;  %v93_v55 = vld [vmem:[%s12201_s0 + $0x2a0] sm:$0xff] }
  0x7b   :  { %322 = vadd.xlane.f32.xlu1 %v321_v58  ;;  %319 = vadd.xlane.f32.xlu0 %v318_v59  ;;  %v381_v59 = vsel %vm137_vm0, %v90_v48, 0.0  ;;  %v112_v48 = vld [vmem:[%s12201_s0 + $0x338] sm:$0xff] }
  0x7f   :  { %328 = vadd.xlane.f32.xlu1 %v327_v62  ;;  %325 = vadd.xlane.f32.xlu0 %v324_v63  ;;  %v95_v62 = vld [vmem:[%s12201_s0 + $0x2b0] sm:$0xff]  ;;  %v98_v63 = vld [vmem:[%s12201_s0 + $0x2c8] sm:$0xff] }
  0x80   :  { %v8085_v18 = vsel %vm137_vm0, %v95_v62, 0.0  ;;  %v8088_v19 = vsel %vm137_vm0, %v98_v63, 0.0  ;;  %v8169_v62 = vsel %vm137_vm0, %v110_v39, 0.0  ;;  %v115_v63 = vld [vmem:[%s12201_s0 + $0x350] sm:$0xff] }
  0x83   :  { %334 = vadd.xlane.f32.xlu1 %v333_v2  ;;  %331 = vadd.xlane.f32.xlu0 %v330_v3  ;;  %v8049_v2 = vunpack.c.l.s4 %v7659_v1  ;;  %v378_v3 = vsel %vm137_vm0, %v89_v51, 0.0  ;;  %v8142_v51 = vsub.s32 %v787_v0, %v8016_v50  ;;  %v118_v0 = vld [vmem:[%s12201_s0 + $0x368] sm:$0xff]  ;;  %v117_v1 = vld [vmem:[%s12201_s0 + $0x360] sm:$0xff] }
  0x84   :  { %v8231_v39 = vsel %vm137_vm0, %v118_v0, 0.0 }
  0x85   :  { %v801_v41 = vunpack.c.0.s8 %v8049_v2  ;;  %v4366_v2 = vunpack.c.0.s8 %v4365_v26  ;;  %v121_v26 = vld [vmem:[%s12201_s0 + $0x380] sm:$0xff]  ;;  %12301 = vst [vmem:[#allocation7_spill] sm:$0xff] %v8231_v39 }
  0x87   :  { %340 = vadd.xlane.f32.xlu1 %v339_v6  ;;  %337 = vadd.xlane.f32.xlu0 %v336_v7  ;;  %v100_v6 = vld [vmem:[%s12201_s0 + $0x2d8] sm:$0xff]  ;;  %v99_v7 = vld [vmem:[%s12201_s0 + $0x2d0] sm:$0xff] }
  0x8b   :  { %346 = vadd.xlane.f32.xlu1 %v345_v10  ;;  %343 = vadd.xlane.f32.xlu0 %v342_v11  ;;  %v8067_v10 = vsel %vm137_vm0, %v94_v54, 0.0  ;;  %v8070_v11 = vsel %vm137_vm0, %v93_v55, 0.0  ;;  %v8151_v54 = vsel %vm137_vm0, %v105_v24, 0.0  ;;  %v114_v55 = vld [vmem:[%s12201_s0 + $0x348] sm:$0xff] }
  0x8c   :  { %v7958_v14 = vpop.xlane.xlu1 %145  ;;  %v7961_v16 = vpop.xlane.xlu0 %139  ;;  %v8210_v24 = vsel %vm137_vm0, %v114_v55, 0.0  ;;  %v126_v55 = vld [vmem:[%s12201_s0 + $0x3a8] sm:$0xff] }
  0x8f   :  { %352 = vadd.xlane.f32.xlu1 %v351_v15  ;;  %349 = vadd.xlane.f32.xlu0 %v348_v17  ;;  %v104_v15 = vld [vmem:[%s12201_s0 + $0x2f8] sm:$0xff]  ;;  %v8082_v17 = vsel %vm137_vm0, %v96_v61, 0.0  ;;  %v8166_v61 = vsel %vm137_vm0, %v107_v38, 0.0  ;;  %v8228_v38 = vsel %vm137_vm0, %v115_v63, 0.0 }
  0x90   :  { %v7970_v20 = vpop.xlane.xlu1 %148  ;;  %v7973_v22 = vpop.xlane.xlu0 %142  ;;  %v8130_v46 = vsel %vm137_vm0, %v104_v15, 0.0  ;;  %v122_v15 = vld [vmem:[%s12201_s0 + $0x388] sm:$0xff]  ;;  %12300 = vst [vmem:[#allocation6_spill] sm:$0xff] %v8228_v38 }
  0x91   :  { %v8262_v0 = vsel %vm137_vm0, %v122_v15, 0.0  ;;  %v127_v15 = vld [vmem:[%s12201_s0 + $0x3b0] sm:$0xff] }
  0x92   :  { %12305 = vst [vmem:[#allocation11_spill] sm:$0xff] %v8262_v0  ;;  %v131_v0 = vld [vmem:[%s12201_s0 + $0x3d0] sm:$0xff] }
  0x93   :  { %358 = vadd.xlane.f32.xlu1 %v357_v21  ;;  %355 = vadd.xlane.f32.xlu0 %v354_v23  ;;  %v103_v21 = vld [vmem:[%s12201_s0 + $0x2f0] sm:$0xff]  ;;  %v106_v23 = vld [vmem:[%s12201_s0 + $0x308] sm:$0xff] }
  0x94   :  { %v7982_v27 = vpop.xlane.xlu1 %154  ;;  %v7985_v29 = vpop.xlane.xlu0 %151  ;;  %v8145_v52 = vsel %vm137_vm0, %v103_v21, 0.0  ;;  %v8148_v53 = vsel %vm137_vm0, %v106_v23, 0.0  ;;  %v8206_v21 = vsub.s32 %v801_v41, %v8016_v50  ;;  %v524_v23 = vmul.f32 0.015625, %v7958_v14 }
  0x95   :  { %v8234_v41 = vsel %vm137_vm0, %v117_v1, 0.0  ;;  %v8265_v1 = vsel %vm137_vm0, %v121_v26, 0.0  ;;  %v130_v26 = vld [vmem:[%s12201_s0 + $0x3c8] sm:$0xff] }
  0x96   :  { %12302 = vst [vmem:[#allocation8_spill] sm:$0xff] %v8234_v41  ;;  %12306 = vst [vmem:[#allocation12_spill] sm:$0xff] %v8265_v1  ;;  %v132_v1 = vld [vmem:[%s12201_s0 + $0x3d8] sm:$0xff] }
  0x97   :  { %364 = vadd.xlane.f32.xlu1 %v363_v28  ;;  %361 = vadd.xlane.f32.xlu0 %v360_v30  ;;  %v794_v28 = vunpack.c.0.s8 %v8033_v57  ;;  %v116_v57 = vld [vmem:[%s12201_s0 + $0x358] sm:$0xff] }
  0x98   :  { %v7994_v33 = vpop.xlane.xlu1 %160  ;;  %v7997_v35 = vpop.xlane.xlu0 %157  ;;  %v8225_v14 = vsel %vm137_vm0, %v116_v57, 0.0 }
  0x9b   :  { %370 = vadd.xlane.f32.xlu1 %v369_v34  ;;  %367 = vadd.xlane.f32.xlu0 %v366_v36  ;;  %v8108_v34 = vsel %vm137_vm0, %v100_v6, 0.0  ;;  %v8111_v36 = vsel %vm137_vm0, %v99_v7, 0.0  ;;  %v8191_v7 = vsel %vm137_vm0, %v112_v48, 0.0  ;;  %v8239_v48 = vsel %vm137_vm0, %v120_v13, 0.0 }
  0x9c   :  { %v8006_v42 = vpop.xlane.xlu1 %166  ;;  %v8009_v44 = vpop.xlane.xlu0 %163  ;;  %12303 = vst [vmem:[#allocation9_spill] sm:$0xff] %v8239_v48  ;;  %v8319_v48 = vsel %vm137_vm0, %v130_v26, 0.0  ;;  %v135_v26 = vld [vmem:[%s12201_s0 + $0x3f0] sm:$0xff] }
  0x9d   :  { %12313 = vst [vmem:[#allocation19_spill] sm:$0xff] %v8319_v48  ;;  %v8347_v48 = vmul.f32 0.015625, %v7982_v27 }
  0x9f   :  { %376 = vadd.xlane.f32.xlu1 %v375_v43  ;;  %373 = vadd.xlane.f32.xlu0 %v372_v47  ;;  %v8124_v43 = vsel %vm137_vm0, %v102_v12, 0.0  ;;  %v109_v47 = vld [vmem:[%s12201_s0 + $0x320] sm:$0xff]  ;;  %v8194_v12 = vsel %vm137_vm0, %v111_v49, 0.0 }
  0xa0   :  { %v8035_v58 = vpop.xlane.xlu1 %172  ;;  %v8038_v60 = vpop.xlane.xlu0 %169  ;;  %v8188_v6 = vsel %vm137_vm0, %v109_v47, 0.0  ;;  %v522_v47 = vmul.f32 0.015625, %v7961_v16  ;;  %v128_v16 = vld [vmem:[%s12201_s0 + $0x3b8] sm:$0xff] }
  0xa3   :  { %382 = vadd.xlane.f32.xlu1 %v381_v59  ;;  %379 = vadd.xlane.f32.xlu0 %v378_v3  ;;  %v8163_v59 = vsel %vm137_vm0, %v108_v37, 0.0  ;;  %v8181_v3 = vsub.s32 %v794_v28, %v8016_v50  ;;  %v124_v28 = vld [vmem:[%s12201_s0 + $0x398] sm:$0xff]  ;;  %v123_v37 = vld [vmem:[%s12201_s0 + $0x390] sm:$0xff] }
  0xa4   :  { %v8100_v30 = vpop.xlane.xlu1 %178  ;;  %v8102_v31 = vpop.xlane.xlu0 %175  ;;  %v8268_v13 = vsel %vm137_vm0, %v124_v28, 0.0  ;;  %v129_v28 = vld [vmem:[%s12201_s0 + $0x3c0] sm:$0xff] }
  0xa5   :  { %12307 = vst [vmem:[#allocation13_spill] sm:$0xff] %v8268_v13  ;;  %v854_v40 = vrot.slane %v524_v23, %v8181_v3  ;;  %v8291_v13 = vsel %vm137_vm0, %v125_v56, 0.0  ;;  %v805_v56 = vrot.slane %v522_v47, %v8206_v21  ;;  %v8322_v41 = vsel %vm137_vm0, %v129_v28, 0.0 }
  0xa6   :  { %12310 = vst [vmem:[#allocation16_spill] sm:$0xff] %v8291_v13  ;;  %12314 = vst [vmem:[#allocation20_spill] sm:$0xff] %v8322_v41 }
  0xa7   :  { %388 = vadd.xlane.f32.xlu1 %v387_v4  ;;  %385 = vadd.xlane.f32.xlu0 %v384_v9  ;;  %v119_v9 = vld [vmem:[%s12201_s0 + $0x370] sm:$0xff] }
  0xa8   :  { %v8183_v4 = vpop.xlane.xlu1 %184  ;;  %v8185_v5 = vpop.xlane.xlu0 %181  ;;  %v8242_v49 = vsel %vm137_vm0, %v119_v9, 0.0  ;;  %v8271_v9 = vsel %vm137_vm0, %v123_v37, 0.0  ;;  %v523_v37 = vmul.f32 0.015625, %v7973_v22  ;;  %v791_v22 = vrot.slane %v522_v47, %v8142_v51 }
  0xa9   :  { %12304 = vst [vmem:[#allocation10_spill] sm:$0xff] %v8242_v49  ;;  %12308 = vst [vmem:[#allocation14_spill] sm:$0xff] %v8271_v9  ;;  %v8288_v9 = vsel %vm137_vm0, %v126_v55, 0.0  ;;  %v784_v49 = vrot.slane %v522_v47, %v8063_v8  ;;  %v798_v55 = vrot.slane %v522_v47, %v8181_v3  ;;  %v133_v47 = vld [vmem:[%s12201_s0 + $0x3e0] sm:$0xff] }
  0xaa   :  { %12309 = vst [vmem:[#allocation15_spill] sm:$0xff] %v8288_v9  ;;  %v8316_v9 = vsel %vm137_vm0, %v127_v15, 0.0  ;;  %v136_v15 = vld [vmem:[%s12201_s0 + $0x3f8] sm:$0xff] }
  0xab   :  { %394 = vadd.xlane.f32.xlu1 %v8067_v10  ;;  %v8254_v10 = vsub.s32 %v4366_v2, %v8016_v50  ;;  %391 = vadd.xlane.f32.xlu0 %v8070_v11  ;;  %v840_v2 = vrot.slane %v524_v23, %v8063_v8  ;;  %v847_v11 = vrot.slane %v524_v23, %v8142_v51  ;;  %v8364_v27 = vsel %vm137_vm0, %v136_v15, 0.0 }
  0xac   :  { %v8257_v57 = vpop.xlane.xlu1 %190  ;;  %v8259_v63 = vpop.xlane.xlu0 %187  ;;  %v861_v50 = vrot.slane %v524_v23, %v8206_v21  ;;  %v8294_v23 = vsel %vm137_vm0, %v128_v16, 0.0  ;;  %v8308_v16 = vmul.f32 0.015625, %v7970_v20  ;;  %12312 = vst [vmem:[#allocation18_spill] sm:$0xff] %v8316_v9  ;;  %v134_v20 = vld [vmem:[%s12201_s0 + $0x3e8] sm:$0xff]  ;;  %v4362_v39 = vcombine.low %v784_v49, %v791_v22  ;;  %12319 = vst [vmem:[#allocation25_spill] sm:$0xff] %v8364_v27  ;;  %s7661_s0 = smov [#allocation2]  }
  0xad   :  { %12311 = vst [vmem:[#allocation17_spill] sm:$0xff] %v8294_v23  ;;  %v4396_v28 = vcombine.low %v840_v2, %v847_v11  ;;  %v8351_v9 = vsel %vm137_vm0, %v134_v20, 0.0  ;;  %v4363_v38 = vcombine.low %v798_v55, %v805_v56  ;;  %v8361_v11 = vsel %vm137_vm0, %v133_v47, 0.0  ;;  %s7616_s30 = sshll.u32 %s7661_s0, 4  ;;  %s7617_s30 = int_to_ptr.vmem [resolvable:$true] %s7616_s30 }
  0xae   :  { %v4397_v41 = vcombine.low %v854_v40, %v861_v50  ;;  %12317 = vst [vmem:[#allocation23_spill] sm:$0xff] %v8351_v9  ;;  %v868_v40 = vrot.slane %v8308_v16, %v8063_v8  ;;  %12318 = vst [vmem:[#allocation24_spill] sm:$0xff] %v8361_v11  ;;  %v875_v49 = vrot.slane %v8308_v16, %v8142_v51  ;;  %v526_v22 = vmul.f32 0.015625, %v7985_v29  ;;  %s7633_s2 = scalar_lea.vmem %s7617_s30, 128  ;;  %p7638_p1 = scmp.lt.s32.totalorder %s7617_s30, %s7617_s30 }
  0xaf   :  { %400 = vadd.xlane.f32.xlu1 %v8082_v17  ;;  %397 = vadd.xlane.f32.xlu0 %v8085_v18  ;;  %v8328_v17 = vsel %vm137_vm0, %v132_v1, 0.0  ;;  %v8331_v18 = vsel %vm137_vm0, %v131_v0, 0.0  ;;  %v812_v1 = vrot.slane %v523_v37, %v8063_v8  ;;  %v826_v0 = vrot.slane %v523_v37, %v8181_v3  ;;  %p7634_p0 = scmp.ne.s32.totalorder %s7617_s30, %s7633_s2  ;;  %p7639_p2 = scmp.lt.s32.totalorder %s7633_s2, %s7633_s2 }
  0xb0   :  { %v8311_v23 = vpop.xlane.xlu1 %196  ;;  %v8313_v13 = vpop.xlane.xlu0 %193  ;;  %12315 = vst [vmem:[#allocation21_spill] sm:$0xff] %v8328_v17  ;;  %12316 = vst [vmem:[#allocation22_spill] sm:$0xff] %v8331_v18  ;;  %v819_v17 = vrot.slane %v523_v37, %v8142_v51  ;;  %v833_v18 = vrot.slane %v523_v37, %v8206_v21  ;;  %v882_v37 = vrot.slane %v8308_v16, %v8181_v3 }
  0xb1   :  { %v4404_v20 = vrot.slane %v4396_v28, %v8254_v10  ;;  %v4411_v47 = vrot.slane %v4397_v41, %v8254_v10  ;;  %v924_v15 = vrot.slane %v8347_v48, %v8063_v8  ;;  %v931_v29 = vrot.slane %v8347_v48, %v8142_v51  ;;  %p7640_p3 = por %p7639_p2, %p7638_p1 }
  0xb2   :  { %v4379_v55 = vcombine.low %v812_v1, %v819_v17  ;;  %v4380_v56 = vcombine.low %v826_v0, %v833_v18  ;;  %v531_v18 = vmul.f32 0.015625, %v8006_v42  ;;  %v910_v28 = vrot.slane %v526_v22, %v8181_v3 }
  0xb3   :  { %406 = vadd.xlane.f32.xlu1 %v8088_v19  ;;  %403 = vadd.xlane.f32.xlu0 %v8105_v32  ;;  %v8367_v19 = vsel %vm137_vm0, %v135_v26, 0.0  ;;  %v889_v32 = vrot.slane %v8308_v16, %v8206_v21  ;;  %v8381_v26 = vmul.f32 0.015625, %v7994_v33  ;;  %v4377_v16 = vrot.slane %v4363_v38, %v8254_v10  ;;  %p7641_p4 = pnand %p7640_p3, %p7634_p0 }
  0xb4   :  { %v8356_v50 = vpop.xlane.xlu1 %202  ;;  %v8358_v2 = vpop.xlane.xlu0 %199  ;;  %12320 = vst [vmem:[#allocation26_spill] sm:$0xff] %v8367_v19  ;;  %v4370_v19 = vrot.slane %v4362_v39, %v8254_v10  ;;  %v896_v39 = vrot.slane %v526_v22, %v8063_v8  ;;  %v903_v38 = vrot.slane %v526_v22, %v8142_v51  ;;  %v917_v1 = vrot.slane %v526_v22, %v8206_v21 }
  0xb5   :  { %v8403_v0 = vmul.f32 0.015625, %v7997_v35  ;;  %v4387_v17 = vrot.slane %v4379_v55, %v8254_v10  ;;  %v4394_v42 = vrot.slane %v4380_v56, %v8254_v10  ;;  %v4413_v11 = vcombine.low %v868_v40, %v875_v49 }
  0xb6   :  { %v8412_v27 = vcombine.low %v4370_v19, %v4377_v16  ;;  %v4414_v9 = vcombine.low %v882_v37, %v889_v32  ;;  %v1036_v55 = vrot.slane %v531_v18, %v8063_v8  ;;  %v8420_v56 = vmul.f32 0.015625, %v8009_v44 }
  0xb7   :  { %412 = vadd.xlane.f32.xlu1 %v8108_v34  ;;  %409 = vadd.xlane.f32.xlu0 %v8111_v36  ;;  %v8407_v36 = vcombine.low %v4404_v20, %v4411_v47  ;;  %v1043_v40 = vrot.slane %v531_v18, %v8142_v51  ;;  %v1050_v19 = vrot.slane %v531_v18, %v8181_v3  ;;  %v533_v37 = vmul.f32 0.015625, %v8035_v58 }
  0xb8   :  { %v8394_v33 = vpop.xlane.xlu1 %208  ;;  %v8396_v34 = vpop.xlane.xlu0 %205  ;;  %v1057_v49 = vrot.slane %v531_v18, %v8206_v21  ;;  %v8442_v18 = vcombine.low %v4387_v17, %v4394_v42  ;;  %v4421_v58 = vrot.slane %v4413_v11, %v8254_v10  ;;  %v4428_v35 = vrot.slane %v4414_v9, %v8254_v10 }
  0xb9   :  { %v4430_v47 = vcombine.low %v896_v39, %v903_v38  ;;  %v4431_v44 = vcombine.low %v910_v28, %v917_v1  ;;  %v8453_v16 = vcombine.low %v924_v15, %v931_v29  ;;  %v8457_v17 = vmul.f32 0.015625, %v8038_v60 }
  0xba   :  { %v4515_v11 = vcombine.low %v1036_v55, %v1043_v40  ;;  %v4516_v9 = vcombine.low %v1050_v19, %v1057_v49  ;;  %v1099_v42 = vrot.slane %v533_v37, %v8142_v51  ;;  %v1106_v32 = vrot.slane %v533_v37, %v8181_v3 }
  0xbb   :  { %418 = vadd.xlane.f32.xlu1 %v8124_v43  ;;  %415 = vadd.xlane.f32.xlu0 %v8127_v45  ;;  %v535_v45 = vmul.f32 0.015625, %v8100_v30  ;;  %v1015_v39 = vrot.slane %v8420_v56, %v8142_v51  ;;  %v1029_v60 = vrot.slane %v8420_v56, %v8206_v21  ;;  %v8470_v29 = vcombine.low %v4421_v58, %v4428_v35 }
  0xbc   :  { %v8423_v20 = vpop.xlane.xlu1 %214  ;;  %v8425_v43 = vpop.xlane.xlu0 %211  ;;  %v8473_v38 = vmul.f32 0.015625, %v8102_v31  ;;  %v4438_v1 = vrot.slane %v4430_v47, %v8254_v10  ;;  %v4445_v55 = vrot.slane %v4431_v44, %v8254_v10  ;;  %v12321_v40 = vrot.slane %v8347_v48, %v8206_v21 }
  0xbd   :  { %v4523_v49 = vrot.slane %v4515_v11, %v8254_v10  ;;  %v4530_v44 = vrot.slane %v4516_v9, %v8254_v10  ;;  %v537_v31 = vmul.f32 0.015625, %v8183_v4  ;;  %vm7586_vm0 = vcmask 1041409  }
  0xbe   :  { %v8511_v9 = vcombine.low %v4438_v1, %v4445_v55 }
  0xbf   :  { %424 = vadd.xlane.f32.xlu1 %v8130_v46  ;;  %421 = vadd.xlane.f32.xlu0 %v8145_v52  ;;  %v1092_v46 = vrot.slane %v533_v37, %v8063_v8  ;;  %v1113_v52 = vrot.slane %v533_v37, %v8206_v21  ;;  %v1148_v37 = vrot.slane %v535_v45, %v8063_v8 }
  0xc0   :  { %v8449_v41 = vpop.xlane.xlu1 %220  ;;  %v8451_v22 = vpop.xlane.xlu0 %217  ;;  %v1204_v11 = vrot.slane %v537_v31, %v8063_v8 }
  0xc1   :  { %v4549_v47 = vcombine.low %v1092_v46, %v1099_v42  ;;  %v4550_v58 = vcombine.low %v1106_v32, %v1113_v52  ;;  %v8524_v52 = vcombine.low %v4523_v49, %v4530_v44  ;;  %v1218_v49 = vrot.slane %v537_v31, %v8181_v3 }
  0xc2   :  { %v1225_v44 = vrot.slane %v537_v31, %v8206_v21 }
  0xc3   :  { %430 = vadd.xlane.f32.xlu1 %v8148_v53  ;;  %427 = vadd.xlane.f32.xlu0 %v8151_v54  ;;  %v12322_v53 = vrot.slane %v8347_v48, %v8181_v3  ;;  %v1155_v48 = vrot.slane %v535_v45, %v8142_v51  ;;  %v4557_v1 = vrot.slane %v4549_v47, %v8254_v10  ;;  %v8538_v47 = vmul.f32 0.015625, %v8259_v63 }
  0xc4   :  { %v8476_v28 = vpop.xlane.xlu1 %226  ;;  %v8478_v30 = vpop.xlane.xlu0 %223  ;;  %v4564_v55 = vrot.slane %v4550_v58, %v8254_v10  ;;  %v4618_v19 = vcombine.low %v1218_v49, %v1225_v44  ;;  %v12329_v54 = vrot.slane %v8381_v26, %v8206_v21 }
  0xc5   :  { %v4448_v35 = vcombine.low %v12322_v53, %v12321_v40  ;;  %v1162_v40 = vrot.slane %v535_v45, %v8181_v3  ;;  %v1169_v53 = vrot.slane %v535_v45, %v8206_v21  ;;  %v4455_v45 = vrot.slane %v8453_v16, %v8254_v10 }
  0xc6   :  { %v4583_v4 = vcombine.low %v1148_v37, %v1155_v48  ;;  %v8553_v63 = vcombine.low %v4557_v1, %v4564_v55  ;;  %v12326_v37 = vrot.slane %v8403_v0, %v8181_v3 }
  0xc7   :  { %436 = vadd.xlane.f32.xlu1 %v8163_v59  ;;  %433 = vadd.xlane.f32.xlu0 %v8166_v61  ;;  %v8522_v61 = vmul.f32 0.015625, %v8185_v5  ;;  %v4462_v16 = vrot.slane %v4448_v35, %v8254_v10  ;;  %v8531_v59 = vmul.f32 0.015625, %v8257_v57  ;;  %v4584_v42 = vcombine.low %v1162_v40, %v1169_v53 }
  0xc8   :  { %v8507_v46 = vpop.xlane.xlu1 %232  ;;  %v8509_v32 = vpop.xlane.xlu0 %229  ;;  %v1211_v5 = vrot.slane %v537_v31, %v8142_v51  ;;  %v12324_v40 = vrot.slane %v8403_v0, %v8063_v8  ;;  %v4591_v55 = vrot.slane %v4583_v4, %v8254_v10  ;;  %v8604_v4 = vmul.f32 0.015625, %v8356_v50 }
  0xc9   :  { %v8555_v48 = vcombine.low %v4455_v45, %v4462_v16  ;;  %v1260_v1 = vrot.slane %v8531_v59, %v8063_v8  ;;  %v8572_v45 = vmul.f32 0.015625, %v8311_v23  ;;  %v4598_v16 = vrot.slane %v4584_v42, %v8254_v10 }
  0xca   :  { %v4617_v31 = vcombine.low %v1204_v11, %v1211_v5 }
  0xcb   :  { %442 = vadd.xlane.f32.xlu1 %v8169_v62  ;;  %439 = vadd.xlane.f32.xlu0 %v8188_v6  ;;  %v12323_v6 = vrot.slane %v8403_v0, %v8142_v51  ;;  %v12325_v62 = vrot.slane %v8403_v0, %v8206_v21  ;;  %v1281_v0 = vrot.slane %v8531_v59, %v8206_v21 }
  0xcc   :  { %v8541_v35 = vpop.xlane.xlu1 %238  ;;  %v8543_v58 = vpop.xlane.xlu0 %235  ;;  %v8607_v42 = vcombine.low %v4591_v55, %v4598_v16  ;;  %v1323_v11 = vrot.slane %v8572_v45, %v8142_v51  ;;  %v1330_v5 = vrot.slane %v8572_v45, %v8181_v3  ;;  %v1337_v50 = vrot.slane %v8572_v45, %v8206_v21 }
  0xcd   :  { %v4464_v53 = vcombine.low %v12324_v40, %v12323_v6  ;;  %v4465_v57 = vcombine.low %v12326_v37, %v12325_v62  ;;  %v1267_v6 = vrot.slane %v8531_v59, %v8142_v51  ;;  %v1274_v40 = vrot.slane %v8531_v59, %v8181_v3 }
  0xce   :  { %v8597_v59 = vmul.f32 0.015625, %v8313_v13  ;;  %v12327_v13 = vrot.slane %v8381_v26, %v8142_v51  ;;  %v1372_v55 = vrot.slane %v8604_v4, %v8063_v8  ;;  %v8650_v16 = vmul.f32 0.015625, %v8394_v33 }
  0xcf   :  { %448 = vadd.xlane.f32.xlu1 %v8191_v7  ;;  %445 = vadd.xlane.f32.xlu0 %v8194_v12  ;;  %v4472_v62 = vrot.slane %v4464_v53, %v8254_v10  ;;  %v4479_v12 = vrot.slane %v4465_v57, %v8254_v10  ;;  %v12328_v53 = vrot.slane %v8381_v26, %v8063_v8 }
  0xd0   :  { %v8586_v23 = vpop.xlane.xlu1 %244  ;;  %v8588_v7 = vpop.xlane.xlu0 %241  ;;  %v12330_v57 = vrot.slane %v8381_v26, %v8181_v3 }
  0xd1   :  { %v4481_v37 = vcombine.low %v12328_v53, %v12327_v13  ;;  %v4632_v53 = vrot.slane %v4618_v19, %v8254_v10  ;;  %v1379_v19 = vrot.slane %v8604_v4, %v8142_v51  ;;  %v8674_v13 = vmul.f32 0.015625, %v8396_v34 }
  0xd2   :  { %v4482_v15 = vcombine.low %v12330_v57, %v12329_v54  ;;  %v12331_v57 = vld [vmem:[#allocation6_spill] sm:$0xff] }
  0xd3   :  { %454 = vadd.xlane.f32.xlu1 %v8210_v24  ;;  %v8622_v24 = vmul.f32 0.015625, %v8358_v2  ;;  %451 = vadd.xlane.f32.xlu0 %v8213_v25  ;;  %v8637_v2 = vcombine.low %v4472_v62, %v4479_v12  ;;  %v4625_v25 = vrot.slane %v4617_v31, %v8254_v10  ;;  %v4489_v62 = vrot.slane %v4481_v37, %v8254_v10 }
  0xd4   :  { %v8625_v49 = vpop.xlane.xlu1 %250  ;;  %v8627_v44 = vpop.xlane.xlu0 %247  ;;  %v4651_v31 = vcombine.low %v1260_v1, %v1267_v6  ;;  %v4496_v54 = vrot.slane %v4482_v15, %v8254_v10  ;;  %v4652_v12 = vcombine.low %v1274_v40, %v1281_v0  ;;  %v12333_v6 = vrot.slane %v8420_v56, %v8181_v3  ;;  %v12334_v40 = vld [vmem:[#allocation7_spill] sm:$0xff] }
  0xd5   :  { %v8692_v15 = vmul.f32 0.015625, %v8423_v20  ;;  %v8695_v0 = vcombine.low %v4625_v25, %v4632_v53  ;;  %v12335_v20 = vld [vmem:[#allocation8_spill] sm:$0xff] }
  0xd6   :  { %v4499_v37 = vcombine.low %v12333_v6, %v1029_v60  ;;  %v4659_v1 = vrot.slane %v4651_v31, %v8254_v10  ;;  %v8705_v60 = vmul.f32 0.015625, %v8425_v43  ;;  %v8720_v43 = vcombine.low %v4489_v62, %v4496_v54  ;;  %v12337_v31 = vld [vmem:[#allocation9_spill] sm:$0xff] }
  0xd7   :  { %460 = vadd.xlane.f32.xlu1 %v8225_v14  ;;  %457 = vadd.xlane.f32.xlu0 %v12331_v57  ;;  %v12332_v57 = vrot.slane %v8420_v56, %v8063_v8  ;;  %v4686_v62 = vcombine.low %v1330_v5, %v1337_v50  ;;  %v8754_v50 = vmul.f32 0.015625, %v8451_v22  ;;  %v12345_v5 = vrot.slane %v8457_v17, %v8181_v3 }
  0xd8   :  { %v8663_v33 = vpop.xlane.xlu1 %256  ;;  %v8665_v14 = vpop.xlane.xlu0 %253  ;;  %12336 = vst [vmem:[#allocation6_spill] sm:$0xff] %v8720_v43  ;;  %v4513_v34 = vrot.slane %v4499_v37, %v8254_v10  ;;  %v12339_v37 = vld [vmem:[#allocation10_spill] sm:$0xff] }
  0xd9   :  { %v4498_v26 = vcombine.low %v12332_v57, %v1015_v39  ;;  %v8728_v39 = vmul.f32 0.015625, %v8449_v41 }
  0xdb   :  { %466 = vadd.xlane.f32.xlu1 %v12334_v40  ;;  %463 = vadd.xlane.f32.xlu0 %v12335_v20  ;;  %v4666_v20 = vrot.slane %v4652_v12, %v8254_v10  ;;  %v4506_v56 = vrot.slane %v4498_v26, %v8254_v10  ;;  %v12338_v40 = vrot.slane %v8572_v45, %v8063_v8 }
  0xdc   :  { %v8708_v6 = vpop.xlane.xlu1 %262  ;;  %v8710_v25 = vpop.xlane.xlu0 %259  ;;  %v12343_v26 = vrot.slane %v8457_v17, %v8063_v8 }
  0xdd   :  { %v4685_v57 = vcombine.low %v12338_v40, %v1323_v11  ;;  %v8756_v40 = vcombine.low %v4659_v1, %v4666_v20  ;;  %v8758_v41 = vcombine.low %v4506_v56, %v4513_v34  ;;  %v12344_v11 = vrot.slane %v8457_v17, %v8206_v21  ;;  %v12346_v34 = vld [vmem:[#allocation11_spill] sm:$0xff] }
  0xde   :  { %v8775_v1 = vmul.f32 0.015625, %v8476_v28  ;;  %v4700_v20 = vrot.slane %v4686_v62, %v8254_v10  ;;  %v12347_v28 = vld [vmem:[#allocation12_spill] sm:$0xff]  ;;  %v12348_v62 = vrot.slane %v8604_v4, %v8206_v21 }
  0xdf   :  { %472 = vadd.xlane.f32.xlu1 %v12337_v31  ;;  %469 = vadd.xlane.f32.xlu0 %v12339_v37  ;;  %12340 = vst [vmem:[#allocation7_spill] sm:$0xff] %v8756_v40  ;;  %12341 = vst [vmem:[#allocation8_spill] sm:$0xff] %v8758_v41  ;;  %v12342_v37 = vrot.slane %v8457_v17, %v8142_v51  ;;  %v4533_v54 = vcombine.low %v12345_v5, %v12344_v11  ;;  %v8787_v11 = vmul.f32 0.015625, %v8478_v30 }
  0xe0   :  { %v8743_v31 = vpop.xlane.xlu1 %268  ;;  %v8745_v53 = vpop.xlane.xlu0 %265  ;;  %v4693_v56 = vrot.slane %v4685_v57, %v8254_v10  ;;  %v4719_v57 = vcombine.low %v1372_v55, %v1379_v19  ;;  %v12352_v55 = vrot.slane %v8473_v38, %v8142_v51  ;;  %v12353_v19 = vrot.slane %v8473_v38, %v8063_v8 }
  0xe1   :  { %v4532_v45 = vcombine.low %v12343_v26, %v12342_v37  ;;  %v12349_v37 = vrot.slane %v8604_v4, %v8181_v3  ;;  %v12356_v4 = vrot.slane %v8473_v38, %v8206_v21 }
  0xe2   :  { %v8822_v26 = vcombine.low %v4693_v56, %v4700_v20  ;;  %v4566_v12 = vcombine.low %v12353_v19, %v12352_v55  ;;  %v12354_v20 = vld [vmem:[#allocation14_spill] sm:$0xff]  ;;  %v12357_v55 = vrot.slane %v8473_v38, %v8181_v3  ;;  %v12363_v38 = vrot.slane %v8650_v16, %v8181_v3 }
  0xe3   :  { %478 = vadd.xlane.f32.xlu1 %v12346_v34  ;;  %475 = vadd.xlane.f32.xlu0 %v12347_v28  ;;  %v4540_v30 = vrot.slane %v4532_v45, %v8254_v10  ;;  %v4547_v28 = vrot.slane %v4533_v54, %v8254_v10  ;;  %v4720_v22 = vcombine.low %v12349_v37, %v12348_v62  ;;  %v8819_v45 = vmul.f32 0.015625, %v8507_v46  ;;  %v12350_v54 = vld [vmem:[#allocation13_spill] sm:$0xff] }
  0xe4   :  { %v8790_v5 = vpop.xlane.xlu1 %274  ;;  %v8792_v34 = vpop.xlane.xlu0 %271  ;;  %12351 = vst [vmem:[#allocation9_spill] sm:$0xff] %v8822_v26  ;;  %v8850_v46 = vmul.f32 0.015625, %v8509_v32  ;;  %v4567_v26 = vcombine.low %v12357_v55, %v12356_v4  ;;  %v8865_v37 = vmul.f32 0.015625, %v8541_v35  ;;  %v12358_v32 = vld [vmem:[#allocation15_spill] sm:$0xff]  ;;  %v8882_v55 = vmul.f32 0.015625, %v8543_v58 }
  0xe5   :  { %v8852_v17 = vcombine.low %v4540_v30, %v4547_v28  ;;  %v4734_v56 = vrot.slane %v4720_v22, %v8254_v10  ;;  %v4574_v30 = vrot.slane %v4566_v12, %v8254_v10  ;;  %v12359_v22 = vrot.slane %v8650_v16, %v8142_v51  ;;  %v12361_v12 = vld [vmem:[#allocation16_spill] sm:$0xff] }
  0xe6   :  { %v4581_v58 = vrot.slane %v4567_v26, %v8254_v10  ;;  %v12366_v4 = vrot.slane %v8522_v61, %v8206_v21  ;;  %v12367_v26 = vrot.slane %v8522_v61, %v8181_v3 }
  0xe7   :  { %484 = vadd.xlane.f32.xlu1 %v12350_v54  ;;  %481 = vadd.xlane.f32.xlu0 %v12354_v20  ;;  %12355 = vst [vmem:[#allocation10_spill] sm:$0xff] %v8852_v17  ;;  %v4727_v20 = vrot.slane %v4719_v57, %v8254_v10  ;;  %v12360_v57 = vrot.slane %v8650_v16, %v8063_v8 }
  0xe8   :  { %v8839_v62 = vpop.xlane.xlu1 %280  ;;  %v8841_v54 = vpop.xlane.xlu0 %277  ;;  %v4601_v35 = vcombine.low %v12367_v26, %v12366_v4 }
  0xe9   :  { %v4753_v28 = vcombine.low %v12360_v57, %v12359_v22  ;;  %v12364_v22 = vrot.slane %v8522_v61, %v8142_v51  ;;  %v12365_v57 = vrot.slane %v8522_v61, %v8063_v8  ;;  %v8947_v61 = vcombine.low %v4574_v30, %v4581_v58 }
  0xea   :  { %v4615_v40 = vrot.slane %v4601_v35, %v8254_v10  ;;  %v12374_v30 = vrot.slane %v8692_v15, %v8063_v8 }
  0xeb   :  { %490 = vadd.xlane.f32.xlu1 %v12358_v32  ;;  %487 = vadd.xlane.f32.xlu0 %v12361_v12  ;;  %v12362_v12 = vrot.slane %v8650_v16, %v8206_v21  ;;  %v4600_v41 = vcombine.low %v12365_v57, %v12364_v22  ;;  %v8919_v16 = vmul.f32 0.015625, %v8586_v23  ;;  %v4761_v43 = vrot.slane %v4753_v28, %v8254_v10  ;;  %v12370_v23 = vld [vmem:[#allocation18_spill] sm:$0xff]  ;;  %v12372_v28 = vld [vmem:[#allocation19_spill] sm:$0xff] }
  0xec   :  { %v8885_v32 = vpop.xlane.xlu1 %286  ;;  %v8887_v19 = vpop.xlane.xlu0 %283  ;;  %v8945_v57 = vmul.f32 0.015625, %v8588_v7  ;;  %12371 = vst [vmem:[#allocation12_spill] sm:$0xff] %v8947_v61  ;;  %v8955_v22 = vmul.f32 0.015625, %v8625_v49  ;;  %v12373_v7 = vrot.slane %v8692_v15, %v8142_v51  ;;  %v12382_v49 = vrot.slane %v8538_v47, %v8063_v8 }
  0xed   :  { %v4754_v17 = vcombine.low %v12363_v38, %v12362_v12  ;;  %v12368_v38 = vld [vmem:[#allocation17_spill] sm:$0xff]  ;;  %v8922_v12 = vcombine.low %v4727_v20, %v4734_v56  ;;  %v4608_v4 = vrot.slane %v4600_v41, %v8254_v10  ;;  %v12375_v41 = vrot.slane %v8692_v15, %v8206_v21 }
  0xee   :  { %v4787_v58 = vcombine.low %v12374_v30, %v12373_v7  ;;  %v8977_v20 = vmul.f32 0.015625, %v8627_v44  ;;  %v12378_v7 = vld [vmem:[#allocation20_spill] sm:$0xff] }
  0xef   :  { %496 = vadd.xlane.f32.xlu1 %v12368_v38  ;;  %12369 = vst [vmem:[#allocation11_spill] sm:$0xff] %v8922_v12  ;;  %493 = vadd.xlane.f32.xlu0 %v12370_v23  ;;  %v4768_v23 = vrot.slane %v4754_v17, %v8254_v10  ;;  %v12376_v17 = vrot.slane %v8692_v15, %v8181_v3 }
  0xf0   :  { %v8934_v26 = vpop.xlane.xlu1 %292  ;;  %v8936_v56 = vpop.xlane.xlu0 %289  ;;  %12377 = vst [vmem:[#allocation13_spill] sm:$0xff] %v8977_v20  ;;  %v8994_v38 = vcombine.low %v4608_v4, %v4615_v40  ;;  %v9011_v40 = vmul.f32 0.015625, %v8663_v33  ;;  %v12385_v4 = vld [vmem:[#allocation21_spill] sm:$0xff]  ;;  %v12386_v33 = vld [vmem:[#allocation22_spill] sm:$0xff] }
  0xf1   :  { %v4788_v35 = vcombine.low %v12376_v17, %v12375_v41  ;;  %v8992_v44 = vcombine.low %v4761_v43, %v4768_v23  ;;  %v12383_v41 = vrot.slane %v8538_v47, %v8206_v21  ;;  %v12384_v17 = vrot.slane %v8538_v47, %v8181_v3 }
  0xf2   :  { %12380 = vst [vmem:[#allocation15_spill] sm:$0xff] %v8994_v38  ;;  %v4795_v23 = vrot.slane %v4787_v58, %v8254_v10  ;;  %v12388_v43 = vrot.slane %v8728_v39, %v8142_v51 }
  0xf3   :  { %502 = vadd.xlane.f32.xlu1 %v12372_v28  ;;  %499 = vadd.xlane.f32.xlu0 %v12378_v7  ;;  %12379 = vst [vmem:[#allocation14_spill] sm:$0xff] %v8992_v44  ;;  %v12381_v7 = vrot.slane %v8538_v47, %v8142_v51  ;;  %v4635_v12 = vcombine.low %v12384_v17, %v12383_v41  ;;  %v9036_v47 = vmul.f32 0.015625, %v8665_v14 }
  0xf4   :  { %v8980_v30 = vpop.xlane.xlu1 %298  ;;  %v8982_v61 = vpop.xlane.xlu0 %295  ;;  %v4802_v28 = vrot.slane %v4788_v35, %v8254_v10  ;;  %v12390_v35 = vrot.slane %v8728_v39, %v8206_v21 }
  0xf5   :  { %v4634_v15 = vcombine.low %v12382_v49, %v12381_v7  ;;  %12387 = vst [vmem:[#allocation16_spill] sm:$0xff] %v9036_v47  ;;  %v12389_v49 = vrot.slane %v8728_v39, %v8063_v8  ;;  %v12391_v7 = vrot.slane %v8728_v39, %v8181_v3  ;;  %v12399_v39 = vrot.slane %v8597_v59, %v8206_v21 }
  0xf6   :  { %v9058_v20 = vcombine.low %v4795_v23, %v4802_v28  ;;  %v12397_v28 = vld [vmem:[#allocation24_spill] sm:$0xff] }
  0xf7   :  { %508 = vadd.xlane.f32.xlu1 %v12385_v4  ;;  %505 = vadd.xlane.f32.xlu0 %v12386_v33  ;;  %v4642_v41 = vrot.slane %v4634_v15, %v8254_v10  ;;  %v4649_v33 = vrot.slane %v4635_v12, %v8254_v10  ;;  %v4821_v58 = vcombine.low %v12389_v49, %v12388_v43  ;;  %v9055_v15 = vmul.f32 0.015625, %v8708_v6  ;;  %v12392_v12 = vld [vmem:[#allocation23_spill] sm:$0xff]  ;;  %v12401_v6 = vld [vmem:[#allocation25_spill] sm:$0xff] }
  0xf8   :  { %v9025_v17 = vpop.xlane.xlu1 %304  ;;  %v9027_v4 = vpop.xlane.xlu0 %301  ;;  %v4822_v38 = vcombine.low %v12391_v7, %v12390_v35  ;;  %12393 = vst [vmem:[#allocation17_spill] sm:$0xff] %v9058_v20  ;;  %v12394_v43 = vrot.slane %v8597_v59, %v8142_v51  ;;  %v12395_v49 = vrot.slane %v8597_v59, %v8063_v8  ;;  %v9073_v35 = vmul.f32 0.015625, %v8710_v25 }
  0xf9   :  { %v9088_v25 = vcombine.low %v4642_v41, %v4649_v33  ;;  %v9101_v7 = vmul.f32 0.015625, %v8743_v31  ;;  %v9131_v31 = vmul.f32 0.015625, %v8745_v53  ;;  %v12410_v53 = vrot.slane %v8622_v24, %v8206_v21 }
  0xfa   :  { %v4668_v44 = vcombine.low %v12395_v49, %v12394_v43  ;;  %12396 = vst [vmem:[#allocation18_spill] sm:$0xff] %v9073_v35  ;;  %v4836_v14 = vrot.slane %v4822_v38, %v8254_v10  ;;  %v12400_v43 = vrot.slane %v8597_v59, %v8181_v3  ;;  %v12402_v38 = vrot.slane %v8775_v1, %v8142_v51 }
  0xfb   :  { %514 = vadd.xlane.f32.xlu1 %v12392_v12  ;;  %511 = vadd.xlane.f32.xlu0 %v12397_v28  ;;  %12398 = vst [vmem:[#allocation19_spill] sm:$0xff] %v9088_v25  ;;  %v4829_v28 = vrot.slane %v4821_v58, %v8254_v10  ;;  %v12403_v58 = vrot.slane %v8775_v1, %v8063_v8  ;;  %12405 = vst [vmem:[#allocation20_spill] sm:$0xff] %v9131_v31 }
  0xfc   :  { %v9076_v23 = vpop.xlane.xlu1 %310  ;;  %v9078_v12 = vpop.xlane.xlu0 %307  ;;  %v4669_v20 = vcombine.low %v12400_v43, %v12399_v39  ;;  %v4676_v41 = vrot.slane %v4668_v44, %v8254_v10  ;;  %v12404_v44 = vld [vmem:[#allocation26_spill] sm:$0xff]  ;;  %v12407_v59 = vrot.slane %v8775_v1, %v8181_v3  ;;  %v12422_v31 = vrot.slane %v8674_v13, %v8063_v8 }
  0xfd   :  { %v4855_v33 = vcombine.low %v12403_v58, %v12402_v38  ;;  %v12408_v38 = vrot.slane %v8622_v24, %v8142_v51  ;;  %v12409_v58 = vrot.slane %v8622_v24, %v8063_v8 }
  0xff   :  { %520 = vadd.xlane.f32.xlu1 %v12401_v6  ;;  %517 = vadd.xlane.f32.xlu0 %v12404_v44  ;;  %v4683_v6 = vrot.slane %v4669_v20, %v8254_v10  ;;  %v12406_v44 = vrot.slane %v8775_v1, %v8206_v21  ;;  %v4702_v25 = vcombine.low %v12409_v58, %v12408_v38  ;;  %v9155_v1 = vmul.f32 0.015625, %v8790_v5 }
 0x100   :  { %v9120_v43 = vpop.xlane.xlu1 %316  ;;  %v9122_v49 = vpop.xlane.xlu0 %313  ;;  %v12411_v20 = vrot.slane %v8622_v24, %v8181_v3  ;;  %v12415_v58 = vrot.slane %v8819_v45, %v8063_v8 }
 0x101   :  { %v4856_v47 = vcombine.low %v12407_v59, %v12406_v44  ;;  %v9157_v59 = vcombine.low %v4829_v28, %v4836_v14  ;;  %v4863_v44 = vrot.slane %v4855_v33, %v8254_v10  ;;  %v9181_v24 = vcombine.low %v4676_v41, %v4683_v6 }
 0x102   :  { %v4703_v39 = vcombine.low %v12411_v20, %v12410_v53  ;;  %v9167_v53 = vmul.f32 0.015625, %v8792_v34  ;;  %v4710_v35 = vrot.slane %v4702_v25, %v8254_v10  ;;  %v12414_v33 = vrot.slane %v8819_v45, %v8142_v51 }
 0x103   :  { %12412 = vst [vmem:[#allocation21_spill] sm:$0xff] %v9157_v59  ;;  %v4870_v34 = vrot.slane %v4856_v47, %v8254_v10  ;;  %v9189_v59 = vmul.f32 0.015625, %v8839_v62  ;;  %v12416_v47 = vrot.slane %v8819_v45, %v8206_v21  ;;  %v12417_v25 = vrot.slane %v8819_v45, %v8181_v3 }
 0x104   :  { %12413 = vst [vmem:[#allocation22_spill] sm:$0xff] %v9167_v53  ;;  %v9169_v20 = vpop.xlane.xlu1 %322  ;;  %v9171_v5 = vpop.xlane.xlu0 %319  ;;  %v4717_v38 = vrot.slane %v4703_v39, %v8254_v10  ;;  %v4889_v41 = vcombine.low %v12415_v58, %v12414_v33  ;;  %v9222_v62 = vmul.f32 0.015625, %v8841_v54  ;;  %v12421_v14 = vrot.slane %v8674_v13, %v8142_v51 }
 0x105   :  { %v4890_v39 = vcombine.low %v12417_v25, %v12416_v47  ;;  %v9224_v28 = vcombine.low %v4863_v44, %v4870_v34  ;;  %v12423_v47 = vrot.slane %v8674_v13, %v8206_v21  ;;  %v12424_v25 = vrot.slane %v8674_v13, %v8181_v3 }
 0x106   :  { %12418 = vst [vmem:[#allocation23_spill] sm:$0xff] %v9222_v62  ;;  %v9226_v6 = vcombine.low %v4710_v35, %v4717_v38  ;;  %v4736_v45 = vcombine.low %v12422_v31, %v12421_v14  ;;  %v9243_v35 = vmul.f32 0.015625, %v8885_v32  ;;  %v4897_v44 = vrot.slane %v4889_v41, %v8254_v10 }
 0x107   :  { %12419 = vst [vmem:[#allocation24_spill] sm:$0xff] %v9224_v28  ;;  %v4737_v53 = vcombine.low %v12424_v25, %v12423_v47  ;;  %v4904_v38 = vrot.slane %v4890_v39, %v8254_v10  ;;  %v9254_v34 = vmul.f32 0.015625, %v8887_v19  ;;  %v12425_v54 = vrot.slane %v8865_v37, %v8142_v51 }
 0x108   :  { %v9211_v58 = vpop.xlane.xlu1 %328  ;;  %v9213_v33 = vpop.xlane.xlu0 %325  ;;  %12420 = vst [vmem:[#allocation25_spill] sm:$0xff] %v9226_v6  ;;  %v4744_v13 = vrot.slane %v4736_v45, %v8254_v10  ;;  %v12426_v31 = vrot.slane %v8865_v37, %v8063_v8  ;;  %v12427_v39 = vrot.slane %v8865_v37, %v8206_v21  ;;  %v12428_v25 = vrot.slane %v8865_v37, %v8181_v3 }
 0x109   :  { %v4751_v19 = vrot.slane %v4737_v53, %v8254_v10  ;;  %v9285_v45 = vmul.f32 0.015625, %v8934_v26  ;;  %v9287_v53 = vcombine.low %v4897_v44, %v4904_v38  ;;  %v12429_v62 = vrot.slane %v8705_v60, %v8142_v51 }
 0x10a   :  { %v4923_v41 = vcombine.low %v12426_v31, %v12425_v54  ;;  %v4924_v6 = vcombine.low %v12428_v25, %v12427_v39  ;;  %v12430_v54 = vrot.slane %v8705_v60, %v8063_v8  ;;  %v9315_v37 = vmul.f32 0.015625, %v8936_v56 }
 0x10b   :  { %v9317_v39 = vcombine.low %v4744_v13, %v4751_v19  ;;  %v12432_v14 = vrot.slane %v8705_v60, %v8206_v21  ;;  %v12434_v13 = vrot.slane %v8919_v16, %v8142_v51  ;;  %v12437_v25 = vrot.slane %v8919_v16, %v8181_v3 }
 0x10c   :  { %v9256_v47 = vpop.xlane.xlu1 %334  ;;  %v9258_v32 = vpop.xlane.xlu0 %331  ;;  %v4770_v31 = vcombine.low %v12430_v54, %v12429_v62  ;;  %12431 = vst [vmem:[#allocation26_spill] sm:$0xff] %v9315_v37  ;;  %v4931_v26 = vrot.slane %v4923_v41, %v8254_v10  ;;  %v12433_v62 = vrot.slane %v8705_v60, %v8181_v3  ;;  %v9330_v54 = vmul.f32 0.015625, %v8980_v30 }
 0x10d   :  { %v9346_v30 = vmul.f32 0.015625, %v8982_v61  ;;  %v12439_v60 = vrot.slane %v8754_v50, %v8063_v8  ;;  %v9441_v37 = vmul.f32 0.015625, %v9078_v12 }
 0x10e   :  { %v4771_v28 = vcombine.low %v12433_v62, %v12432_v14  ;;  %v4778_v56 = vrot.slane %v4770_v31, %v8254_v10  ;;  %v12440_v14 = vrot.slane %v8754_v50, %v8206_v21 }
 0x10f   :  { %12447 = vst [vmem:[#allocation28_spill] sm:$0xff] %v9441_v37 }
 0x110   :  { %v9303_v44 = vpop.xlane.xlu1 %340  ;;  %6542 = vperm.xlu1 %7632, %v8442_v18   ;;  %v9306_v38 = vpop.xlane.xlu0 %337  ;;  %v4938_v18 = vrot.slane %v4924_v6, %v8254_v10  ;;  %v12435_v6 = vrot.slane %v8919_v16, %v8063_v8  ;;  %v4785_v61 = vrot.slane %v4771_v28, %v8254_v10 }
 0x112   :  { %v4957_v41 = vcombine.low %v12435_v6, %v12434_v13  ;;  %v12438_v6 = vrot.slane %v8754_v50, %v8142_v51 }
 0x114   :  { %v9348_v31 = vpop.xlane.xlu1 %346  ;;  %6545 = vperm.xlu1 %7632, %v8407_v36   ;;  %v9351_v62 = vpop.xlane.xlu0 %343  ;;  %v12436_v36 = vrot.slane %v8919_v16, %v8206_v21  ;;  %v4804_v19 = vcombine.low %v12439_v60, %v12438_v6  ;;  %v9384_v16 = vmul.f32 0.015625, %v9025_v17 }
 0x115   :  { %6539 = vperm.xlu0 %7631, %v8412_v27   ;;  %v12441_v27 = vrot.slane %v8754_v50, %v8181_v3 }
 0x116   :  { %v4958_v13 = vcombine.low %v12437_v25, %v12436_v36  ;;  %v9386_v25 = vcombine.low %v4931_v26, %v4938_v18  ;;  %v4965_v36 = vrot.slane %v4957_v41, %v8254_v10  ;;  %v9407_v41 = vmul.f32 0.015625, %v9027_v4 }
 0x117   :  { %v4805_v28 = vcombine.low %v12441_v27, %v12440_v14  ;;  %v9412_v14 = vcombine.low %v4778_v56, %v4785_v61  ;;  %v4812_v50 = vrot.slane %v4804_v19, %v8254_v10  ;;  %v9420_v18 = vmul.f32 0.015625, %v9076_v23 }
 0x118   :  { %v9397_v27 = vpop.xlane.xlu1 %352  ;;  %6548 = vperm.xlu1 %7632, %v8470_v29   ;;  %12442 = vst [vmem:[#allocation27_spill] sm:$0xff] %v9407_v41  ;;  %v9409_v6 = vpop.xlane.xlu0 %349  ;;  %v4972_v29 = vrot.slane %v4958_v13, %v8254_v10  ;;  %v12443_v4 = vrot.slane %v8955_v22, %v8142_v51  ;;  %v12445_v13 = vrot.slane %v8955_v22, %v8206_v21 }
 0x119   :  { %6566 = vperm.xlu0 %7631, %v8524_v52   ;;  %v4819_v17 = vrot.slane %v4805_v28, %v8254_v10  ;;  %v12444_v52 = vrot.slane %v8955_v22, %v8063_v8  ;;  %v12446_v19 = vrot.slane %v8955_v22, %v8181_v3  ;;  %v12449_v22 = vrot.slane %v8787_v11, %v8063_v8 }
 0x11a   :  { %v9457_v12 = vcombine.low %v4965_v36, %v4972_v29  ;;  %v9476_v36 = vmul.f32 0.015625, %v9120_v43  ;;  %v12453_v43 = vrot.slane %v9011_v40, %v8142_v51  ;;  %v12457_v29 = vrot.slane %v8850_v46, %v8142_v51 }
 0x11b   :  { %v4991_v56 = vcombine.low %v12444_v52, %v12443_v4  ;;  %v4992_v61 = vcombine.low %v12446_v19, %v12445_v13  ;;  %v9459_v26 = vcombine.low %v4812_v50, %v4819_v17  ;;  %v12450_v13 = vrot.slane %v8787_v11, %v8206_v21 }
 0x11c   :  { %v9443_v4 = vpop.xlane.xlu1 %358  ;;  %6551 = vperm.xlu1 %7632, %v8511_v9   ;;  %v9454_v23 = vpop.xlane.xlu0 %355  ;;  %v12448_v9 = vrot.slane %v8787_v11, %v8142_v51  ;;  %v12451_v19 = vrot.slane %v8787_v11, %v8181_v3 }
 0x11d   :  { %6572 = vperm.xlu0 %7631, %v8553_v63   ;;  %v4999_v50 = vrot.slane %v4991_v56, %v8254_v10  ;;  %v5006_v17 = vrot.slane %v4992_v61, %v8254_v10  ;;  %v12454_v56 = vrot.slane %v9011_v40, %v8063_v8  ;;  %v12455_v61 = vrot.slane %v9011_v40, %v8206_v21 }
 0x11e   :  { %v4838_v52 = vcombine.low %v12449_v22, %v12448_v9  ;;  %v4839_v28 = vcombine.low %v12451_v19, %v12450_v13  ;;  %v9498_v9 = vmul.f32 0.015625, %v9122_v49  ;;  %v12456_v49 = vrot.slane %v9011_v40, %v8181_v3 }
 0x11f   :  { %v5025_v11 = vcombine.low %v12454_v56, %v12453_v43  ;;  %v12458_v43 = vrot.slane %v8850_v46, %v8063_v8 }
 0x120   :  { %v9488_v19 = vpop.xlane.xlu1 %364  ;;  %6554 = vperm.xlu1 %7632, %v8555_v48   ;;  %12452 = vst [vmem:[#allocation29_spill] sm:$0xff] %v9498_v9  ;;  %v9500_v22 = vpop.xlane.xlu0 %361  ;;  %v4846_v13 = vrot.slane %v4838_v52, %v8254_v10  ;;  %v4853_v48 = vrot.slane %v4839_v28, %v8254_v10  ;;  %v5026_v63 = vcombine.low %v12456_v49, %v12455_v61  ;;  %v9520_v52 = vmul.f32 0.015625, %v9169_v20 }
 0x121   :  { %6578 = vperm.xlu0 %7631, %v8607_v42   ;;  %v9522_v28 = vcombine.low %v4999_v50, %v5006_v17  ;;  %v4872_v56 = vcombine.low %v12458_v43, %v12457_v29  ;;  %v9537_v20 = vmul.f32 0.015625, %v9171_v5  ;;  %v12460_v17 = vrot.slane %v8850_v46, %v8206_v21 }
 0x122   :  { %v9553_v5 = vcombine.low %v4846_v13, %v4853_v48  ;;  %v5040_v61 = vrot.slane %v5026_v63, %v8254_v10  ;;  %v12461_v29 = vrot.slane %v8850_v46, %v8181_v3  ;;  %v9566_v42 = vmul.f32 0.015625, %v9211_v58  ;;  %v12467_v48 = vld [vmem:[#allocation7_spill] sm:$0xff] }
 0x123   :  { %12459 = vst [vmem:[#allocation30_spill] sm:$0xff] %v9537_v20  ;;  %v12464_v63 = vrot.slane %v9055_v15, %v8063_v8  ;;  %v9593_v46 = vmul.f32 0.015625, %v9213_v33  ;;  %v12469_v43 = vrot.slane %v9055_v15, %v8181_v3  ;;  %v12471_v33 = vrot.slane %v8882_v55, %v8063_v8 }
 0x124   :  { %v9539_v50 = vpop.xlane.xlu1 %370  ;;  %6557 = vperm.xlu1 %7632, %v8637_v2   ;;  %v9550_v40 = vpop.xlane.xlu0 %367  ;;  %v5033_v2 = vrot.slane %v5025_v11, %v8254_v10  ;;  %v4873_v49 = vcombine.low %v12461_v29, %v12460_v17  ;;  %12462 = vst [vmem:[#allocation31_spill] sm:$0xff] %v9566_v42  ;;  %v12463_v11 = vrot.slane %v9055_v15, %v8142_v51  ;;  %v12465_v29 = vld [vmem:[#allocation6_spill] sm:$0xff] }
 0x125   :  { %6584 = vperm.xlu0 %7631, %v8695_v0   ;;  %v4880_v0 = vrot.slane %v4872_v56, %v8254_v10  ;;  %12466 = vst [vmem:[#allocation6_spill] sm:$0xff] %v9593_v46  ;;  %v12472_v20 = vrot.slane %v8882_v55, %v8206_v21 }
 0x126   :  { %v5059_v13 = vcombine.low %v12464_v63, %v12463_v11  ;;  %v4887_v58 = vrot.slane %v4873_v49, %v8254_v10  ;;  %v12470_v11 = vrot.slane %v8882_v55, %v8142_v51  ;;  %v12473_v49 = vrot.slane %v8882_v55, %v8181_v3 }
 0x128   :  { %v9583_v56 = vpop.xlane.xlu1 %376  ;;  %6560 = vperm.xlu1 %7632, %v12465_v29   ;;  %v9595_v17 = vpop.xlane.xlu0 %373  ;;  %v12468_v29 = vrot.slane %v9055_v15, %v8206_v21  ;;  %v4906_v63 = vcombine.low %v12471_v33, %v12470_v11  ;;  %v9620_v15 = vmul.f32 0.015625, %v9256_v47  ;;  %v12476_v47 = vld [vmem:[#allocation8_spill] sm:$0xff]  ;;  %v9648_v9 = vcombine.low %v4880_v0, %v4887_v58 }
 0x129   :  { %6590 = vperm.xlu0 %7631, %v12467_v48   ;;  %v4907_v48 = vcombine.low %v12473_v49, %v12472_v20  ;;  %v9632_v20 = vmul.f32 0.015625, %v9258_v32  ;;  %v12477_v32 = vld [vmem:[#allocation9_spill] sm:$0xff]  ;;  %v12479_v33 = vrot.slane %v9101_v7, %v8142_v51  ;;  %v12482_v58 = vrot.slane %v9101_v7, %v8181_v3 }
 0x12a   :  { %v5060_v60 = vcombine.low %v12469_v43, %v12468_v29  ;;  %12474 = vst [vmem:[#allocation7_spill] sm:$0xff] %v9620_v15  ;;  %v9622_v43 = vcombine.low %v5033_v2, %v5040_v61  ;;  %v5067_v29 = vrot.slane %v5059_v13, %v8254_v10  ;;  %v4914_v11 = vrot.slane %v4906_v63, %v8254_v10 }
 0x12b   :  { %12475 = vst [vmem:[#allocation32_spill] sm:$0xff] %v9632_v20  ;;  %v4921_v61 = vrot.slane %v4907_v48, %v8254_v10  ;;  %v9656_v13 = vmul.f32 0.015625, %v9303_v44  ;;  %v9688_v44 = vmul.f32 0.015625, %v9306_v38  ;;  %v12485_v48 = vld [vmem:[#allocation11_spill] sm:$0xff]  ;;  %v12489_v38 = vrot.slane %v8945_v57, %v8181_v3 }
 0x12c   :  { %v9634_v49 = vpop.xlane.xlu1 %382  ;;  %6563 = vperm.xlu1 %7632, %v12476_v47   ;;  %v9645_v55 = vpop.xlane.xlu0 %379  ;;  %v5074_v47 = vrot.slane %v5060_v60, %v8254_v10  ;;  %v12481_v60 = vrot.slane %v9101_v7, %v8206_v21 }
 0x12d   :  { %6596 = vperm.xlu0 %7631, %v12477_v32   ;;  %12478 = vst [vmem:[#allocation8_spill] sm:$0xff] %v9656_v13  ;;  %v12480_v32 = vrot.slane %v9101_v7, %v8063_v8  ;;  %12484 = vst [vmem:[#allocation9_spill] sm:$0xff] %v9688_v44  ;;  %v9695_v37 = vcombine.low %v4914_v11, %v4921_v61  ;;  %v9712_v11 = vmul.f32 0.015625, %v9348_v31  ;;  %v12492_v31 = vld [vmem:[#allocation12_spill] sm:$0xff]  ;;  %v12499_v13 = vld [vmem:[#allocation13_spill] sm:$0xff] }
 0x12e   :  { %v5094_v63 = vcombine.low %v12482_v58, %v12481_v60  ;;  %v9693_v46 = vcombine.low %v5067_v29, %v5074_v47  ;;  %v12487_v60 = vrot.slane %v8945_v57, %v8063_v8  ;;  %v12488_v58 = vrot.slane %v8945_v57, %v8206_v21 }
 0x12f   :  { %v5093_v0 = vcombine.low %v12480_v32, %v12479_v33  ;;  %v12483_v32 = vld [vmem:[#allocation10_spill] sm:$0xff]  ;;  %v12500_v15 = vrot.slane %v12499_v13, %v8142_v51 }
 0x130   :  { %v9678_v33 = vpop.xlane.xlu1 %388  ;;  %6569 = vperm.xlu1 %7632, %v12483_v32   ;;  %v9690_v2 = vpop.xlane.xlu0 %385  ;;  %v12486_v32 = vrot.slane %v8945_v57, %v8142_v51  ;;  %v4941_v20 = vcombine.low %v12489_v38, %v12488_v58  ;;  %12490 = vst [vmem:[#allocation10_spill] sm:$0xff] %v9712_v11  ;;  %v5108_v47 = vrot.slane %v5094_v63, %v8254_v10  ;;  %v9723_v58 = vmul.f32 0.015625, %v9351_v62  ;;  %v12493_v62 = vld [vmem:[#allocation14_spill] sm:$0xff] }
 0x131   :  { %6602 = vperm.xlu0 %7631, %v12485_v48   ;;  %v5101_v61 = vrot.slane %v5093_v0, %v8254_v10  ;;  %v12494_v0 = vrot.slane %v9155_v1, %v8142_v51  ;;  %v12495_v63 = vrot.slane %v9155_v1, %v8063_v8  ;;  %v12496_v38 = vrot.slane %v9155_v1, %v8206_v21 }
 0x132   :  { %v4940_v7 = vcombine.low %v12487_v60, %v12486_v32  ;;  %12491 = vst [vmem:[#allocation11_spill] sm:$0xff] %v9723_v58  ;;  %v12497_v60 = vrot.slane %v9155_v1, %v8181_v3  ;;  %v9784_v1 = vmul.f32 0.015625, %v9409_v6  ;;  %v9802_v58 = vmul.f32 0.015625, %v9443_v4 }
 0x133   :  { %v5127_v48 = vcombine.low %v12495_v63, %v12494_v0  ;;  %v12501_v0 = vrot.slane %v12499_v13, %v8063_v8  ;;  %v9818_v4 = vmul.f32 0.015625, %v9454_v23  ;;  %v12511_v23 = vld [vmem:[#allocation21_spill] sm:$0xff]  ;;  %v12513_v6 = vrot.slane %v9189_v59, %v8181_v3 }
 0x134   :  { %v9725_v32 = vpop.xlane.xlu1 %394  ;;  %6575 = vperm.xlu1 %7632, %v12492_v31   ;;  %v9736_v57 = vpop.xlane.xlu0 %391  ;;  %v4948_v29 = vrot.slane %v4940_v7, %v8254_v10  ;;  %v4955_v31 = vrot.slane %v4941_v20, %v8254_v10  ;;  %v5128_v44 = vcombine.low %v12497_v60, %v12496_v38  ;;  %v9756_v7 = vmul.f32 0.015625, %v9397_v27  ;;  %12503 = vst [vmem:[#allocation14_spill] sm:$0xff] %v9784_v1 }
 0x135   :  { %6608 = vperm.xlu0 %7631, %v12493_v62   ;;  %v9758_v20 = vcombine.low %v5101_v61, %v5108_v47  ;;  %v4974_v63 = vcombine.low %v12501_v0, %v12500_v15  ;;  %v12502_v47 = vld [vmem:[#allocation15_spill] sm:$0xff]  ;;  %v12504_v62 = vld [vmem:[#allocation17_spill] sm:$0xff]  ;;  %v12505_v38 = vrot.slane %v12499_v13, %v8206_v21  ;;  %v12506_v15 = vrot.slane %v12499_v13, %v8181_v3 }
 0x136   :  { %12498 = vst [vmem:[#allocation12_spill] sm:$0xff] %v9756_v7  ;;  %v9789_v27 = vcombine.low %v4948_v29, %v4955_v31  ;;  %v5142_v41 = vrot.slane %v5128_v44, %v8254_v10  ;;  %v12508_v44 = vrot.slane %v9189_v59, %v8063_v8  ;;  %12509 = vst [vmem:[#allocation13_spill] sm:$0xff] %v9818_v4 }
 0x137   :  { %v4975_v0 = vcombine.low %v12506_v15, %v12505_v38  ;;  %v4982_v29 = vrot.slane %v4974_v63, %v8254_v10  ;;  %v12510_v15 = vld [vmem:[#allocation19_spill] sm:$0xff] }
 0x138   :  { %v9774_v61 = vpop.xlane.xlu1 %400  ;;  %6581 = vperm.xlu1 %7632, %v12502_v47   ;;  %v9786_v60 = vpop.xlane.xlu0 %397  ;;  %v5135_v47 = vrot.slane %v5127_v48, %v8254_v10  ;;  %v12507_v48 = vrot.slane %v9189_v59, %v8142_v51 }
 0x139   :  { %6614 = vperm.xlu0 %7631, %v12504_v62   ;;  %v4989_v62 = vrot.slane %v4975_v0, %v8254_v10 }
 0x13a   :  { %v5161_v31 = vcombine.low %v12508_v44, %v12507_v48  ;;  %v12514_v48 = vld [vmem:[#allocation16_spill] sm:$0xff] }
 0x13b   :  { %v12515_v11 = vrot.slane %v12514_v48, %v8142_v51  ;;  %v12516_v44 = vrot.slane %v12514_v48, %v8063_v8  ;;  %v12517_v1 = vrot.slane %v12514_v48, %v8206_v21  ;;  %v12518_v0 = vrot.slane %v12514_v48, %v8181_v3  ;;  %v12520_v48 = vld [vmem:[#allocation24_spill] sm:$0xff] }
 0x13c   :  { %v9820_v63 = vpop.xlane.xlu1 %406  ;;  %6587 = vperm.xlu1 %7632, %v12510_v15   ;;  %v9831_v38 = vpop.xlane.xlu0 %403  ;;  %v12512_v15 = vrot.slane %v9189_v59, %v8206_v21  ;;  %v9856_v59 = vmul.f32 0.015625, %v9488_v19 }
 0x13d   :  { %6620 = vperm.xlu0 %7631, %v12511_v23   ;;  %v5008_v13 = vcombine.low %v12516_v44, %v12515_v11  ;;  %v5009_v23 = vcombine.low %v12518_v0, %v12517_v1  ;;  %v9884_v1 = vcombine.low %v4982_v29, %v4989_v62  ;;  %v12525_v62 = vrot.slane %v9243_v35, %v8181_v3 }
 0x13e   :  { %v5162_v7 = vcombine.low %v12513_v6, %v12512_v15  ;;  %v9858_v6 = vcombine.low %v5135_v47, %v5142_v41  ;;  %v5169_v15 = vrot.slane %v5161_v31, %v8254_v10  ;;  %v9879_v31 = vmul.f32 0.015625, %v9500_v22 }
 0x13f   :  { %v5016_v42 = vrot.slane %v5008_v13, %v8254_v10  ;;  %v5023_v41 = vrot.slane %v5009_v23, %v8254_v10  ;;  %v9892_v47 = vmul.f32 0.015625, %v9539_v50  ;;  %v12522_v22 = vrot.slane %v9243_v35, %v8142_v51 }
 0x140   :  { %v9869_v0 = vpop.xlane.xlu1 %412  ;;  %6593 = vperm.xlu1 %7632, %v9181_v24   ;;  %12519 = vst [vmem:[#allocation15_spill] sm:$0xff] %v9879_v31  ;;  %v9881_v44 = vpop.xlane.xlu0 %409  ;;  %v5176_v24 = vrot.slane %v5162_v7, %v8254_v10  ;;  %v12524_v7 = vrot.slane %v9243_v35, %v8206_v21  ;;  %v9913_v11 = vmul.f32 0.015625, %v9550_v40 }
 0x141   :  { %6626 = vperm.xlu0 %7631, %v12520_v48   ;;  %12521 = vst [vmem:[#allocation17_spill] sm:$0xff] %v9892_v47  ;;  %v12523_v48 = vrot.slane %v9243_v35, %v8063_v8  ;;  %v9931_v23 = vcombine.low %v5016_v42, %v5023_v41  ;;  %v9948_v42 = vmul.f32 0.015625, %v9583_v56  ;;  %v12533_v56 = vrot.slane %v9285_v45, %v8142_v51 }
 0x142   :  { %v5196_v13 = vcombine.low %v12525_v62, %v12524_v7  ;;  %12526 = vst [vmem:[#allocation19_spill] sm:$0xff] %v9913_v11  ;;  %v9929_v40 = vcombine.low %v5169_v15, %v5176_v24  ;;  %v12537_v24 = vld [vmem:[#allocation20_spill] sm:$0xff] }
 0x143   :  { %v5195_v29 = vcombine.low %v12523_v48, %v12522_v22  ;;  %v12527_v48 = vld [vmem:[#allocation25_spill] sm:$0xff]  ;;  %v12538_v11 = vrot.slane %v12537_v24, %v8142_v51 }
 0x144   :  { %v9915_v22 = vpop.xlane.xlu1 %418  ;;  %6599 = vperm.xlu1 %7632, %v12527_v48   ;;  %v9926_v19 = vpop.xlane.xlu0 %415  ;;  %v12528_v48 = vld [vmem:[#allocation18_spill] sm:$0xff]  ;;  %v5210_v41 = vrot.slane %v5196_v13, %v8254_v10  ;;  %v12535_v13 = vrot.slane %v9285_v45, %v8206_v21 }
 0x145   :  { %6632 = vperm.xlu0 %7631, %v9287_v53   ;;  %v12529_v35 = vrot.slane %v12528_v48, %v8142_v51  ;;  %v12530_v7 = vrot.slane %v12528_v48, %v8063_v8  ;;  %v12531_v62 = vrot.slane %v12528_v48, %v8206_v21  ;;  %v12532_v50 = vrot.slane %v12528_v48, %v8181_v3 }
 0x146   :  { %v5203_v15 = vrot.slane %v5195_v29, %v8254_v10  ;;  %v9970_v48 = vmul.f32 0.015625, %v9595_v17  ;;  %v12534_v29 = vrot.slane %v9285_v45, %v8063_v8  ;;  %v12536_v17 = vrot.slane %v9285_v45, %v8181_v3 }
 0x147   :  { %v5042_v4 = vcombine.low %v12530_v7, %v12529_v35  ;;  %v5043_v31 = vcombine.low %v12532_v50, %v12531_v62 }
 0x148   :  { %v9960_v62 = vpop.xlane.xlu1 %424  ;;  %6605 = vperm.xlu1 %7632, %v9317_v39   ;;  %v9972_v35 = vpop.xlane.xlu0 %421  ;;  %v5229_v7 = vcombine.low %v12534_v29, %v12533_v56  ;;  %v5230_v53 = vcombine.low %v12536_v17, %v12535_v13  ;;  %v12539_v56 = vrot.slane %v12537_v24, %v8063_v8 }
 0x149   :  { %6638 = vperm.xlu0 %7631, %v9386_v25   ;;  %v5050_v50 = vrot.slane %v5042_v4, %v8254_v10  ;;  %v5057_v39 = vrot.slane %v5043_v31, %v8254_v10  ;;  %v9992_v4 = vmul.f32 0.015625, %v9634_v49  ;;  %v9994_v31 = vcombine.low %v5203_v15, %v5210_v41 }
 0x14a   :  { %v5076_v29 = vcombine.low %v12539_v56, %v12538_v11  ;;  %v10009_v49 = vmul.f32 0.015625, %v9645_v55  ;;  %v5244_v13 = vrot.slane %v5230_v53, %v8254_v10  ;;  %v12541_v41 = vrot.slane %v12537_v24, %v8206_v21 }
 0x14b   :  { %v10025_v55 = vcombine.low %v5050_v50, %v5057_v39  ;;  %v12542_v11 = vrot.slane %v12537_v24, %v8181_v3  ;;  %v10038_v25 = vmul.f32 0.015625, %v9678_v33  ;;  %v12544_v53 = vrot.slane %v9330_v54, %v8063_v8 }
 0x14c   :  { %12540 = vst [vmem:[#allocation21_spill] sm:$0xff] %v10009_v49  ;;  %v10011_v15 = vpop.xlane.xlu1 %430  ;;  %6611 = vperm.xlu1 %7632, %v9412_v14   ;;  %v10022_v45 = vpop.xlane.xlu0 %427  ;;  %v5237_v14 = vrot.slane %v5229_v7, %v8254_v10  ;;  %v12543_v7 = vrot.slane %v9330_v54, %v8142_v51  ;;  %v10065_v24 = vmul.f32 0.015625, %v9690_v2 }
 0x14d   :  { %6644 = vperm.xlu0 %7631, %v9457_v12   ;;  %v5077_v17 = vcombine.low %v12542_v11, %v12541_v41  ;;  %v5084_v12 = vrot.slane %v5076_v29, %v8254_v10  ;;  %v12546_v11 = vrot.slane %v9330_v54, %v8181_v3 }
 0x14e   :  { %v5263_v50 = vcombine.low %v12544_v53, %v12543_v7  ;;  %v12547_v7 = vld [vmem:[#allocation22_spill] sm:$0xff] }
 0x14f   :  { %v5091_v33 = vrot.slane %v5077_v17, %v8254_v10  ;;  %v12548_v39 = vrot.slane %v12547_v7, %v8142_v51  ;;  %v12549_v2 = vrot.slane %v12547_v7, %v8063_v8  ;;  %v12550_v47 = vrot.slane %v12547_v7, %v8206_v21 }
 0x150   :  { %v10055_v29 = vpop.xlane.xlu1 %436  ;;  %6617 = vperm.xlu1 %7632, %v9459_v26   ;;  %v10067_v41 = vpop.xlane.xlu0 %433  ;;  %v12545_v26 = vrot.slane %v9330_v54, %v8206_v21  ;;  %v10092_v54 = vmul.f32 0.015625, %v9725_v32 }
 0x151   :  { %6650 = vperm.xlu0 %7631, %v9522_v28   ;;  %v5110_v53 = vcombine.low %v12549_v2, %v12548_v39  ;;  %v12551_v28 = vrot.slane %v12547_v7, %v8181_v3 }
 0x152   :  { %v5264_v56 = vcombine.low %v12546_v11, %v12545_v26  ;;  %v10094_v11 = vcombine.low %v5237_v14, %v5244_v13  ;;  %v5271_v26 = vrot.slane %v5263_v50, %v8254_v10  ;;  %v10128_v14 = vmul.f32 0.015625, %v9774_v61 }
 0x153   :  { %v5111_v17 = vcombine.low %v12551_v28, %v12550_v47  ;;  %v10104_v47 = vmul.f32 0.015625, %v9736_v57  ;;  %v10120_v57 = vcombine.low %v5084_v12, %v5091_v33  ;;  %v5118_v7 = vrot.slane %v5110_v53, %v8254_v10 }
 0x154   :  { %v10106_v28 = vpop.xlane.xlu1 %442  ;;  %6623 = vperm.xlu1 %7632, %v9553_v5   ;;  %v10117_v2 = vpop.xlane.xlu0 %439  ;;  %v5278_v5 = vrot.slane %v5264_v56, %v8254_v10  ;;  %v12552_v50 = vrot.slane %v9384_v16, %v8142_v51  ;;  %v12554_v56 = vrot.slane %v9384_v16, %v8206_v21  ;;  %v12555_v33 = vrot.slane %v9384_v16, %v8181_v3 }
 0x155   :  { %6656 = vperm.xlu0 %7631, %v9622_v43   ;;  %v5125_v32 = vrot.slane %v5111_v17, %v8254_v10  ;;  %v12553_v43 = vrot.slane %v9384_v16, %v8063_v8 }
 0x156   :  { %v5298_v53 = vcombine.low %v12555_v33, %v12554_v56  ;;  %v10160_v33 = vmul.f32 0.015625, %v9786_v60  ;;  %v10165_v49 = vcombine.low %v5271_v26, %v5278_v5  ;;  %v10184_v26 = vmul.f32 0.015625, %v9820_v63 }
 0x157   :  { %v5297_v12 = vcombine.low %v12553_v43, %v12552_v50  ;;  %v10167_v13 = vcombine.low %v5118_v7, %v5125_v32  ;;  %v12562_v63 = vrot.slane %v9420_v18, %v8142_v51  ;;  %v12566_v5 = vrot.slane %v9254_v34, %v8142_v51 }
 0x158   :  { %v10150_v50 = vpop.xlane.xlu1 %448  ;;  %6629 = vperm.xlu1 %7632, %v9648_v9   ;;  %12556 = vst [vmem:[#allocation16_spill] sm:$0xff] %v10160_v33  ;;  %v10162_v61 = vpop.xlane.xlu0 %445  ;;  %v12557_v9 = vld [vmem:[#allocation23_spill] sm:$0xff]  ;;  %v5312_v32 = vrot.slane %v5298_v53, %v8254_v10  ;;  %v12564_v53 = vrot.slane %v9420_v18, %v8206_v21 }
 0x159   :  { %6662 = vperm.xlu0 %7631, %v9693_v46   ;;  %v12558_v16 = vrot.slane %v12557_v9, %v8142_v51  ;;  %v12559_v43 = vrot.slane %v12557_v9, %v8063_v8  ;;  %v12560_v56 = vrot.slane %v12557_v9, %v8206_v21  ;;  %v12561_v60 = vrot.slane %v12557_v9, %v8181_v3 }
 0x15a   :  { %v5305_v7 = vrot.slane %v5297_v12, %v8254_v10  ;;  %v12563_v12 = vrot.slane %v9420_v18, %v8063_v8 }
 0x15b   :  { %v5144_v17 = vcombine.low %v12559_v43, %v12558_v16  ;;  %v5145_v39 = vcombine.low %v12561_v60, %v12560_v56  ;;  %v10195_v56 = vmul.f32 0.015625, %v9831_v38  ;;  %v12565_v60 = vrot.slane %v9420_v18, %v8181_v3 }
 0x15c   :  { %v10197_v9 = vpop.xlane.xlu1 %454  ;;  %6635 = vperm.xlu1 %7632, %v9695_v37   ;;  %v10208_v16 = vpop.xlane.xlu0 %451  ;;  %v5331_v43 = vcombine.low %v12563_v12, %v12562_v63  ;;  %v12567_v63 = vrot.slane %v9254_v34, %v8063_v8 }
 0x15d   :  { %6668 = vperm.xlu0 %7631, %v9758_v20   ;;  %v5152_v38 = vrot.slane %v5144_v17, %v8254_v10  ;;  %v5159_v37 = vrot.slane %v5145_v39, %v8254_v10  ;;  %v5332_v46 = vcombine.low %v12565_v60, %v12564_v53  ;;  %v10228_v17 = vmul.f32 0.015625, %v9869_v0 }
 0x15e   :  { %v10230_v39 = vcombine.low %v5305_v7, %v5312_v32  ;;  %v5178_v12 = vcombine.low %v12567_v63, %v12566_v5  ;;  %v10256_v63 = vmul.f32 0.015625, %v9881_v44  ;;  %v12569_v32 = vrot.slane %v9254_v34, %v8206_v21 }
 0x15f   :  { %v10261_v0 = vcombine.low %v5152_v38, %v5159_v37  ;;  %v5346_v53 = vrot.slane %v5332_v46, %v8254_v10  ;;  %v12570_v5 = vrot.slane %v9254_v34, %v8181_v3  ;;  %v10274_v20 = vmul.f32 0.015625, %v9915_v22 }
 0x160   :  { %v10246_v7 = vpop.xlane.xlu1 %460  ;;  %6641 = vperm.xlu1 %7632, %v9789_v27   ;;  %12568 = vst [vmem:[#allocation24_spill] sm:$0xff] %v10256_v63  ;;  %v10258_v18 = vpop.xlane.xlu0 %457  ;;  %v5339_v27 = vrot.slane %v5331_v43, %v8254_v10  ;;  %v12571_v43 = vrot.slane %v9476_v36, %v8142_v51  ;;  %v12572_v46 = vrot.slane %v9476_v36, %v8063_v8  ;;  %v10290_v22 = vmul.f32 0.015625, %v9926_v19 }
 0x161   :  { %6674 = vperm.xlu0 %7631, %v9858_v6   ;;  %v5179_v60 = vcombine.low %v12570_v5, %v12569_v32  ;;  %v5186_v6 = vrot.slane %v5178_v12, %v8254_v10  ;;  %v12575_v5 = vrot.slane %v9476_v36, %v8181_v3  ;;  %v10385_v63 = vmul.f32 0.015625, %v10022_v45 }
 0x162   :  { %v5365_v38 = vcombine.low %v12572_v46, %v12571_v43  ;;  %12573 = vst [vmem:[#allocation25_spill] sm:$0xff] %v10290_v22  ;;  %v12576_v43 = vld [vmem:[#allocation26_spill] sm:$0xff] }
 0x163   :  { %v5193_v19 = vrot.slane %v5179_v60, %v8254_v10  ;;  %v12577_v37 = vrot.slane %v12576_v43, %v8142_v51  ;;  %v12578_v46 = vrot.slane %v12576_v43, %v8063_v8  ;;  %v12579_v33 = vrot.slane %v12576_v43, %v8206_v21  ;;  %12588 = vst [vmem:[#allocation23_spill] sm:$0xff] %v10385_v63 }
 0x164   :  { %v10292_v12 = vpop.xlane.xlu1 %466  ;;  %6647 = vperm.xlu1 %7632, %v9884_v1   ;;  %v10303_v32 = vpop.xlane.xlu0 %463  ;;  %v12574_v1 = vrot.slane %v9476_v36, %v8206_v21  ;;  %v10328_v36 = vmul.f32 0.015625, %v9960_v62 }
 0x165   :  { %6680 = vperm.xlu0 %7631, %v9929_v40   ;;  %v5212_v34 = vcombine.low %v12578_v46, %v12577_v37  ;;  %v12580_v40 = vrot.slane %v12576_v43, %v8181_v3  ;;  %v12599_v37 = vld [vmem:[#allocation27_spill] sm:$0xff] }
 0x166   :  { %v5366_v44 = vcombine.low %v12575_v5, %v12574_v1  ;;  %v10330_v5 = vcombine.low %v5339_v27, %v5346_v53  ;;  %v5373_v1 = vrot.slane %v5365_v38, %v8254_v10  ;;  %v10351_v38 = vmul.f32 0.015625, %v9972_v35 }
 0x167   :  { %v5213_v60 = vcombine.low %v12580_v40, %v12579_v33  ;;  %v10356_v33 = vcombine.low %v5186_v6, %v5193_v19  ;;  %v5220_v43 = vrot.slane %v5212_v34, %v8254_v10  ;;  %v10364_v27 = vmul.f32 0.015625, %v10011_v15 }
 0x168   :  { %v10341_v40 = vpop.xlane.xlu1 %472  ;;  %6653 = vperm.xlu1 %7632, %v9931_v23   ;;  %12582 = vst [vmem:[#allocation20_spill] sm:$0xff] %v10351_v38  ;;  %v10353_v46 = vpop.xlane.xlu0 %469  ;;  %v5380_v23 = vrot.slane %v5366_v44, %v8254_v10  ;;  %v12584_v35 = vrot.slane %v9520_v52, %v8142_v51  ;;  %v12586_v44 = vrot.slane %v9520_v52, %v8206_v21 }
 0x169   :  { %12581 = vst [vmem:[#allocation18_spill] sm:$0xff] %v10341_v40  ;;  %12583 = vst [vmem:[#allocation22_spill] sm:$0xff] %v10353_v46  ;;  %6686 = vperm.xlu0 %7631, %v9994_v31   ;;  %v5227_v62 = vrot.slane %v5213_v60, %v8254_v10  ;;  %v12585_v31 = vrot.slane %v9520_v52, %v8063_v8  ;;  %v12587_v34 = vrot.slane %v9520_v52, %v8181_v3  ;;  %v12612_v46 = vlaneseq }
 0x16a   :  { %v10401_v45 = vcombine.low %v5373_v1, %v5380_v23  ;;  %v12590_v52 = vrot.slane %v9346_v30, %v8063_v8  ;;  %v10420_v1 = vmul.f32 0.015625, %v10055_v29  ;;  %v12600_v40 = vrot.slane %v12599_v37, %v8142_v51 }
 0x16b   :  { %v5399_v6 = vcombine.low %v12585_v31, %v12584_v35  ;;  %v5400_v19 = vcombine.low %v12587_v34, %v12586_v44  ;;  %v10403_v53 = vcombine.low %v5220_v43, %v5227_v62  ;;  %v12591_v44 = vrot.slane %v9346_v30, %v8206_v21 }
 0x16c   :  { %v10387_v35 = vpop.xlane.xlu1 %478  ;;  %6659 = vperm.xlu1 %7632, %v10025_v55   ;;  %v10398_v15 = vpop.xlane.xlu0 %475  ;;  %v12589_v55 = vrot.slane %v9346_v30, %v8142_v51  ;;  %v12592_v34 = vrot.slane %v9346_v30, %v8181_v3  ;;  %v12594_v30 = vld [vmem:[#allocation31_spill] sm:$0xff] }
 0x16d   :  { %6692 = vperm.xlu0 %7631, %v10094_v11   ;;  %v5407_v43 = vrot.slane %v5399_v6, %v8254_v10  ;;  %v5414_v62 = vrot.slane %v5400_v19, %v8254_v10  ;;  %v12595_v29 = vrot.slane %v12594_v30, %v8142_v51  ;;  %v12596_v6 = vrot.slane %v12594_v30, %v8063_v8 }
 0x16e   :  { %v5246_v31 = vcombine.low %v12590_v52, %v12589_v55  ;;  %v5247_v60 = vcombine.low %v12592_v34, %v12591_v44  ;;  %v10442_v55 = vmul.f32 0.015625, %v10067_v41  ;;  %v12597_v19 = vrot.slane %v12594_v30, %v8206_v21 }
 0x16f   :  { %v5433_v11 = vcombine.low %v12596_v6, %v12595_v29  ;;  %v12598_v41 = vrot.slane %v12594_v30, %v8181_v3  ;;  %v12601_v29 = vrot.slane %v12599_v37, %v8063_v8 }
 0x170   :  { %v10432_v34 = vpop.xlane.xlu1 %484  ;;  %6665 = vperm.xlu1 %7632, %v10120_v57   ;;  %12593 = vst [vmem:[#allocation26_spill] sm:$0xff] %v10442_v55  ;;  %v10444_v52 = vpop.xlane.xlu0 %481  ;;  %v5254_v44 = vrot.slane %v5246_v31, %v8254_v10  ;;  %v5261_v57 = vrot.slane %v5247_v60, %v8254_v10  ;;  %v10464_v31 = vmul.f32 0.015625, %v10106_v28  ;;  %v10466_v60 = vcombine.low %v5407_v43, %v5414_v62 }
 0x171   :  { %6698 = vperm.xlu0 %7631, %v10165_v49   ;;  %v5434_v23 = vcombine.low %v12598_v41, %v12597_v19  ;;  %v5280_v6 = vcombine.low %v12601_v29, %v12600_v40  ;;  %v10481_v28 = vmul.f32 0.015625, %v10117_v2  ;;  %v12603_v62 = vrot.slane %v12599_v37, %v8206_v21 }
 0x172   :  { %v10497_v2 = vcombine.low %v5254_v44, %v5261_v57  ;;  %v12604_v40 = vrot.slane %v12599_v37, %v8181_v3  ;;  %v10510_v49 = vmul.f32 0.015625, %v10150_v50  ;;  %v12606_v44 = vld [vmem:[#allocation7_spill] sm:$0xff]  ;;  %v10537_v37 = vmul.f32 0.015625, %v10162_v61 }
 0x173   :  { %12602 = vst [vmem:[#allocation31_spill] sm:$0xff] %v10481_v28  ;;  %v5448_v19 = vrot.slane %v5434_v23, %v8254_v10  ;;  %v12608_v23 = vrot.slane %v12606_v44, %v8063_v8  ;;  %v10550_v55 = vand.u32 127, %v12612_v46 }
 0x174   :  { %v10483_v43 = vpop.xlane.xlu1 %490  ;;  %6671 = vperm.xlu1 %7632, %v10167_v13   ;;  %v10494_v30 = vpop.xlane.xlu0 %487  ;;  %v5441_v13 = vrot.slane %v5433_v11, %v8254_v10  ;;  %v5281_v41 = vcombine.low %v12604_v40, %v12603_v62  ;;  %12605 = vst [vmem:[#allocation27_spill] sm:$0xff] %v10510_v49  ;;  %v12607_v11 = vrot.slane %v12606_v44, %v8142_v51  ;;  %12609 = vst [vmem:[#allocation7_spill] sm:$0xff] %v10537_v37 }
 0x175   :  { %6704 = vperm.xlu0 %7631, %v10230_v39   ;;  %v5288_v39 = vrot.slane %v5280_v6, %v8254_v10  ;;  %v12611_v40 = vrot.slane %v12606_v44, %v8181_v3 }
 0x176   :  { %v5467_v57 = vcombine.low %v12608_v23, %v12607_v11  ;;  %v5449_v50 = vcombine.low %v5441_v13, %v5448_v19  ;;  %v5295_v29 = vrot.slane %v5281_v41, %v8254_v10  ;;  %v10555_v23 = vmul.f32 0.015625, %v10197_v9  ;;  %v12614_v19 = vld [vmem:[#allocation28_spill] sm:$0xff] }
 0x177   :  { %v12615_v41 = vrot.slane %v12614_v19, %v8142_v51  ;;  %v12616_v13 = vrot.slane %v12614_v19, %v8063_v8  ;;  %v10571_v9 = vmul.f32 0.015625, %v10208_v16 }
 0x178   :  { %v10527_v6 = vpop.xlane.xlu1 %496  ;;  %6677 = vperm.xlu1 %7632, %v10261_v0   ;;  %v10539_v62 = vpop.xlane.xlu0 %493  ;;  %v12610_v0 = vrot.slane %v12606_v44, %v8206_v21  ;;  %12613 = vst [vmem:[#allocation33_spill] sm:$0xff] %v10555_v23  ;;  %v5296_v16 = vcombine.low %v5288_v39, %v5295_v29  ;;  %v12620_v29 = vld [vmem:[#allocation8_spill] sm:$0xff] }
 0x179   :  { %6710 = vperm.xlu0 %7631, %v10330_v5   ;;  %v5475_v5 = vrot.slane %v5467_v57, %v8254_v10  ;;  %v5314_v28 = vcombine.low %v12616_v13, %v12615_v41  ;;  %12617 = vst [vmem:[#allocation28_spill] sm:$0xff] %v10571_v9  ;;  %v12619_v41 = vrot.slane %v12614_v19, %v8181_v3 }
 0x17a   :  { %v5468_v11 = vcombine.low %v12611_v40, %v12610_v0  ;;  %v12618_v0 = vrot.slane %v12614_v19, %v8206_v21  ;;  %v12621_v39 = vrot.slane %v12620_v29, %v8142_v51  ;;  %v12625_v63 = vrot.slane %v12620_v29, %v8181_v3  ;;  %v12626_v19 = vld [vmem:[#allocation29_spill] sm:$0xff] }
 0x17b   :  { %v12627_v46 = vrot.slane %v12626_v19, %v8142_v51  ;;  %v12630_v13 = vrot.slane %v12626_v19, %v8181_v3 }
 0x17c   :  { %v10573_v57 = vpop.xlane.xlu1 %502  ;;  %6683 = vperm.xlu1 %7632, %v10356_v33   ;;  %v10584_v40 = vpop.xlane.xlu0 %499  ;;  %v5482_v61 = vrot.slane %v5468_v11, %v8254_v10  ;;  %v6928_v33 = vadd.s32 4294967288, %v10550_v55  ;;  %v5315_v44 = vcombine.low %v12619_v41, %v12618_v0  ;;  %v12622_v11 = vrot.slane %v12620_v29, %v8063_v8 }
 0x17d   :  { %6716 = vperm.xlu0 %7631, %v10401_v45   ;;  %v5322_v45 = vrot.slane %v5314_v28, %v8254_v10  ;;  %v10611_v0 = vmul.f32 0.015625, %v10246_v7  ;;  %v12628_v41 = vrot.slane %v12626_v19, %v8063_v8 }
 0x17e   :  { %v5501_v37 = vcombine.low %v12622_v11, %v12621_v39  ;;  %v12624_v11 = vrot.slane %v12620_v29, %v8206_v21  ;;  %v10645_v29 = vmul.f32 0.015625, %v10258_v18  ;;  %v5329_v22 = vrot.slane %v5315_v44, %v8254_v10 }
 0x17f   :  { %12623 = vst [vmem:[#allocation8_spill] sm:$0xff] %v10611_v0  ;;  %v5348_v23 = vcombine.low %v12628_v41, %v12627_v46  ;;  %v12632_v46 = vld [vmem:[#allocation5_spill] sm:$0xff] }
 0x180   :  { %v10615_v28 = vpop.xlane.xlu1 %508  ;;  %6689 = vperm.xlu1 %7632, %v10403_v53   ;;  %v10620_v39 = vpop.xlane.xlu0 %505  ;;  %v5502_v7 = vcombine.low %v12625_v63, %v12624_v11  ;;  %v12629_v53 = vrot.slane %v12626_v19, %v8206_v21  ;;  %12631 = vst [vmem:[#allocation29_spill] sm:$0xff] %v10645_v29  ;;  %v5483_v11 = vcombine.low %v5475_v5, %v5482_v61  ;;  %v10694_v63 = vmul.f32 0.015625, %v10387_v35 }
 0x181   :  { %6722 = vperm.xlu0 %7631, %v10466_v60   ;;  %v10649_v41 = vsub.s32 %v6928_v33, %v12632_v46  ;;  %v5509_v19 = vrot.slane %v5501_v37, %v8254_v10  ;;  %v10661_v60 = vmul.f32 0.015625, %v10292_v12  ;;  %v5356_v44 = vrot.slane %v5348_v23, %v8254_v10 }
 0x182   :  { %v5349_v38 = vcombine.low %v12630_v13, %v12629_v53  ;;  %v6935_v13 = vadd.s32 4294967280, %v10550_v55  ;;  %v5516_v37 = vrot.slane %v5502_v7, %v8254_v10  ;;  %v12634_v53 = vld [vmem:[#allocation10_spill] sm:$0xff]  ;;  %v10697_v7 = vmul.f32 0.015625, %v10303_v32 }
 0x183   :  { %12633 = vst [vmem:[#allocation5_spill] sm:$0xff] %v10661_v60  ;;  %v12635_v49 = vrot.slane %v12634_v53, %v8142_v51  ;;  %v12636_v18 = vrot.slane %v12634_v53, %v8063_v8  ;;  %v12638_v23 = vrot.slane %v12634_v53, %v8181_v3 }
 0x184   :  { %v10663_v61 = vpop.xlane.xlu1 %514  ;;  %6695 = vperm.xlu1 %7632, %v10497_v2   ;;  %v10666_v5 = vpop.xlane.xlu0 %511  ;;  %v5363_v33 = vrot.slane %v5349_v38, %v8254_v10  ;;  %v12637_v38 = vrot.slane %v12634_v53, %v8206_v21  ;;  %v5330_v2 = vcombine.low %v5322_v45, %v5329_v22  ;;  %12639 = vst [vmem:[#allocation10_spill] sm:$0xff] %v10697_v7 }
 0x185   :  { %v5535_v12 = vcombine.low %v12636_v18, %v12635_v49  ;;  %6728 = vperm.xlu0 %7631, %v5449_v50   ;;  %v10700_v50 = vmul.f32 0.015625, %v10398_v15  ;;  %v10705_v53 = vsub.s32 %v6935_v13, %v12632_v46  ;;  %v5517_v22 = vcombine.low %v5509_v19, %v5516_v37 }
 0x186   :  { %v5536_v9 = vcombine.low %v12638_v23, %v12637_v38  ;;  %v10709_v38 = vsub.s32 %v10550_v55, %v12632_v46  ;;  %v5364_v45 = vcombine.low %v5356_v44, %v5363_v33  ;;  %v6942_v23 = vadd.s32 4294967272, %v10550_v55 }
 0x187   :  { %v5543_v32 = vrot.slane %v5535_v12, %v8254_v10  ;;  %v10735_v33 = vmul.f32 0.015625, %v10432_v34 }
 0x188   :  { %v10702_v0 = vpop.xlane.xlu1 %520  ;;  %6701 = vperm.xlu1 %7632, %v5296_v16   ;;  %v5550_v15 = vrot.slane %v5536_v9, %v8254_v10  ;;  %v12640_v16 = vld [vmem:[#allocation30_spill] sm:$0xff]  ;;  %v10737_v12 = vpop.xlane.xlu0 %517 }
 0x189   :  { %6734 = vperm.xlu0 %7631, %v5483_v11   ;;  %v12641_v13 = vrot.slane %v12640_v16, %v8142_v51  ;;  %v12642_v49 = vrot.slane %v12640_v16, %v8063_v8  ;;  %v12643_v7 = vrot.slane %v12640_v16, %v8206_v21  ;;  %v12644_v19 = vrot.slane %v12640_v16, %v8181_v3  ;;  %v12652_v9 = vld [vmem:[#allocation6_spill] sm:$0xff] }
 0x18a   :  { %12645 = vst [vmem:[#allocation30_spill] sm:$0xff] %v10737_v12  ;;  %v12654_v60 = vrot.slane %v12652_v9, %v8063_v8 }
 0x18b   :  { %v5382_v18 = vcombine.low %v12642_v49, %v12641_v13  ;;  %v5383_v37 = vcombine.low %v12644_v19, %v12643_v7  ;;  %v12647_v13 = vld [vmem:[#allocation12_spill] sm:$0xff]  ;;  %v5551_v7 = vcombine.low %v5543_v32, %v5550_v15  ;;  %v12659_v32 = vrot.slane %v9802_v58, %v8142_v51 }
 0x18c   :  { %v10743_v16 = vpop.permute.xlu1 %6542  ;;  %6707 = vperm.xlu1 %7632, %v5330_v2   ;;  %v12648_v19 = vrot.slane %v12647_v13, %v8142_v51  ;;  %v12649_v35 = vrot.slane %v12647_v13, %v8063_v8  ;;  %v12650_v34 = vrot.slane %v12647_v13, %v8206_v21  ;;  %v12651_v11 = vrot.slane %v12647_v13, %v8181_v3 }
 0x18d   :  { %12646 = vst [vmem:[#allocation34_spill] sm:$0xff] %v10743_v16  ;;  %v12653_v16 = vrot.slane %v12652_v9, %v8142_v51  ;;  %v12656_v13 = vrot.slane %v12652_v9, %v8181_v3  ;;  %6740 = vperm.xlu0 %7631, %v5517_v22   ;;  %v5390_v2 = vrot.slane %v5382_v18, %v8254_v10 }
 0x18e   :  { %v5569_v44 = vcombine.low %v12649_v35, %v12648_v19  ;;  %v5570_v49 = vcombine.low %v12651_v11, %v12650_v34  ;;  %v12655_v19 = vrot.slane %v12652_v9, %v8206_v21  ;;  %v5397_v29 = vrot.slane %v5383_v37, %v8254_v10 }
 0x18f   :  { %v5416_v35 = vcombine.low %v12654_v60, %v12653_v16  ;;  %v10780_v60 = vmul.f32 0.015625, %v10444_v52  ;;  %v10783_v16 = vsub.s32 %v6942_v23, %v12632_v46  ;;  %v6984_v9 = vadd.s32 4294967224, %v10550_v55 }
 0x190   :  { %v5417_v11 = vcombine.low %v12656_v13, %v12655_v19  ;;  %v10786_v19 = vpop.permute.xlu1 %6545  ;;  %6713 = vperm.xlu1 %7632, %v5364_v45   ;;  %v5577_v22 = vrot.slane %v5569_v44, %v8254_v10  ;;  %v5584_v18 = vrot.slane %v5570_v49, %v8254_v10  ;;  %v12660_v15 = vrot.slane %v9802_v58, %v8063_v8  ;;  %v10806_v49 = vpop.permute.xlu0 %6539 }
 0x191   :  { %12657 = vst [vmem:[#allocation12_spill] sm:$0xff] %v10780_v60  ;;  %12658 = vst [vmem:[#allocation6_spill] sm:$0xff] %v10786_v19  ;;  %v12661_v23 = vrot.slane %v9802_v58, %v8206_v21  ;;  %v12662_v37 = vrot.slane %v9802_v58, %v8181_v3  ;;  %v5424_v34 = vrot.slane %v5416_v35, %v8254_v10  ;;  %6746 = vperm.xlu0 %7631, %v5551_v7   ;;  %v12664_v19 = vld [vmem:[#allocation32_spill] sm:$0xff] }
 0x192   :  { %v5603_v52 = vcombine.low %v12660_v15, %v12659_v32  ;;  %12663 = vst [vmem:[#allocation35_spill] sm:$0xff] %v10806_v49  ;;  %v5431_v12 = vrot.slane %v5417_v11, %v8254_v10  ;;  %v5398_v15 = vcombine.low %v5390_v2, %v5397_v29  ;;  %v12665_v58 = vrot.slane %v12664_v19, %v8142_v51 }
 0x193   :  { %v5604_v13 = vcombine.low %v12662_v37, %v12661_v23  ;;  %v12666_v23 = vrot.slane %v12664_v19, %v8063_v8  ;;  %v12667_v44 = vrot.slane %v12664_v19, %v8206_v21  ;;  %v12668_v35 = vrot.slane %v12664_v19, %v8181_v3 }
 0x194   :  { %v12669_v7 = vrot.slane %v9856_v59, %v8142_v51  ;;  %v12670_v2 = vrot.slane %v9856_v59, %v8063_v8  ;;  %v12672_v19 = vrot.slane %v9856_v59, %v8181_v3  ;;  %v10843_v11 = vpop.permute.xlu1 %6548  ;;  %6719 = vperm.xlu1 %7632, %v5398_v15   ;;  %v5585_v29 = vcombine.low %v5577_v22, %v5584_v18  ;;  %v12675_v18 = vld [vmem:[#allocation9_spill] sm:$0xff] }
 0x195   :  { %v5450_v37 = vcombine.low %v12666_v23, %v12665_v58  ;;  %v5451_v45 = vcombine.low %v12668_v35, %v12667_v44  ;;  %v12671_v23 = vrot.slane %v9856_v59, %v8206_v21  ;;  %v10841_v35 = vmul.f32 0.015625, %v10483_v43  ;;  %12673 = vst [vmem:[#allocation32_spill] sm:$0xff] %v10843_v11 }
 0x196   :  { %v5637_v58 = vcombine.low %v12670_v2, %v12669_v7  ;;  %v5611_v32 = vrot.slane %v5603_v52, %v8254_v10  ;;  %v5618_v49 = vrot.slane %v5604_v13, %v8254_v10  ;;  %v10852_v59 = vsub.s32 %v6984_v9, %v12632_v46  ;;  %6752 = vperm.xlu0 %7631, %v5585_v29  }
 0x197   :  { %v5638_v44 = vcombine.low %v12672_v19, %v12671_v23  ;;  %v10854_v23 = vpop.permute.xlu0 %6566  ;;  %v5432_v43 = vcombine.low %v5424_v34, %v5431_v12  ;;  %v5458_v15 = vrot.slane %v5450_v37, %v8254_v10  ;;  %v5465_v22 = vrot.slane %v5451_v45, %v8254_v10 }
 0x198   :  { %12674 = vst [vmem:[#allocation36_spill] sm:$0xff] %v10854_v23  ;;  %v12676_v52 = vrot.slane %v12675_v18, %v8142_v51  ;;  %v12677_v13 = vrot.slane %v12675_v18, %v8063_v8  ;;  %v12678_v7 = vrot.slane %v12675_v18, %v8206_v21  ;;  %v12679_v9 = vrot.slane %v12675_v18, %v8181_v3  ;;  %v12682_v23 = vld [vmem:[#allocation17_spill] sm:$0xff] }
 0x199   :  { %v10871_v12 = vmul.f32 0.015625, %v10494_v30  ;;  %v6949_v34 = vadd.s32 4294967264, %v10550_v55  ;;  %v5645_v45 = vrot.slane %v5637_v58, %v8254_v10  ;;  %v5652_v37 = vrot.slane %v5638_v44, %v8254_v10  ;;  %6725 = vperm.xlu1 %7632, %v5432_v43   ;;  %v12688_v43 = vld [vmem:[#allocation11_spill] sm:$0xff] }
 0x19a   :  { %v5484_v19 = vcombine.low %v12677_v13, %v12676_v52  ;;  %v5485_v2 = vcombine.low %v12679_v9, %v12678_v7  ;;  %v10878_v52 = vpop.permute.xlu1 %6551  ;;  %v5619_v13 = vcombine.low %v5611_v32, %v5618_v49  ;;  %v12683_v18 = vrot.slane %v12682_v23, %v8142_v51 }
 0x19b   :  { %12680 = vst [vmem:[#allocation9_spill] sm:$0xff] %v10871_v12  ;;  %12681 = vst [vmem:[#allocation37_spill] sm:$0xff] %v10878_v52  ;;  %v12684_v30 = vrot.slane %v12682_v23, %v8063_v8  ;;  %v12685_v9 = vrot.slane %v12682_v23, %v8206_v21  ;;  %v12686_v58 = vrot.slane %v12682_v23, %v8181_v3  ;;  %v10896_v32 = vpop.permute.xlu0 %6572  ;;  %v10915_v60 = vmul.f32 0.015625, %v10527_v6 }
 0x19c   :  { %12687 = vst [vmem:[#allocation17_spill] sm:$0xff] %v10896_v32  ;;  %v12689_v52 = vrot.slane %v12688_v43, %v8142_v51  ;;  %v12691_v11 = vrot.slane %v12688_v43, %v8206_v21  ;;  %v12692_v23 = vrot.slane %v12688_v43, %v8181_v3  ;;  %6758 = vperm.xlu0 %7631, %v5619_v13  }
 0x19d   :  { %v5671_v7 = vcombine.low %v12684_v30, %v12683_v18  ;;  %v5672_v44 = vcombine.low %v12686_v58, %v12685_v9  ;;  %v12690_v18 = vrot.slane %v12688_v43, %v8063_v8  ;;  %v5466_v49 = vcombine.low %v5458_v15, %v5465_v22 }
 0x19e   :  { %v5519_v9 = vcombine.low %v12692_v23, %v12691_v11  ;;  %v5492_v29 = vrot.slane %v5484_v19, %v8254_v10  ;;  %v5499_v32 = vrot.slane %v5485_v2, %v8254_v10  ;;  %v5653_v43 = vcombine.low %v5645_v45, %v5652_v37  ;;  %v10921_v11 = vpop.permute.xlu1 %6554 }
 0x19f   :  { %v5518_v30 = vcombine.low %v12690_v18, %v12689_v52  ;;  %12693 = vst [vmem:[#allocation11_spill] sm:$0xff] %v10921_v11  ;;  %6731 = vperm.xlu1 %7632, %v5466_v49   ;;  %v5679_v13 = vrot.slane %v5671_v7, %v8254_v10  ;;  %v5686_v15 = vrot.slane %v5672_v44, %v8254_v10  ;;  %v10940_v7 = vmul.f32 0.015625, %v10539_v62  ;;  %v10942_v44 = vpop.permute.xlu0 %6578  ;;  %v12700_v18 = vld [vmem:[#allocation14_spill] sm:$0xff] }
 0x1a0   :  { %v12694_v2 = vrot.slane %v9948_v42, %v8142_v51  ;;  %v12695_v6 = vrot.slane %v9948_v42, %v8063_v8  ;;  %v12696_v19 = vrot.slane %v9948_v42, %v8206_v21  ;;  %v12697_v45 = vrot.slane %v9948_v42, %v8181_v3  ;;  %12699 = vst [vmem:[#allocation39_spill] sm:$0xff] %v10942_v44 }
 0x1a1   :  { %12698 = vst [vmem:[#allocation38_spill] sm:$0xff] %v10940_v7  ;;  %v5526_v23 = vrot.slane %v5518_v30, %v8254_v10  ;;  %v5533_v52 = vrot.slane %v5519_v9, %v8254_v10  ;;  %6764 = vperm.xlu0 %7631, %v5653_v43   ;;  %v12701_v42 = vrot.slane %v12700_v18, %v8142_v51 }
 0x1a2   :  { %v5705_v22 = vcombine.low %v12695_v6, %v12694_v2  ;;  %v5706_v37 = vcombine.low %v12697_v45, %v12696_v19  ;;  %v5500_v6 = vcombine.low %v5492_v29, %v5499_v32  ;;  %v12702_v19 = vrot.slane %v12700_v18, %v8063_v8  ;;  %v10979_v2 = vpop.permute.xlu1 %6557 }
 0x1a3   :  { %v12703_v62 = vrot.slane %v12700_v18, %v8206_v21  ;;  %v12704_v30 = vrot.slane %v12700_v18, %v8181_v3  ;;  %v10963_v43 = vsub.s32 %v6949_v34, %v12632_v46  ;;  %v12705_v29 = vrot.slane %v9992_v4, %v8142_v51  ;;  %12709 = vst [vmem:[#allocation14_spill] sm:$0xff] %v10979_v2 }
 0x1a4   :  { %v5552_v45 = vcombine.low %v12702_v19, %v12701_v42  ;;  %v12706_v32 = vrot.slane %v9992_v4, %v8063_v8  ;;  %v12707_v19 = vrot.slane %v9992_v4, %v8206_v21  ;;  %v12708_v18 = vrot.slane %v9992_v4, %v8181_v3  ;;  %6737 = vperm.xlu1 %7632, %v5500_v6  }
 0x1a5   :  { %v5553_v49 = vcombine.low %v12704_v30, %v12703_v62  ;;  %v5687_v34 = vcombine.low %v5679_v13, %v5686_v15  ;;  %v5713_v9 = vrot.slane %v5705_v22, %v8254_v10  ;;  %v5720_v58 = vrot.slane %v5706_v37, %v8254_v10  ;;  %v12711_v15 = vld [vmem:[#allocation13_spill] sm:$0xff] }
 0x1a6   :  { %v5739_v42 = vcombine.low %v12706_v32, %v12705_v29  ;;  %v5740_v62 = vcombine.low %v12708_v18, %v12707_v19  ;;  %v10989_v19 = vpop.permute.xlu0 %6584  ;;  %v5534_v18 = vcombine.low %v5526_v23, %v5533_v52  ;;  %v5560_v6 = vrot.slane %v5552_v45, %v8254_v10 }
 0x1a7   :  { %12710 = vst [vmem:[#allocation40_spill] sm:$0xff] %v10989_v19  ;;  %6770 = vperm.xlu0 %7631, %v5687_v34   ;;  %v5567_v13 = vrot.slane %v5553_v49, %v8254_v10  ;;  %v12712_v22 = vrot.slane %v12711_v15, %v8142_v51  ;;  %v12713_v37 = vrot.slane %v12711_v15, %v8063_v8  ;;  %v11006_v52 = vmul.f32 0.015625, %v10573_v57 }
 0x1a8   :  { %v12714_v32 = vrot.slane %v12711_v15, %v8206_v21  ;;  %v12715_v4 = vrot.slane %v12711_v15, %v8181_v3  ;;  %v5747_v23 = vrot.slane %v5739_v42, %v8254_v10  ;;  %v5754_v45 = vrot.slane %v5740_v62, %v8254_v10  ;;  %6743 = vperm.xlu1 %7632, %v5534_v18  }
 0x1a9   :  { %v5586_v29 = vcombine.low %v12713_v37, %v12712_v22  ;;  %v11014_v22 = vpop.permute.xlu1 %6560  ;;  %v5721_v37 = vcombine.low %v5713_v9, %v5720_v58  ;;  %v12718_v57 = vrot.slane %v10038_v25, %v8063_v8  ;;  %v12719_v15 = vrot.slane %v10038_v25, %v8206_v21  ;;  %v12722_v9 = vld [vmem:[#allocation15_spill] sm:$0xff] }
 0x1aa   :  { %v5587_v30 = vcombine.low %v12715_v4, %v12714_v32  ;;  %12716 = vst [vmem:[#allocation13_spill] sm:$0xff] %v11014_v22  ;;  %v12717_v32 = vrot.slane %v10038_v25, %v8142_v51  ;;  %v12720_v42 = vrot.slane %v10038_v25, %v8181_v3  ;;  %v11031_v18 = vmul.f32 0.015625, %v10584_v40  ;;  %v11033_v58 = vpop.permute.xlu0 %6590  ;;  %v12732_v22 = vld [vmem:[#allocation19_spill] sm:$0xff] }
 0x1ab   :  { %v12723_v49 = vrot.slane %v12722_v9, %v8142_v51  ;;  %v12725_v19 = vrot.slane %v12722_v9, %v8206_v21  ;;  %v12726_v25 = vrot.slane %v12722_v9, %v8181_v3  ;;  %6776 = vperm.xlu0 %7631, %v5721_v37   ;;  %v5568_v40 = vcombine.low %v5560_v6, %v5567_v13 }
 0x1ac   :  { %v5773_v4 = vcombine.low %v12718_v57, %v12717_v32  ;;  %v5774_v62 = vcombine.low %v12720_v42, %v12719_v15  ;;  %12721 = vst [vmem:[#allocation41_spill] sm:$0xff] %v11031_v18  ;;  %v12724_v32 = vrot.slane %v12722_v9, %v8063_v8  ;;  %v6998_v42 = vadd.s32 4294967208, %v10550_v55 }
 0x1ad   :  { %v5621_v15 = vcombine.low %v12726_v25, %v12725_v19  ;;  %v5594_v34 = vrot.slane %v5586_v29, %v8254_v10  ;;  %v5601_v44 = vrot.slane %v5587_v30, %v8254_v10  ;;  %v5755_v2 = vcombine.low %v5747_v23, %v5754_v45  ;;  %v11056_v9 = vpop.permute.xlu1 %6563  ;;  %6749 = vperm.xlu1 %7632, %v5568_v40  }
 0x1ae   :  { %v5620_v57 = vcombine.low %v12724_v32, %v12723_v49  ;;  %12727 = vst [vmem:[#allocation15_spill] sm:$0xff] %v11056_v9  ;;  %v5781_v19 = vrot.slane %v5773_v4, %v8254_v10  ;;  %v5788_v6 = vrot.slane %v5774_v62, %v8254_v10  ;;  %v12728_v30 = vrot.slane %v10092_v54, %v8142_v51  ;;  %v11076_v62 = vpop.permute.xlu0 %6596 }
 0x1af   :  { %v12729_v29 = vrot.slane %v10092_v54, %v8063_v8  ;;  %v12730_v37 = vrot.slane %v10092_v54, %v8206_v21  ;;  %v12731_v23 = vrot.slane %v10092_v54, %v8181_v3  ;;  %v5635_v32 = vrot.slane %v5621_v15, %v8254_v10  ;;  %6782 = vperm.xlu0 %7631, %v5755_v2  }
 0x1b0   :  { %v5628_v40 = vrot.slane %v5620_v57, %v8254_v10  ;;  %v12733_v54 = vrot.slane %v12732_v22, %v8142_v51  ;;  %v12735_v4 = vrot.slane %v12732_v22, %v8206_v21  ;;  %v12736_v57 = vrot.slane %v12732_v22, %v8181_v3 }
 0x1b1   :  { %v5807_v13 = vcombine.low %v12729_v29, %v12728_v30  ;;  %v5808_v45 = vcombine.low %v12731_v23, %v12730_v37  ;;  %v5602_v29 = vcombine.low %v5594_v34, %v5601_v44  ;;  %v12734_v37 = vrot.slane %v12732_v22, %v8063_v8 }
 0x1b2   :  { %v5655_v25 = vcombine.low %v12736_v57, %v12735_v4  ;;  %v11095_v15 = vmul.f32 0.015625, %v10615_v28  ;;  %v12738_v2 = vrot.slane %v10128_v14, %v8142_v51  ;;  %v12739_v34 = vrot.slane %v10128_v14, %v8063_v8  ;;  %v11113_v57 = vpop.permute.xlu1 %6569 }
 0x1b3   :  { %v5654_v23 = vcombine.low %v12734_v37, %v12733_v54  ;;  %v12740_v37 = vrot.slane %v10128_v14, %v8206_v21  ;;  %v12741_v22 = vrot.slane %v10128_v14, %v8181_v3  ;;  %12742 = vst [vmem:[#allocation42_spill] sm:$0xff] %v11113_v57  ;;  %6755 = vperm.xlu1 %7632, %v5602_v29   ;;  %v6956_v14 = vadd.s32 4294967256, %v10550_v55 }
 0x1b4   :  { %12737 = vst [vmem:[#allocation19_spill] sm:$0xff] %v11095_v15  ;;  %v5841_v54 = vcombine.low %v12739_v34, %v12738_v2  ;;  %v5789_v44 = vcombine.low %v5781_v19, %v5788_v6  ;;  %v5815_v30 = vrot.slane %v5807_v13, %v8254_v10  ;;  %v5822_v49 = vrot.slane %v5808_v45, %v8254_v10 }
 0x1b5   :  { %v5842_v4 = vcombine.low %v12741_v22, %v12740_v37  ;;  %v11118_v2 = vmul.f32 0.015625, %v10620_v39  ;;  %v11121_v34 = vsub.s32 %v6998_v42, %v12632_v46  ;;  %v11124_v37 = vpop.permute.xlu0 %6602  ;;  %v5636_v22 = vcombine.low %v5628_v40, %v5635_v32 }
 0x1b6   :  { %6788 = vperm.xlu0 %7631, %v5789_v44   ;;  %v5662_v28 = vrot.slane %v5654_v23, %v8254_v10  ;;  %v5669_v19 = vrot.slane %v5655_v25, %v8254_v10  ;;  %v12744_v6 = vrot.slane %v9970_v48, %v8142_v51  ;;  %v12745_v39 = vrot.slane %v9970_v48, %v8063_v8 }
 0x1b7   :  { %12743 = vst [vmem:[#allocation43_spill] sm:$0xff] %v11118_v2  ;;  %v12746_v42 = vrot.slane %v9970_v48, %v8206_v21  ;;  %v12747_v45 = vrot.slane %v9970_v48, %v8181_v3  ;;  %v5849_v40 = vrot.slane %v5841_v54, %v8254_v10  ;;  %v5856_v23 = vrot.slane %v5842_v4, %v8254_v10 }
 0x1b8   :  { %v5688_v13 = vcombine.low %v12745_v39, %v12744_v6  ;;  %v11148_v6 = vpop.permute.xlu1 %6575  ;;  %6761 = vperm.xlu1 %7632, %v5636_v22   ;;  %v5823_v39 = vcombine.low %v5815_v30, %v5822_v49  ;;  %v12749_v48 = vrot.slane %v10184_v26, %v8142_v51  ;;  %v12751_v32 = vrot.slane %v10184_v26, %v8206_v21  ;;  %v12753_v22 = vld [vmem:[#allocation21_spill] sm:$0xff] }
 0x1b9   :  { %v5689_v29 = vcombine.low %v12747_v45, %v12746_v42  ;;  %12748 = vst [vmem:[#allocation44_spill] sm:$0xff] %v11148_v6  ;;  %v12750_v42 = vrot.slane %v10184_v26, %v8063_v8  ;;  %v12752_v54 = vrot.slane %v10184_v26, %v8181_v3  ;;  %v11166_v30 = vpop.permute.xlu0 %6608  ;;  %v12754_v25 = vrot.slane %v12753_v22, %v8142_v51 }
 0x1ba   :  { %v12756_v6 = vrot.slane %v12753_v22, %v8206_v21  ;;  %v12757_v26 = vrot.slane %v12753_v22, %v8181_v3  ;;  %6794 = vperm.xlu0 %7631, %v5823_v39   ;;  %v5670_v44 = vcombine.low %v5662_v28, %v5669_v19  ;;  %v5696_v49 = vrot.slane %v5688_v13, %v8254_v10 }
 0x1bb   :  { %v5875_v45 = vcombine.low %v12750_v42, %v12749_v48  ;;  %v5876_v4 = vcombine.low %v12752_v54, %v12751_v32  ;;  %v12755_v48 = vrot.slane %v12753_v22, %v8063_v8  ;;  %v5703_v57 = vrot.slane %v5689_v29, %v8254_v10 }
 0x1bc   :  { %v5723_v32 = vcombine.low %v12757_v26, %v12756_v6  ;;  %v11185_v9 = vmul.f32 0.015625, %v10663_v61  ;;  %v5857_v11 = vcombine.low %v5849_v40, %v5856_v23  ;;  %v11190_v22 = vpop.permute.xlu1 %6581  ;;  %6767 = vperm.xlu1 %7632, %v5670_v44   ;;  %v12759_v19 = vrot.slane %v10228_v17, %v8142_v51 }
 0x1bd   :  { %v5722_v42 = vcombine.low %v12755_v48, %v12754_v25  ;;  %v7012_v48 = vadd.s32 4294967192, %v10550_v55  ;;  %12758 = vst [vmem:[#allocation21_spill] sm:$0xff] %v11190_v22  ;;  %v5883_v6 = vrot.slane %v5875_v45, %v8254_v10  ;;  %v5890_v28 = vrot.slane %v5876_v4, %v8254_v10  ;;  %v11207_v39 = vpop.permute.xlu0 %6614 }
 0x1be   :  { %v12760_v61 = vrot.slane %v10228_v17, %v8063_v8  ;;  %v12761_v29 = vrot.slane %v10228_v17, %v8206_v21  ;;  %v12762_v40 = vrot.slane %v10228_v17, %v8181_v3  ;;  %v6963_v44 = vadd.s32 4294967248, %v10550_v55  ;;  %6800 = vperm.xlu0 %7631, %v5857_v11  }
 0x1bf   :  { %v5730_v45 = vrot.slane %v5722_v42, %v8254_v10  ;;  %v5737_v4 = vrot.slane %v5723_v32, %v8254_v10  ;;  %v12763_v26 = vrot.slane %v10065_v24, %v8142_v51  ;;  %v12765_v42 = vrot.slane %v10065_v24, %v8206_v21 }
 0x1c0   :  { %v5909_v13 = vcombine.low %v12760_v61, %v12759_v19  ;;  %v5910_v23 = vcombine.low %v12762_v40, %v12761_v29  ;;  %v12764_v19 = vrot.slane %v10065_v24, %v8063_v8  ;;  %v11220_v29 = vsub.s32 %v6956_v14, %v12632_v46 }
 0x1c1   :  { %v5704_v40 = vcombine.low %v5696_v49, %v5703_v57  ;;  %v12766_v32 = vrot.slane %v10065_v24, %v8181_v3  ;;  %v11229_v54 = vmul.f32 0.015625, %v10666_v5  ;;  %v12768_v14 = vrot.slane %v10274_v20, %v8063_v8  ;;  %v11254_v18 = vpop.permute.xlu0 %6620 }
 0x1c2   :  { %v5756_v61 = vcombine.low %v12764_v19, %v12763_v26  ;;  %v7026_v26 = vadd.s32 4294967176, %v10550_v55  ;;  %v12767_v19 = vrot.slane %v10274_v20, %v8142_v51  ;;  %v12769_v57 = vrot.slane %v10274_v20, %v8206_v21 }
 0x1c3   :  { %v5757_v25 = vcombine.low %v12766_v32, %v12765_v42  ;;  %v12770_v49 = vrot.slane %v10274_v20, %v8181_v3  ;;  %v6588_v42 = vpop.permute.xlu1 %6587  ;;  %6773 = vperm.xlu1 %7632, %v5704_v40   ;;  %v5891_v32 = vcombine.low %v5883_v6, %v5890_v28  ;;  %v5917_v17 = vrot.slane %v5909_v13, %v8254_v10 }
 0x1c4   :  { %v5943_v11 = vcombine.low %v12768_v14, %v12767_v19  ;;  %v5924_v22 = vrot.slane %v5910_v23, %v8254_v10  ;;  %v11249_v19 = vsub.s32 %v7012_v48, %v12632_v46  ;;  %v11252_v14 = vsub.s32 %v6963_v44, %v12632_v46 }
 0x1c5   :  { %v5944_v24 = vcombine.low %v12770_v49, %v12769_v57  ;;  %v5738_v20 = vcombine.low %v5730_v45, %v5737_v4  ;;  %v5764_v57 = vrot.slane %v5756_v61, %v8254_v10  ;;  %v7036_v40 = vrot.slane %v6588_v42, %v10709_v38  ;;  %6806 = vperm.xlu0 %7631, %v5891_v32  }
 0x1c6   :  { %v5771_v6 = vrot.slane %v5757_v25, %v8254_v10  ;;  %v12771_v28 = vrot.slane %v10104_v47, %v8142_v51  ;;  %v12772_v48 = vrot.slane %v10104_v47, %v8063_v8  ;;  %v12773_v23 = vrot.slane %v10104_v47, %v8206_v21 }
 0x1c7   :  { %v12774_v44 = vrot.slane %v10104_v47, %v8181_v3  ;;  %v11272_v4 = vsub.s32 %v7026_v26, %v12632_v46  ;;  %v6970_v61 = vadd.s32 4294967240, %v10550_v55  ;;  %v5951_v25 = vrot.slane %v5943_v11, %v8254_v10  ;;  %v6594_v32 = vpop.permute.xlu1 %6593  ;;  %6779 = vperm.xlu1 %7632, %v5738_v20  }
 0x1c8   :  { %v5790_v13 = vcombine.low %v12772_v48, %v12771_v28  ;;  %v5958_v49 = vrot.slane %v5944_v24, %v8254_v10  ;;  %v7040_v42 = vrot.slane %v11033_v58, %v10649_v41  ;;  %v5925_v28 = vcombine.low %v5917_v17, %v5924_v22  ;;  %v11293_v22 = vpop.permute.xlu0 %6626  ;;  %v12779_v17 = vld [vmem:[#allocation16_spill] sm:$0xff] }
 0x1c9   :  { %v5791_v45 = vcombine.low %v12774_v44, %v12773_v23  ;;  %v12775_v48 = vrot.slane %v10328_v36, %v8142_v51  ;;  %v12776_v47 = vrot.slane %v10328_v36, %v8063_v8  ;;  %v12777_v23 = vrot.slane %v10328_v36, %v8206_v21 }
 0x1ca   :  { %v12778_v11 = vrot.slane %v10328_v36, %v8181_v3  ;;  %v6977_v58 = vadd.s32 4294967232, %v10550_v55  ;;  %v7045_v20 = vrot.slane %v6594_v32, %v10705_v53  ;;  %v12780_v44 = vrot.slane %v12779_v17, %v8142_v51  ;;  %6812 = vperm.xlu0 %7631, %v5925_v28  }
 0x1cb   :  { %v5977_v26 = vcombine.low %v12776_v47, %v12775_v48  ;;  %v12781_v48 = vrot.slane %v12779_v17, %v8063_v8  ;;  %v12782_v5 = vrot.slane %v12779_v17, %v8206_v21  ;;  %v12783_v36 = vrot.slane %v12779_v17, %v8181_v3  ;;  %v6600_v17 = vpop.permute.xlu1 %6599 }
 0x1cc   :  { %v5978_v24 = vcombine.low %v12778_v11, %v12777_v23  ;;  %v7041_v11 = vsel %vm6933_vm1, %v7040_v42, %v7036_v40  ;;  %v5772_v32 = vcombine.low %v5764_v57, %v5771_v6  ;;  %v5798_v7 = vrot.slane %v5790_v13, %v8254_v10 }
 0x1cd   :  { %v5824_v47 = vcombine.low %v12781_v48, %v12780_v44  ;;  %v5825_v23 = vcombine.low %v12783_v36, %v12782_v5  ;;  %v5805_v12 = vrot.slane %v5791_v45, %v8254_v10  ;;  %v11311_v15 = vsub.s32 %v6970_v61, %v12632_v46 }
 0x1ce   :  { %v7050_v44 = vrot.slane %v11076_v62, %v10783_v16  ;;  %v7046_v48 = vsel %vm6940_vm2, %v7045_v20, %v7041_v11  ;;  %v5959_v2 = vcombine.low %v5951_v25, %v5958_v49  ;;  %6785 = vperm.xlu1 %7632, %v5772_v32   ;;  %v5985_v5 = vrot.slane %v5977_v26, %v8254_v10  ;;  %v11331_v49 = vpop.permute.xlu0 %6632 }
 0x1cf   :  { %v5992_v40 = vrot.slane %v5978_v24, %v8254_v10  ;;  %v12784_v57 = vrot.slane %v10364_v27, %v8142_v51  ;;  %v12785_v6 = vrot.slane %v10364_v27, %v8063_v8  ;;  %v12786_v45 = vrot.slane %v10364_v27, %v8206_v21 }
 0x1d0   :  { %v12787_v62 = vrot.slane %v10364_v27, %v8181_v3  ;;  %v7055_v25 = vrot.slane %v6600_v17, %v10963_v43  ;;  %v5832_v42 = vrot.slane %v5824_v47, %v8254_v10  ;;  %v5839_v28 = vrot.slane %v5825_v23, %v8254_v10  ;;  %6818 = vperm.xlu0 %7631, %v5959_v2  }
 0x1d1   :  { %v6011_v13 = vcombine.low %v12785_v6, %v12784_v57  ;;  %v12788_v26 = vrot.slane %v10195_v56, %v8142_v51  ;;  %v12789_v24 = vrot.slane %v10195_v56, %v8063_v8  ;;  %v11342_v36 = vsub.s32 %v6977_v58, %v12632_v46 }
 0x1d2   :  { %v6012_v61 = vcombine.low %v12787_v62, %v12786_v45  ;;  %v7051_v27 = vsel %vm6947_vm3, %v7050_v44, %v7046_v48  ;;  %v5806_v11 = vcombine.low %v5798_v7, %v5805_v12  ;;  %v12790_v47 = vrot.slane %v10195_v56, %v8206_v21  ;;  %v6606_v48 = vpop.permute.xlu1 %6605 }
 0x1d3   :  { %v5858_v20 = vcombine.low %v12789_v24, %v12788_v26  ;;  %v12791_v23 = vrot.slane %v10195_v56, %v8181_v3  ;;  %v6991_v17 = vadd.s32 4294967216, %v10550_v55  ;;  %v7056_v57 = vsel %vm6954_vm4, %v7055_v25, %v7051_v27  ;;  %v11370_v24 = vpop.permute.xlu0 %6638 }
 0x1d4   :  { %v12792_v58 = vrot.slane %v10420_v1, %v8142_v51  ;;  %v12793_v6 = vrot.slane %v10420_v1, %v8063_v8  ;;  %v12794_v12 = vrot.slane %v10420_v1, %v8206_v21  ;;  %v12795_v7 = vrot.slane %v10420_v1, %v8181_v3  ;;  %6791 = vperm.xlu1 %7632, %v5806_v11   ;;  %v12796_v11 = vld [vmem:[#allocation24_spill] sm:$0xff] }
 0x1d5   :  { %v5859_v32 = vcombine.low %v12791_v23, %v12790_v47  ;;  %v7060_v56 = vrot.slane %v11124_v37, %v11220_v29  ;;  %v5993_v45 = vcombine.low %v5985_v5, %v5992_v40  ;;  %v6019_v62 = vrot.slane %v6011_v13, %v8254_v10 }
 0x1d6   :  { %v6045_v44 = vcombine.low %v12793_v6, %v12792_v58  ;;  %v6046_v2 = vcombine.low %v12795_v7, %v12794_v12  ;;  %v6026_v25 = vrot.slane %v6012_v61, %v8254_v10  ;;  %v7065_v26 = vrot.slane %v6606_v48, %v11252_v14  ;;  %v6612_v6 = vpop.permute.xlu1 %6611 }
 0x1d7   :  { %v5840_v27 = vcombine.low %v5832_v42, %v5839_v28  ;;  %v5866_v47 = vrot.slane %v5858_v20, %v8254_v10  ;;  %v7061_v1 = vsel %vm6961_vm5, %v7060_v56, %v7056_v57  ;;  %6824 = vperm.xlu0 %7631, %v5993_v45   ;;  %v5873_v37 = vrot.slane %v5859_v32, %v8254_v10 }
 0x1d8   :  { %v12797_v5 = vrot.slane %v12796_v11, %v8142_v51  ;;  %v12798_v40 = vrot.slane %v12796_v11, %v8063_v8  ;;  %v12799_v61 = vrot.slane %v12796_v11, %v8206_v21  ;;  %v12800_v42 = vrot.slane %v12796_v11, %v8181_v3 }
 0x1d9   :  { %v11388_v20 = vsub.s32 %v6991_v17, %v12632_v46  ;;  %v7066_v23 = vsel %vm6968_vm6, %v7065_v26, %v7061_v1  ;;  %v6053_v32 = vrot.slane %v6045_v44, %v8254_v10  ;;  %v6060_v57 = vrot.slane %v6046_v2, %v8254_v10  ;;  %6797 = vperm.xlu1 %7632, %v5840_v27  }
 0x1da   :  { %v5892_v13 = vcombine.low %v12798_v40, %v12797_v5  ;;  %v5893_v28 = vcombine.low %v12800_v42, %v12799_v61  ;;  %v7070_v58 = vrot.slane %v11166_v30, %v11311_v15  ;;  %v6027_v12 = vcombine.low %v6019_v62, %v6026_v25  ;;  %v11409_v62 = vpop.permute.xlu0 %6644  ;;  %v12805_v25 = vld [vmem:[#allocation25_spill] sm:$0xff] }
 0x1db   :  { %v12801_v7 = vrot.slane %v10464_v31, %v8142_v51  ;;  %v12802_v56 = vrot.slane %v10464_v31, %v8063_v8  ;;  %v12803_v48 = vrot.slane %v10464_v31, %v8206_v21  ;;  %v12804_v44 = vrot.slane %v10464_v31, %v8181_v3 }
 0x1dc   :  { %v7005_v30 = vadd.s32 4294967200, %v10550_v55  ;;  %v7075_v45 = vrot.slane %v6612_v6, %v11342_v36  ;;  %v12806_v26 = vrot.slane %v12805_v25, %v8142_v51  ;;  %v12807_v27 = vrot.slane %v12805_v25, %v8063_v8  ;;  %6830 = vperm.xlu0 %7631, %v6027_v12  }
 0x1dd   :  { %v6079_v17 = vcombine.low %v12802_v56, %v12801_v7  ;;  %v6080_v2 = vcombine.low %v12804_v44, %v12803_v48  ;;  %v12808_v11 = vrot.slane %v12805_v25, %v8206_v21  ;;  %v12809_v31 = vrot.slane %v12805_v25, %v8181_v3 }
 0x1de   :  { %v5926_v1 = vcombine.low %v12807_v27, %v12806_v26  ;;  %v7071_v40 = vsel %vm6975_vm7, %v7070_v58, %v7066_v23  ;;  %v5874_v61 = vcombine.low %v5866_v47, %v5873_v37  ;;  %v5900_v42 = vrot.slane %v5892_v13, %v8254_v10  ;;  %v6618_v26 = vpop.permute.xlu1 %6617  ;;  %v12810_v58 = vld [vmem:[#allocation27_spill] sm:$0xff] }
 0x1df   :  { %v5927_v5 = vcombine.low %v12809_v31, %v12808_v11  ;;  %v5907_v6 = vrot.slane %v5893_v28, %v8254_v10  ;;  %v7019_v7 = vadd.s32 4294967184, %v10550_v55  ;;  %v7080_v56 = vrot.slane %v11207_v39, %v10852_v59 }
 0x1e0   :  { %v7076_v48 = vsel %vm6982_vm8, %v7075_v45, %v7071_v40  ;;  %v6061_v44 = vcombine.low %v6053_v32, %v6060_v57  ;;  %6803 = vperm.xlu1 %7632, %v5874_v61   ;;  %v6087_v25 = vrot.slane %v6079_v17, %v8254_v10  ;;  %v6094_v23 = vrot.slane %v6080_v2, %v8254_v10  ;;  %v11445_v57 = vpop.permute.xlu0 %6650  ;;  %v12815_v2 = vld [vmem:[#allocation20_spill] sm:$0xff] }
 0x1e1   :  { %v12811_v47 = vrot.slane %v12810_v58, %v8142_v51  ;;  %v12812_v37 = vrot.slane %v12810_v58, %v8063_v8  ;;  %v12813_v55 = vrot.slane %v12810_v58, %v8206_v21  ;;  %v12814_v39 = vrot.slane %v12810_v58, %v8181_v3 }
 0x1e2   :  { %v7085_v32 = vrot.slane %v6618_v26, %v11388_v20  ;;  %v5934_v12 = vrot.slane %v5926_v1, %v8254_v10  ;;  %v5941_v17 = vrot.slane %v5927_v5, %v8254_v10  ;;  %v12816_v45 = vrot.slane %v12815_v2, %v8142_v51  ;;  %6836 = vperm.xlu0 %7631, %v6061_v44   ;;  %v6624_v44 = vpop.permute.xlu1 %6623 }
 0x1e3   :  { %v6113_v13 = vcombine.low %v12812_v37, %v12811_v47  ;;  %v6114_v28 = vcombine.low %v12814_v39, %v12813_v55  ;;  %v12817_v27 = vrot.slane %v12815_v2, %v8063_v8  ;;  %v11456_v31 = vsub.s32 %v7005_v30, %v12632_v46  ;;  %v12820_v47 = vld [vmem:[#allocation33_spill] sm:$0xff] }
 0x1e4   :  { %v7081_v40 = vsel %vm6989_vm9, %v7080_v56, %v7076_v48  ;;  %v5908_v61 = vcombine.low %v5900_v42, %v5907_v6  ;;  %v12818_v26 = vrot.slane %v12815_v2, %v8206_v21  ;;  %v12819_v1 = vrot.slane %v12815_v2, %v8181_v3 }
 0x1e5   :  { %v5960_v11 = vcombine.low %v12817_v27, %v12816_v45  ;;  %v7086_v58 = vsel %vm6996_vm10, %v7085_v32, %v7081_v40  ;;  %v12821_v37 = vrot.slane %v12820_v47, %v8142_v51  ;;  %v12822_v30 = vrot.slane %v12820_v47, %v8063_v8  ;;  %v11486_v40 = vpop.permute.xlu0 %6656 }
 0x1e6   :  { %v5961_v5 = vcombine.low %v12819_v1, %v12818_v26  ;;  %v12823_v42 = vrot.slane %v12820_v47, %v8206_v21  ;;  %v12824_v6 = vrot.slane %v12820_v47, %v8181_v3  ;;  %v7090_v48 = vrot.slane %v11254_v18, %v11121_v34  ;;  %6809 = vperm.xlu1 %7632, %v5908_v61  }
 0x1e7   :  { %v6147_v55 = vcombine.low %v12822_v30, %v12821_v37  ;;  %v6095_v39 = vcombine.low %v6087_v25, %v6094_v23  ;;  %v6121_v32 = vrot.slane %v6113_v13, %v8254_v10  ;;  %v6128_v2 = vrot.slane %v6114_v28, %v8254_v10  ;;  %v12825_v25 = vld [vmem:[#allocation23_spill] sm:$0xff] }
 0x1e8   :  { %v6148_v56 = vcombine.low %v12824_v6, %v12823_v42  ;;  %v11483_v45 = vsub.s32 %v7019_v7, %v12632_v46  ;;  %v7095_v27 = vrot.slane %v6624_v44, %v11456_v31  ;;  %v5942_v26 = vcombine.low %v5934_v12, %v5941_v17  ;;  %v6630_v42 = vpop.permute.xlu1 %6629 }
 0x1e9   :  { %v5968_v1 = vrot.slane %v5960_v11, %v8254_v10  ;;  %v7091_v47 = vsel %vm7003_vm11, %v7090_v48, %v7086_v58  ;;  %6842 = vperm.xlu0 %7631, %v6095_v39   ;;  %v5975_v18 = vrot.slane %v5961_v5, %v8254_v10  ;;  %v12826_v23 = vrot.slane %v12825_v25, %v8142_v51 }
 0x1ea   :  { %v12827_v13 = vrot.slane %v12825_v25, %v8063_v8  ;;  %v12828_v7 = vrot.slane %v12825_v25, %v8206_v21  ;;  %v12829_v28 = vrot.slane %v12825_v25, %v8181_v3  ;;  %v7096_v17 = vsel %vm7010_vm12, %v7095_v27, %v7091_v47  ;;  %6815 = vperm.xlu1 %7632, %v5942_v26   ;;  %v11523_v27 = vpop.permute.xlu0 %6662  ;;  %v12834_v47 = vld [vmem:[#allocation26_spill] sm:$0xff] }
 0x1eb   :  { %v6155_v11 = vrot.slane %v6147_v55, %v8254_v10  ;;  %v6162_v61 = vrot.slane %v6148_v56, %v8254_v10  ;;  %v12830_v5 = vrot.slane %v10694_v63, %v8142_v51  ;;  %v12831_v58 = vrot.slane %v10694_v63, %v8063_v8 }
 0x1ec   :  { %v5994_v46 = vcombine.low %v12827_v13, %v12826_v23  ;;  %v5995_v12 = vcombine.low %v12829_v28, %v12828_v7  ;;  %v7100_v30 = vrot.slane %v11293_v22, %v11249_v19  ;;  %v6129_v6 = vcombine.low %v6121_v32, %v6128_v2 }
 0x1ed   :  { %v6283_v37 = vcombine.low %v12831_v58, %v12830_v5  ;;  %v12832_v48 = vrot.slane %v10694_v63, %v8206_v21  ;;  %v12833_v55 = vrot.slane %v10694_v63, %v8181_v3  ;;  %v7110_v44 = vrot.slane %v11331_v49, %v11272_v4 }
 0x1ee   :  { %v7105_v39 = vrot.slane %v6630_v42, %v11483_v45  ;;  %v12835_v22 = vrot.slane %v12834_v47, %v8142_v51  ;;  %v12836_v32 = vrot.slane %v12834_v47, %v8063_v8  ;;  %v12837_v26 = vrot.slane %v12834_v47, %v8206_v21  ;;  %6848 = vperm.xlu0 %7631, %v6129_v6  }
 0x1ef   :  { %v6284_v56 = vcombine.low %v12833_v55, %v12832_v48  ;;  %v12838_v63 = vrot.slane %v12834_v47, %v8181_v3  ;;  %v7101_v49 = vsel %vm7017_vm13, %v7100_v30, %v7096_v17  ;;  %v5976_v23 = vcombine.low %v5968_v1, %v5975_v18  ;;  %v6636_v48 = vpop.permute.xlu1 %6635  ;;  %v11561_v30 = vpop.permute.xlu0 %6668  ;;  %v12843_v47 = vld [vmem:[#allocation31_spill] sm:$0xff] }
 0x1f0   :  { %v6028_v2 = vcombine.low %v12836_v32, %v12835_v22  ;;  %v6002_v13 = vrot.slane %v5994_v46, %v8254_v10  ;;  %v6009_v7 = vrot.slane %v5995_v12, %v8254_v10  ;;  %v7106_v28 = vsel %vm7024_vm14, %v7105_v39, %v7101_v49 }
 0x1f1   :  { %v6029_v25 = vcombine.low %v12838_v63, %v12837_v26  ;;  %v6163_v5 = vcombine.low %v6155_v11, %v6162_v61  ;;  %v6291_v58 = vrot.slane %v6283_v37, %v8254_v10  ;;  %v11543_v42 = vsel %vm7031_vm15, %v7110_v44, %v7106_v28  ;;  %6821 = vperm.xlu1 %7632, %v5976_v23  }
 0x1f2   :  { %v6298_v55 = vrot.slane %v6284_v56, %v8254_v10  ;;  %v12839_v1 = vrot.slane %v10735_v33, %v8142_v51  ;;  %v12840_v18 = vrot.slane %v10735_v33, %v8063_v8  ;;  %v12841_v12 = vrot.slane %v10735_v33, %v8206_v21 }
 0x1f3   :  { %v12842_v17 = vrot.slane %v10735_v33, %v8181_v3  ;;  %v7119_v61 = vrot.slane %v11370_v24, %v10649_v41  ;;  %v7115_v37 = vrot.slane %v6636_v48, %v10709_v38  ;;  %v6036_v6 = vrot.slane %v6028_v2, %v8254_v10  ;;  %6854 = vperm.xlu0 %7631, %v6163_v5  }
 0x1f4   :  { %v6317_v46 = vcombine.low %v12840_v18, %v12839_v1  ;;  %v6043_v56 = vrot.slane %v6029_v25, %v8254_v10  ;;  %v4291_v44 = vrot.slane %v11185_v9, %v8142_v51  ;;  %v6010_v39 = vcombine.low %v6002_v13, %v6009_v7  ;;  %v6642_v1 = vpop.permute.xlu1 %6641 }
 0x1f5   :  { %v6318_v11 = vcombine.low %v12842_v17, %v12841_v12  ;;  %v12844_v33 = vrot.slane %v12843_v47, %v8142_v51  ;;  %v12845_v22 = vrot.slane %v12843_v47, %v8063_v8  ;;  %v12846_v32 = vrot.slane %v12843_v47, %v8206_v21 }
 0x1f6   :  { %v12847_v2 = vrot.slane %v12843_v47, %v8181_v3  ;;  %v7120_v25 = vsel %vm6933_vm1, %v7119_v61, %v7115_v37  ;;  %v12848_v49 = vrot.slane %v10841_v35, %v8142_v51  ;;  %v12849_v23 = vrot.slane %v10841_v35, %v8063_v8  ;;  %6827 = vperm.xlu1 %7632, %v6010_v39  }
 0x1f7   :  { %v6062_v24 = vcombine.low %v12845_v22, %v12844_v33  ;;  %v12850_v7 = vrot.slane %v10841_v35, %v8206_v21  ;;  %v12851_v28 = vrot.slane %v10841_v35, %v8181_v3  ;;  %v4305_v48 = vrot.slane %v11185_v9, %v8206_v21  ;;  %v11603_v35 = vpop.permute.xlu0 %6674 }
 0x1f8   :  { %v6063_v26 = vcombine.low %v12847_v2, %v12846_v32  ;;  %v6351_v13 = vcombine.low %v12849_v23, %v12848_v49  ;;  %v6299_v18 = vcombine.low %v6291_v58, %v6298_v55  ;;  %v6325_v12 = vrot.slane %v6317_v46, %v8254_v10  ;;  %v12852_v55 = vld [vmem:[#allocation7_spill] sm:$0xff] }
 0x1f9   :  { %v6352_v5 = vcombine.low %v12851_v28, %v12850_v7  ;;  %v6332_v17 = vrot.slane %v6318_v11, %v8254_v10  ;;  %v4256_v61 = vrot.slane %v11229_v54, %v8063_v8  ;;  %v7129_v37 = vrot.slane %v11409_v62, %v10783_v16  ;;  %v6648_v28 = vpop.permute.xlu1 %6647 }
 0x1fa   :  { %v7124_v47 = vrot.slane %v6642_v1, %v10705_v53  ;;  %v6044_v33 = vcombine.low %v6036_v6, %v6043_v56  ;;  %6878 = vperm.xlu0 %7631, %v6299_v18   ;;  %v6070_v22 = vrot.slane %v6062_v24, %v8254_v10  ;;  %v6077_v58 = vrot.slane %v6063_v26, %v8254_v10 }
 0x1fb   :  { %v12853_v46 = vrot.slane %v12852_v55, %v8142_v51  ;;  %v12854_v11 = vrot.slane %v12852_v55, %v8063_v8  ;;  %v12855_v62 = vrot.slane %v12852_v55, %v8206_v21  ;;  %v12856_v32 = vrot.slane %v12852_v55, %v8181_v3 }
 0x1fc   :  { %v7125_v6 = vsel %vm6940_vm2, %v7124_v47, %v7120_v25  ;;  %v6359_v56 = vrot.slane %v6351_v13, %v8254_v10  ;;  %v6366_v24 = vrot.slane %v6352_v5, %v8254_v10  ;;  %v12857_v26 = vrot.slane %v10915_v60, %v8142_v51  ;;  %6833 = vperm.xlu1 %7632, %v6044_v33  }
 0x1fd   :  { %v6096_v39 = vcombine.low %v12854_v11, %v12853_v46  ;;  %v6097_v2 = vcombine.low %v12856_v32, %v12855_v62  ;;  %v12858_v49 = vrot.slane %v10915_v60, %v8063_v8  ;;  %v4263_v7 = vrot.slane %v11229_v54, %v8142_v51  ;;  %v11640_v46 = vpop.permute.xlu0 %6680  ;;  %v12861_v11 = vld [vmem:[#allocation28_spill] sm:$0xff] }
 0x1fe   :  { %v7130_v1 = vsel %vm6947_vm3, %v7129_v37, %v7125_v6  ;;  %v6333_v18 = vcombine.low %v6325_v12, %v6332_v17  ;;  %v12859_v25 = vrot.slane %v10915_v60, %v8206_v21  ;;  %v12860_v13 = vrot.slane %v10915_v60, %v8181_v3 }
 0x1ff   :  { %v6385_v23 = vcombine.low %v12858_v49, %v12857_v26  ;;  %v4270_v47 = vrot.slane %v11229_v54, %v8181_v3  ;;  %v7134_v55 = vrot.slane %v6648_v28, %v10963_v43  ;;  %v12862_v62 = vrot.slane %v12861_v11, %v8142_v51 }
 0x200   :  { %v6386_v5 = vcombine.low %v12860_v13, %v12859_v25  ;;  %v12863_v12 = vrot.slane %v12861_v11, %v8063_v8  ;;  %v12864_v37 = vrot.slane %v12861_v11, %v8206_v21  ;;  %v12865_v60 = vrot.slane %v12861_v11, %v8181_v3  ;;  %6884 = vperm.xlu0 %7631, %v6333_v18  }
 0x201   :  { %v7139_v32 = vrot.slane %v11445_v57, %v11220_v29  ;;  %v6078_v6 = vcombine.low %v6070_v22, %v6077_v58  ;;  %v6104_v26 = vrot.slane %v6096_v39, %v8254_v10  ;;  %v6111_v49 = vrot.slane %v6097_v2, %v8254_v10  ;;  %v11680_v18 = vpop.permute.xlu0 %6686 }
 0x202   :  { %v6130_v17 = vcombine.low %v12863_v12, %v12862_v62  ;;  %v6131_v33 = vcombine.low %v12865_v60, %v12864_v37  ;;  %v4277_v28 = vrot.slane %v11229_v54, %v8206_v21  ;;  %v7135_v25 = vsel %vm6954_vm4, %v7134_v55, %v7130_v1  ;;  %v6654_v12 = vpop.permute.xlu1 %6653 }
 0x203   :  { %v6367_v13 = vcombine.low %v6359_v56, %v6366_v24  ;;  %v6393_v62 = vrot.slane %v6385_v23, %v8254_v10  ;;  %v7140_v11 = vsel %vm6961_vm5, %v7139_v32, %v7135_v25  ;;  %6839 = vperm.xlu1 %7632, %v6078_v6   ;;  %v6400_v57 = vrot.slane %v6386_v5, %v8254_v10 }
 0x204   :  { %v12866_v22 = vrot.slane %v11006_v52, %v8142_v51  ;;  %v12867_v58 = vrot.slane %v11006_v52, %v8063_v8  ;;  %v12868_v2 = vrot.slane %v11006_v52, %v8206_v21  ;;  %v12869_v56 = vrot.slane %v11006_v52, %v8181_v3 }
 0x205   :  { %v11677_v23 = vmul.f32 0.015625, %v10702_v0  ;;  %v7144_v1 = vrot.slane %v6654_v12, %v11252_v14  ;;  %v6138_v5 = vrot.slane %v6130_v17, %v8254_v10  ;;  %v6145_v55 = vrot.slane %v6131_v33, %v8254_v10  ;;  %6890 = vperm.xlu0 %7631, %v6367_v13   ;;  %v12874_v33 = vld [vmem:[#allocation30_spill] sm:$0xff] }
 0x206   :  { %v6419_v39 = vcombine.low %v12867_v58, %v12866_v22  ;;  %v6420_v24 = vcombine.low %v12869_v56, %v12868_v2  ;;  %v7149_v37 = vrot.slane %v11486_v40, %v11311_v15  ;;  %v6112_v60 = vcombine.low %v6104_v26, %v6111_v49  ;;  %v12875_v26 = vld [vmem:[#allocation43_spill] sm:$0xff]  ;;  %v6660_v56 = vpop.permute.xlu1 %6659 }
 0x207   :  { %v12870_v52 = vrot.slane %v10700_v50, %v8142_v51  ;;  %v12871_v0 = vrot.slane %v10700_v50, %v8063_v8  ;;  %v12872_v6 = vrot.slane %v10700_v50, %v8206_v21  ;;  %v12873_v17 = vrot.slane %v10700_v50, %v8181_v3 }
 0x208   :  { %v11699_v12 = vmul.f32 0.015625, %v12874_v33  ;;  %v7145_v40 = vsel %vm6968_vm6, %v7144_v1, %v7140_v11  ;;  %v12876_v49 = vrot.slane %v12875_v26, %v8142_v51  ;;  %v12877_v13 = vrot.slane %v12875_v26, %v8063_v8  ;;  %6845 = vperm.xlu1 %7632, %v6112_v60  }
 0x209   :  { %v6266_v32 = vcombine.low %v12871_v0, %v12870_v52  ;;  %v6267_v25 = vcombine.low %v12873_v17, %v12872_v6  ;;  %v12878_v58 = vrot.slane %v12875_v26, %v8206_v21  ;;  %v12879_v2 = vrot.slane %v12875_v26, %v8181_v3 }
 0x20a   :  { %v6436_v22 = vcombine.low %v12877_v13, %v12876_v49  ;;  %v7150_v52 = vsel %vm6975_vm7, %v7149_v37, %v7145_v40  ;;  %v6401_v0 = vcombine.low %v6393_v62, %v6400_v57  ;;  %v6427_v11 = vrot.slane %v6419_v39, %v8254_v10  ;;  %v11722_v49 = vpop.permute.xlu0 %6692  ;;  %v12880_v57 = vld [vmem:[#allocation12_spill] sm:$0xff] }
 0x20b   :  { %v6437_v50 = vcombine.low %v12879_v2, %v12878_v58  ;;  %v6434_v1 = vrot.slane %v6420_v24, %v8254_v10  ;;  %v7159_v17 = vrot.slane %v11523_v27, %v10852_v59  ;;  %v7154_v33 = vrot.slane %v6660_v56, %v11342_v36 }
 0x20c   :  { %v6146_v26 = vcombine.low %v6138_v5, %v6145_v55  ;;  %6896 = vperm.xlu0 %7631, %v6401_v0   ;;  %v6274_v37 = vrot.slane %v6266_v32, %v8254_v10  ;;  %v6281_v62 = vrot.slane %v6267_v25, %v8254_v10  ;;  %v12881_v39 = vrot.slane %v12880_v57, %v8142_v51  ;;  %v12885_v25 = vld [vmem:[#allocation19_spill] sm:$0xff] }
 0x20d   :  { %v12882_v24 = vrot.slane %v12880_v57, %v8063_v8  ;;  %v12883_v27 = vrot.slane %v12880_v57, %v8206_v21  ;;  %v12884_v40 = vrot.slane %v12880_v57, %v8181_v3  ;;  %v7155_v5 = vsel %vm6982_vm8, %v7154_v33, %v7150_v52 }
 0x20e   :  { %v6444_v55 = vrot.slane %v6436_v22, %v8254_v10  ;;  %v6451_v32 = vrot.slane %v6437_v50, %v8254_v10  ;;  %v12886_v58 = vrot.slane %v12885_v25, %v8142_v51  ;;  %v12887_v2 = vrot.slane %v12885_v25, %v8063_v8  ;;  %6851 = vperm.xlu1 %7632, %v6146_v26  }
 0x20f   :  { %v6300_v60 = vcombine.low %v12882_v24, %v12881_v39  ;;  %v6301_v13 = vcombine.low %v12884_v40, %v12883_v27  ;;  %v6666_v39 = vpop.permute.xlu1 %6665  ;;  %v7160_v57 = vsel %vm6989_vm9, %v7159_v17, %v7155_v5  ;;  %v6435_v24 = vcombine.low %v6427_v11, %v6434_v1  ;;  %v11759_v40 = vpop.permute.xlu0 %6698 }
 0x210   :  { %v6453_v56 = vcombine.low %v12887_v2, %v12886_v58  ;;  %v12888_v22 = vrot.slane %v12885_v25, %v8206_v21  ;;  %v12889_v50 = vrot.slane %v12885_v25, %v8181_v3  ;;  %v4312_v33 = vrot.slane %v11699_v12, %v8063_v8  ;;  %v12890_v58 = vld [vmem:[#allocation9_spill] sm:$0xff] }
 0x211   :  { %v7164_v27 = vrot.slane %v6666_v39, %v11388_v20  ;;  %v12891_v2 = vrot.slane %v12890_v58, %v8142_v51  ;;  %v12892_v11 = vrot.slane %v12890_v58, %v8063_v8  ;;  %v12893_v17 = vrot.slane %v12890_v58, %v8206_v21  ;;  %6902 = vperm.xlu0 %7631, %v6435_v24  }
 0x212   :  { %v6454_v52 = vcombine.low %v12889_v50, %v12888_v22  ;;  %v12894_v26 = vrot.slane %v12890_v58, %v8181_v3  ;;  %v7169_v25 = vrot.slane %v11561_v30, %v11121_v34  ;;  %v6282_v39 = vcombine.low %v6274_v37, %v6281_v62 }
 0x213   :  { %v6334_v1 = vcombine.low %v12892_v11, %v12891_v2  ;;  %v6308_v22 = vrot.slane %v6300_v60, %v8254_v10  ;;  %v6315_v50 = vrot.slane %v6301_v13, %v8254_v10  ;;  %v4319_v6 = vrot.slane %v11699_v12, %v8142_v51  ;;  %v6672_v63 = vpop.permute.xlu1 %6671  ;;  %v11796_v13 = vpop.permute.xlu0 %6704 }
 0x214   :  { %v6335_v5 = vcombine.low %v12894_v26, %v12893_v17  ;;  %v7165_v2 = vsel %vm6996_vm10, %v7164_v27, %v7160_v57  ;;  %v6452_v11 = vcombine.low %v6444_v55, %v6451_v32  ;;  %v6461_v0 = vrot.slane %v6453_v56, %v8254_v10  ;;  %6875 = vperm.xlu1 %7632, %v6282_v39   ;;  %v12895_v56 = vld [vmem:[#allocation38_spill] sm:$0xff] }
 0x215   :  { %v7170_v58 = vsel %vm7003_vm11, %v7169_v25, %v7165_v2  ;;  %v6468_v30 = vrot.slane %v6454_v52, %v8254_v10  ;;  %v6470_v37 = vcombine.low %v4256_v61, %v4263_v7  ;;  %v6471_v62 = vcombine.low %v4270_v47, %v4277_v28 }
 0x216   :  { %v7174_v60 = vrot.slane %v6672_v63, %v11456_v31  ;;  %v6342_v55 = vrot.slane %v6334_v1, %v8254_v10  ;;  %v6349_v32 = vrot.slane %v6335_v5, %v8254_v10  ;;  %v12896_v57 = vrot.slane %v12895_v56, %v8142_v51  ;;  %6905 = vperm.xlu0 %7631, %v6452_v11  }
 0x217   :  { %v12897_v61 = vrot.slane %v12895_v56, %v8063_v8  ;;  %v4326_v24 = vrot.slane %v11699_v12, %v8181_v3  ;;  %v7179_v54 = vrot.slane %v11603_v35, %v11249_v19  ;;  %v6316_v63 = vcombine.low %v6308_v22, %v6315_v50  ;;  %v6678_v25 = vpop.permute.xlu1 %6677  ;;  %v11837_v11 = vpop.permute.xlu0 %6710 }
 0x218   :  { %v12898_v47 = vrot.slane %v12895_v56, %v8206_v21  ;;  %v12899_v28 = vrot.slane %v12895_v56, %v8181_v3  ;;  %v4333_v27 = vrot.slane %v11699_v12, %v8206_v21  ;;  %v7175_v1 = vsel %vm7010_vm12, %v7174_v60, %v7170_v58 }
 0x219   :  { %v6368_v7 = vcombine.low %v12897_v61, %v12896_v57  ;;  %v12900_v35 = vrot.slane %v11185_v9, %v8063_v8  ;;  %v12901_v26 = vrot.slane %v11185_v9, %v8181_v3  ;;  %v7180_v39 = vsel %vm7017_vm13, %v7179_v54, %v7175_v1  ;;  %6881 = vperm.xlu1 %7632, %v6316_v63  }
 0x21a   :  { %v6369_v52 = vcombine.low %v12899_v28, %v12898_v47  ;;  %v6469_v12 = vcombine.low %v6461_v0, %v6468_v30  ;;  %v6478_v22 = vrot.slane %v6470_v37, %v8254_v10  ;;  %v6485_v50 = vrot.slane %v6471_v62, %v8254_v10  ;;  %v12902_v30 = vld [vmem:[#allocation41_spill] sm:$0xff] }
 0x21b   :  { %v6487_v17 = vcombine.low %v12900_v35, %v4291_v44  ;;  %v6488_v5 = vcombine.low %v12901_v26, %v4305_v48  ;;  %v4354_v2 = vrot.slane %v11677_v23, %v8181_v3  ;;  %v7184_v44 = vrot.slane %v6678_v25, %v11483_v45  ;;  %v6684_v63 = vpop.permute.xlu1 %6683  ;;  %v11866_v26 = vpop.permute.xlu0 %6716  ;;  %v12907_v25 = vld [vmem:[#allocation29_spill] sm:$0xff] }
 0x21c   :  { %v6350_v58 = vcombine.low %v6342_v55, %v6349_v32  ;;  %v6376_v9 = vrot.slane %v6368_v7, %v8254_v10  ;;  %v7189_v48 = vrot.slane %v11640_v46, %v11272_v4  ;;  %6908 = vperm.xlu0 %7631, %v6469_v12   ;;  %v6383_v0 = vrot.slane %v6369_v52, %v8254_v10 }
 0x21d   :  { %v12903_v37 = vrot.slane %v12902_v30, %v8142_v51  ;;  %v12904_v62 = vrot.slane %v12902_v30, %v8063_v8  ;;  %v12905_v56 = vrot.slane %v12902_v30, %v8206_v21  ;;  %v12906_v55 = vrot.slane %v12902_v30, %v8181_v3 }
 0x21e   :  { %v4361_v46 = vrot.slane %v11677_v23, %v8206_v21  ;;  %v7185_v57 = vsel %vm7024_vm14, %v7184_v44, %v7180_v39  ;;  %v6495_v61 = vrot.slane %v6487_v17, %v8254_v10  ;;  %v6502_v7 = vrot.slane %v6488_v5, %v8254_v10  ;;  %6887 = vperm.xlu1 %7632, %v6350_v58  }
 0x21f   :  { %v6402_v60 = vcombine.low %v12904_v62, %v12903_v37  ;;  %v6403_v32 = vcombine.low %v12906_v55, %v12905_v56  ;;  %v11861_v54 = vsel %vm7031_vm15, %v7189_v48, %v7185_v57  ;;  %v6486_v47 = vcombine.low %v6478_v22, %v6485_v50  ;;  %v6690_v37 = vpop.permute.xlu1 %6689 }
 0x220   :  { %v6504_v28 = vcombine.low %v4312_v33, %v4319_v6  ;;  %v6505_v52 = vcombine.low %v4326_v24, %v4333_v27  ;;  %v7198_v1 = vrot.slane %v11680_v18, %v10649_v41  ;;  %v7194_v35 = vrot.slane %v6684_v63, %v10709_v38  ;;  %v12912_v18 = vld [vmem:[#allocation10_spill] sm:$0xff] }
 0x221   :  { %v12908_v17 = vrot.slane %v12907_v25, %v8142_v51  ;;  %v12909_v5 = vrot.slane %v12907_v25, %v8063_v8  ;;  %v12910_v12 = vrot.slane %v12907_v25, %v8206_v21  ;;  %v12911_v6 = vrot.slane %v12907_v25, %v8181_v3  ;;  %6911 = vperm.xlu0 %7631, %v6486_v47  }
 0x222   :  { %v3808_v24 = vrot.slane %v12912_v18, %v8063_v8  ;;  %v6384_v27 = vcombine.low %v6376_v9, %v6383_v0  ;;  %v6410_v22 = vrot.slane %v6402_v60, %v8254_v10  ;;  %v6417_v50 = vrot.slane %v6403_v32, %v8254_v10 }
 0x223   :  { %v6164_v39 = vcombine.low %v12909_v5, %v12908_v17  ;;  %v6165_v33 = vcombine.low %v12911_v6, %v12910_v12  ;;  %v3815_v44 = vrot.slane %v12912_v18, %v8142_v51  ;;  %v3822_v58 = vrot.slane %v12912_v18, %v8181_v3  ;;  %v12920_v17 = vld [vmem:[#allocation5_spill] sm:$0xff] }
 0x224   :  { %v7199_v48 = vsel %vm6933_vm1, %v7198_v1, %v7194_v35  ;;  %v6503_v30 = vcombine.low %v6495_v61, %v6502_v7  ;;  %6893 = vperm.xlu1 %7632, %v6384_v27   ;;  %v6512_v62 = vrot.slane %v6504_v28, %v8254_v10  ;;  %v6519_v56 = vrot.slane %v6505_v52, %v8254_v10  ;;  %v11900_v61 = vpop.permute.xlu0 %6722  ;;  %v12915_v52 = vld [vmem:[#allocation8_spill] sm:$0xff] }
 0x225   :  { %v12913_v9 = vrot.slane %v11677_v23, %v8142_v51  ;;  %v12914_v0 = vrot.slane %v11677_v23, %v8063_v8  ;;  %v6522_v55 = vcombine.low %v4354_v2, %v4361_v46  ;;  %v3829_v32 = vrot.slane %v12912_v18, %v8206_v21 }
 0x226   :  { %v7203_v57 = vrot.slane %v6690_v37, %v10705_v53  ;;  %v6172_v7 = vrot.slane %v6164_v39, %v8254_v10  ;;  %v6179_v63 = vrot.slane %v6165_v33, %v8254_v10  ;;  %v7208_v47 = vrot.slane %v11722_v49, %v10783_v16  ;;  %6914 = vperm.xlu0 %7631, %v6503_v30   ;;  %v12921_v39 = vld [vmem:[#allocation22_spill] sm:$0xff]  ;;  %v6696_v33 = vpop.permute.xlu1 %6695 }
 0x227   :  { %v6521_v60 = vcombine.low %v12914_v0, %v12913_v9  ;;  %v6418_v28 = vcombine.low %v6410_v22, %v6417_v50  ;;  %v12916_v23 = vrot.slane %v12915_v52, %v8142_v51  ;;  %v12917_v2 = vrot.slane %v12915_v52, %v8063_v8 }
 0x228   :  { %v12918_v1 = vrot.slane %v12915_v52, %v8206_v21  ;;  %v12919_v35 = vrot.slane %v12915_v52, %v8181_v3  ;;  %v3843_v5 = vrot.slane %v12920_v17, %v8142_v51  ;;  %v3850_v49 = vrot.slane %v12920_v17, %v8181_v3  ;;  %v11930_v9 = vpop.permute.xlu0 %6728 }
 0x229   :  { %v6181_v46 = vcombine.low %v12917_v2, %v12916_v23  ;;  %v632_v12 = vmul.f32 0.015625, %v12921_v39  ;;  %v7204_v6 = vsel %vm6940_vm2, %v7203_v57, %v7199_v48  ;;  %6899 = vperm.xlu1 %7632, %v6418_v28   ;;  %v6520_v27 = vcombine.low %v6512_v62, %v6519_v56 }
 0x22a   :  { %v6182_v25 = vcombine.low %v12919_v35, %v12918_v1  ;;  %v7209_v18 = vsel %vm6947_vm3, %v7208_v47, %v7204_v6  ;;  %v6529_v22 = vrot.slane %v6521_v60, %v8254_v10  ;;  %v6536_v50 = vrot.slane %v6522_v55, %v8254_v10  ;;  %v12922_v60 = vld [vmem:[#allocation18_spill] sm:$0xff] }
 0x22b   :  { %v3857_v30 = vrot.slane %v12920_v17, %v8206_v21  ;;  %v7213_v37 = vrot.slane %v6696_v33, %v10963_v43  ;;  %v6180_v0 = vcombine.low %v6172_v7, %v6179_v63  ;;  %v6198_v52 = vcombine.low %v3808_v24, %v3815_v44  ;;  %6917 = vperm.xlu0 %7631, %v6520_v27   ;;  %v6702_v24 = vpop.permute.xlu1 %6701 }
 0x22c   :  { %v7218_v48 = vrot.slane %v11759_v40, %v11220_v29  ;;  %v6189_v57 = vrot.slane %v6181_v46, %v8254_v10  ;;  %v6196_v62 = vrot.slane %v6182_v25, %v8254_v10  ;;  %v6199_v56 = vcombine.low %v3822_v58, %v3829_v32  ;;  %v11944_v58 = vpop.permute.xlu0 %6734 }
 0x22d   :  { %v633_v55 = vmul.f32 0.015625, %v12922_v60  ;;  %v3864_v47 = vrot.slane %v632_v12, %v8063_v8  ;;  %v7214_v28 = vsel %vm6954_vm4, %v7213_v37, %v7209_v18  ;;  %v3871_v23 = vrot.slane %v632_v12, %v8142_v51  ;;  %6857 = vperm.xlu1 %7632, %v6180_v0  }
 0x22e   :  { %v3878_v7 = vrot.slane %v632_v12, %v8181_v3  ;;  %v7219_v44 = vsel %vm6961_vm5, %v7218_v48, %v7214_v28  ;;  %v6537_v40 = vcombine.low %v6529_v22, %v6536_v50  ;;  %v3885_v63 = vrot.slane %v632_v12, %v8206_v21 }
 0x22f   :  { %v7223_v2 = vrot.slane %v6702_v24, %v11252_v14  ;;  %v6206_v32 = vrot.slane %v6198_v52, %v8254_v10  ;;  %v12923_v46 = vrot.slane %v12920_v17, %v8063_v8  ;;  %v7228_v35 = vrot.slane %v11796_v13, %v11311_v15  ;;  %v6708_v22 = vpop.permute.xlu1 %6707 }
 0x230   :  { %6920 = vperm.xlu0 %7631, %v6537_v40   ;;  %v6197_v25 = vcombine.low %v6189_v57, %v6196_v62  ;;  %v6213_v39 = vrot.slane %v6199_v56, %v8254_v10  ;;  %v6216_v6 = vcombine.low %v3850_v49, %v3857_v30  ;;  %v3892_v33 = vrot.slane %v633_v55, %v8063_v8  ;;  %v6741_v50 = vpop.permute.xlu0 %6740 }
 0x231   :  { %v6215_v1 = vcombine.low %v12923_v46, %v3843_v5  ;;  %v7224_v12 = vsel %vm6968_vm6, %v7223_v2, %v7219_v44  ;;  %v3899_v18 = vrot.slane %v633_v55, %v8142_v51  ;;  %v3906_v27 = vrot.slane %v633_v55, %v8181_v3 }
 0x232   :  { %v7229_v17 = vsel %vm6975_vm7, %v7228_v35, %v7224_v12  ;;  %6860 = vperm.xlu1 %7632, %v6197_v25   ;;  %v3913_v5 = vrot.slane %v633_v55, %v8206_v21  ;;  %v7233_v13 = vrot.slane %v6708_v22, %v11342_v36  ;;  %v6232_v49 = vcombine.low %v3864_v47, %v3871_v23 }
 0x233   :  { %v6223_v37 = vrot.slane %v6215_v1, %v8254_v10  ;;  %v7238_v30 = vrot.slane %v11837_v11, %v10852_v59  ;;  %v6214_v8 = vcombine.low %v6206_v32, %v6213_v39  ;;  %v6230_v51 = vrot.slane %v6216_v6, %v8254_v10  ;;  %v6714_v52 = vpop.permute.xlu1 %6713 }
 0x234   :  { %v6233_v0 = vcombine.low %v3878_v7, %v3885_v63  ;;  %v7234_v3 = vsel %vm6982_vm8, %v7233_v13, %v7229_v17  ;;  %v7243_v21 = vrot.slane %v6714_v52, %v11388_v20  ;;  %v6747_v57 = vpop.permute.xlu0 %6746  ;;  %v6240_v62 = vrot.slane %v6232_v49, %v8254_v10 }
 0x235   :  { %v7239_v48 = vsel %vm6989_vm9, %v7238_v30, %v7234_v3  ;;  %v6249_v56 = vcombine.low %v3892_v33, %v3899_v18  ;;  %v7248_v60 = vrot.slane %v11866_v26, %v11121_v34  ;;  %v6231_v11 = vcombine.low %v6223_v37, %v6230_v51 }
 0x236   :  { %6863 = vperm.xlu1 %7632, %v6214_v8   ;;  %v6247_v55 = vrot.slane %v6233_v0, %v8254_v10  ;;  %v6250_v47 = vcombine.low %v3906_v27, %v3913_v5  ;;  %v7244_v28 = vsel %vm6996_vm10, %v7243_v21, %v7239_v48  ;;  %v7258_v40 = vrot.slane %v11900_v61, %v11249_v19 }
 0x237   :  { %v6720_v23 = vpop.permute.xlu1 %6719  ;;  %v7249_v7 = vsel %vm7003_vm11, %v7248_v60, %v7244_v28  ;;  %v6257_v2 = vrot.slane %v6249_v56, %v8254_v10  ;;  %v7268_v39 = vrot.slane %v11930_v9, %v11272_v4  ;;  %v7277_v18 = vrot.slane %v11944_v58, %v10649_v41 }
 0x238   :  { %v7253_v24 = vrot.slane %v6720_v23, %v11456_v31  ;;  %v6753_v44 = vpop.permute.xlu0 %6752  ;;  %v6248_v63 = vcombine.low %v6240_v62, %v6247_v55  ;;  %v6264_v26 = vrot.slane %v6250_v47, %v8254_v10  ;;  %v7287_v37 = vrot.slane %v6741_v50, %v10783_v16 }
 0x239   :  { %v7297_v58 = vrot.slane %v6747_v57, %v11220_v29  ;;  %v7307_v50 = vrot.slane %v6753_v44, %v11311_v15 }
 0x23a   :  { %6866 = vperm.xlu1 %7632, %v6231_v11   ;;  %v7254_v32 = vsel %vm7010_vm12, %v7253_v24, %v7249_v7  ;;  %v6265_v6 = vcombine.low %v6257_v2, %v6264_v26 }
 0x23b   :  { %v6726_v46 = vpop.permute.xlu1 %6725  ;;  %v7259_v1 = vsel %vm7017_vm13, %v7258_v40, %v7254_v32 }
 0x23c   :  { %v7263_v35 = vrot.slane %v6726_v46, %v11483_v45  ;;  %v6759_v25 = vpop.permute.xlu0 %6758 }
 0x23d   :  { %v7317_v57 = vrot.slane %v6759_v25, %v10852_v59 }
 0x23e   :  { %6869 = vperm.xlu1 %7632, %v6248_v63   ;;  %v7264_v61 = vsel %vm7024_vm14, %v7263_v35, %v7259_v1 }
 0x23f   :  { %v11985_v12 = vsel %vm7031_vm15, %v7268_v39, %v7264_v61  ;;  %v6732_v33 = vpop.permute.xlu1 %6731 }
 0x240   :  { %v7273_v27 = vrot.slane %v6732_v33, %v10709_v38  ;;  %v6765_v22 = vpop.permute.xlu0 %6764 }
 0x241   :  { %v7327_v44 = vrot.slane %v6765_v22, %v11121_v34 }
 0x242   :  { %6872 = vperm.xlu1 %7632, %v6265_v6   ;;  %v7278_v17 = vsel %vm6933_vm1, %v7277_v18, %v7273_v27 }
 0x243   :  { %v6738_v5 = vpop.permute.xlu1 %6737 }
 0x244   :  { %v7282_v13 = vrot.slane %v6738_v5, %v10705_v53  ;;  %v6771_v9 = vpop.permute.xlu0 %6770 }
 0x245   :  { %v7337_v1 = vrot.slane %v6771_v9, %v11249_v19 }
 0x246   :  { %v7283_v49 = vsel %vm6940_vm2, %v7282_v13, %v7278_v17 }
 0x247   :  { %v6744_v30 = vpop.permute.xlu1 %6743  ;;  %v7288_v8 = vsel %vm6947_vm3, %v7287_v37, %v7283_v49  ;;  %v12924_v37 = vld [vmem:[#allocation35_spill] sm:$0xff] }
 0x248   :  { %v7292_v51 = vrot.slane %v6744_v30, %v10963_v43  ;;  %v6777_v0 = vpop.permute.xlu0 %6776  ;;  %v6927_v49 = vrot.slane %v12924_v37, %v10709_v38 }
 0x249   :  { %v7347_v33 = vrot.slane %v6777_v0, %v11272_v4  ;;  %v12925_v0 = vld [vmem:[#allocation34_spill] sm:$0xff] }
 0x24a   :  { %v7293_v3 = vsel %vm6954_vm4, %v7292_v51, %v7288_v8 }
 0x24b   :  { %v6750_v52 = vpop.permute.xlu1 %6749  ;;  %v7298_v48 = vsel %vm6961_vm5, %v7297_v58, %v7293_v3  ;;  %v6932_v58 = vrot.slane %v12925_v0, %v10649_v41 }
 0x24c   :  { %v7302_v21 = vrot.slane %v6750_v52, %v11252_v14  ;;  %v6783_v62 = vpop.permute.xlu0 %6782  ;;  %v12926_v52 = vld [vmem:[#allocation6_spill] sm:$0xff] }
 0x24d   :  { %v7356_v17 = vrot.slane %v6783_v62, %v10649_v41  ;;  %v6934_v62 = vsel %vm6933_vm1, %v6932_v58, %v6927_v49  ;;  %v12933_v58 = vld [vmem:[#allocation42_spill] sm:$0xff] }
 0x24e   :  { %v7303_v56 = vsel %vm6968_vm6, %v7302_v21, %v7298_v48  ;;  %v6939_v48 = vrot.slane %v12926_v52, %v10705_v53 }
 0x24f   :  { %v6756_v60 = vpop.permute.xlu1 %6755  ;;  %v7308_v11 = vsel %vm6975_vm7, %v7307_v50, %v7303_v56  ;;  %v12927_v50 = vld [vmem:[#allocation32_spill] sm:$0xff] }
 0x250   :  { %v7312_v55 = vrot.slane %v6756_v60, %v11342_v36  ;;  %v6789_v47 = vpop.permute.xlu0 %6788  ;;  %v6946_v56 = vrot.slane %v12927_v50, %v10783_v16 }
 0x251   :  { %v7366_v3 = vrot.slane %v6789_v47, %v10783_v16  ;;  %v12929_v47 = vld [vmem:[#allocation11_spill] sm:$0xff] }
 0x252   :  { %v7313_v28 = vsel %vm6982_vm8, %v7312_v55, %v7308_v11  ;;  %v12928_v55 = vld [vmem:[#allocation37_spill] sm:$0xff] }
 0x253   :  { %v6762_v23 = vpop.permute.xlu1 %6761  ;;  %v7318_v7 = vsel %vm6989_vm9, %v7317_v57, %v7313_v28  ;;  %v6953_v57 = vrot.slane %v12928_v55, %v10963_v43 }
 0x254   :  { %v7322_v24 = vrot.slane %v6762_v23, %v11388_v20  ;;  %v6795_v40 = vpop.permute.xlu0 %6794 }
 0x256   :  { %v7323_v63 = vsel %vm6996_vm10, %v7322_v24, %v7318_v7  ;;  %v6960_v7 = vrot.slane %v12929_v47, %v11220_v29  ;;  %v7376_v24 = vrot.slane %v6795_v40, %v11220_v29 }
 0x257   :  { %v6768_v2 = vpop.permute.xlu1 %6767  ;;  %v7328_v26 = vsel %vm7003_vm11, %v7327_v44, %v7323_v63  ;;  %v6941_v44 = vsel %vm6940_vm2, %v6939_v48, %v6934_v62  ;;  %v12930_v63 = vld [vmem:[#allocation14_spill] sm:$0xff] }
 0x258   :  { %v7332_v32 = vrot.slane %v6768_v2, %v11456_v31  ;;  %v6801_v46 = vpop.permute.xlu0 %6800  ;;  %v6967_v2 = vrot.slane %v12930_v63, %v11252_v14 }
 0x25a   :  { %v7333_v35 = vsel %vm7010_vm12, %v7332_v32, %v7328_v26  ;;  %v6948_v32 = vsel %vm6947_vm3, %v6946_v56, %v6941_v44 }
 0x25b   :  { %v6774_v25 = vpop.permute.xlu1 %6773  ;;  %v7338_v39 = vsel %vm7017_vm13, %v7337_v1, %v7333_v35  ;;  %v12931_v1 = vld [vmem:[#allocation13_spill] sm:$0xff] }
 0x25c   :  { %v7342_v6 = vrot.slane %v6774_v25, %v11483_v45  ;;  %v6807_v61 = vpop.permute.xlu0 %6806  ;;  %v6974_v35 = vrot.slane %v12931_v1, %v11311_v15 }
 0x25d   :  { %v7396_v62 = vrot.slane %v6807_v61, %v10852_v59 }
 0x25e   :  { %v7343_v18 = vsel %vm7024_vm14, %v7342_v6, %v7338_v39  ;;  %v6955_v6 = vsel %vm6954_vm4, %v6953_v57, %v6948_v32  ;;  %v12935_v57 = vld [vmem:[#allocation44_spill] sm:$0xff] }
 0x25f   :  { %v12019_v27 = vsel %vm7031_vm15, %v7347_v33, %v7343_v18  ;;  %v6780_v22 = vpop.permute.xlu1 %6779  ;;  %v12932_v33 = vld [vmem:[#allocation15_spill] sm:$0xff] }
 0x260   :  { %v7352_v5 = vrot.slane %v6780_v22, %v10709_v38  ;;  %v6813_v13 = vpop.permute.xlu0 %6812  ;;  %v6981_v40 = vrot.slane %v12932_v33, %v11342_v36  ;;  %v12938_v33 = vld [vmem:[#allocation39_spill] sm:$0xff] }
 0x261   :  { %v7406_v61 = vrot.slane %v6813_v13, %v11121_v34 }
 0x262   :  { %v7357_v9 = vsel %vm6933_vm1, %v7356_v17, %v7352_v5  ;;  %v6962_v17 = vsel %vm6961_vm5, %v6960_v7, %v6955_v6  ;;  %v7386_v5 = vrot.slane %v6801_v46, %v11311_v15  ;;  %v12934_v46 = vld [vmem:[#allocation36_spill] sm:$0xff] }
 0x263   :  { %v6786_v30 = vpop.permute.xlu1 %6785 }
 0x264   :  { %v7361_v8 = vrot.slane %v6786_v30, %v10705_v53  ;;  %v12027_v51 = vpop.permute.xlu0 %6818 }
 0x265   :  { %v7416_v13 = vrot.slane %v12027_v51, %v11249_v19 }
 0x266   :  { %v7362_v21 = vsel %vm6940_vm2, %v7361_v8, %v7357_v9  ;;  %v6969_v9 = vsel %vm6968_vm6, %v6967_v2, %v6962_v17 }
 0x267   :  { %v6792_v60 = vpop.permute.xlu1 %6791  ;;  %v7367_v11 = vsel %vm6947_vm3, %v7366_v3, %v7362_v21  ;;  %v6976_v49 = vsel %vm6975_vm7, %v6974_v35, %v6969_v9  ;;  %v6995_v3 = vrot.slane %v12933_v58, %v11388_v20  ;;  %v6988_v21 = vrot.slane %v12934_v46, %v10852_v59  ;;  %v12937_v35 = vld [vmem:[#allocation21_spill] sm:$0xff] }
 0x268   :  { %v7371_v28 = vrot.slane %v6792_v60, %v10963_v43  ;;  %v6825_v23 = vpop.permute.xlu0 %6824  ;;  %v6983_v0 = vsel %vm6982_vm8, %v6981_v40, %v6976_v49  ;;  %v7016_v40 = vrot.slane %v12938_v33, %v11249_v19 }
 0x269   :  { %v6990_v56 = vsel %vm6989_vm9, %v6988_v21, %v6983_v0  ;;  %v7426_v58 = vrot.slane %v6825_v23, %v11272_v4 }
 0x26a   :  { %v7372_v26 = vsel %vm6954_vm4, %v7371_v28, %v7367_v11  ;;  %v6997_v55 = vsel %vm6996_vm10, %v6995_v3, %v6990_v56  ;;  %v7009_v28 = vrot.slane %v12935_v57, %v11456_v31 }
 0x26b   :  { %v6798_v25 = vpop.permute.xlu1 %6797  ;;  %v7377_v39 = vsel %vm6961_vm5, %v7376_v24, %v7372_v26  ;;  %v12936_v24 = vld [vmem:[#allocation17_spill] sm:$0xff] }
 0x26c   :  { %v7381_v18 = vrot.slane %v6798_v25, %v11252_v14  ;;  %v12057_v22 = vpop.permute.xlu0 %6830  ;;  %v7002_v44 = vrot.slane %v12936_v24, %v11121_v34  ;;  %v7023_v25 = vrot.slane %v12937_v35, %v11483_v45 }
 0x26e   :  { %v7382_v37 = vsel %vm6968_vm6, %v7381_v18, %v7377_v39  ;;  %v7004_v2 = vsel %vm7003_vm11, %v7002_v44, %v6997_v55 }
 0x26f   :  { %v6804_v30 = vpop.permute.xlu1 %6803  ;;  %v7387_v8 = vsel %vm6975_vm7, %v7386_v5, %v7382_v37  ;;  %v7011_v1 = vsel %vm7010_vm12, %v7009_v28, %v7004_v2 }
 0x270   :  { %v7391_v52 = vrot.slane %v6804_v30, %v11342_v36  ;;  %v12069_v48 = vpop.permute.xlu0 %6836  ;;  %v7018_v17 = vsel %vm7017_vm13, %v7016_v40, %v7011_v1 }
 0x271   :  { %v7025_v37 = vsel %vm7024_vm14, %v7023_v25, %v7018_v17 }
 0x272   :  { %v7392_v50 = vsel %vm6982_vm8, %v7391_v52, %v7387_v8  ;;  %v12939_v8 = vld [vmem:[#allocation40_spill] sm:$0xff] }
 0x273   :  { %v6810_v60 = vpop.permute.xlu1 %6809  ;;  %v7397_v11 = vsel %vm6989_vm9, %v7396_v62, %v7392_v50  ;;  %v7030_v0 = vrot.slane %v12939_v8, %v11272_v4 }
 0x274   :  { %v7401_v47 = vrot.slane %v6810_v60, %v11388_v20  ;;  %v12081_v7 = vpop.permute.xlu0 %6842 }
 0x275   :  { %v7032_v3 = vsel %vm7031_vm15, %v7030_v0, %v7025_v37 }
 0x276   :  { %v7402_v63 = vsel %vm6996_vm10, %v7401_v47, %v7397_v11  ;;  %v12114_v62 = vsel %vm7586_vm0, %v12019_v27, %v7032_v3  ;;  %v7435_v3 = vrot.slane %v12057_v22, %v10649_v41 }
 0x277   :  { %v6816_v26 = vpop.permute.xlu1 %6815  ;;  %v7407_v32 = vsel %vm7003_vm11, %v7406_v61, %v7402_v63 }
 0x278   :  { %v7411_v39 = vrot.slane %v6816_v26, %v11456_v31  ;;  %v12093_v6 = vpop.permute.xlu0 %6848 }
 0x27a   :  { %v7412_v18 = vsel %vm7010_vm12, %v7411_v39, %v7407_v32 }
 0x27b   :  { %v6822_v5 = vpop.permute.xlu1 %6821  ;;  %v7417_v9 = vsel %vm7017_vm13, %v7416_v13, %v7412_v18 }
 0x27c   :  { %v7421_v49 = vrot.slane %v6822_v5, %v11483_v45  ;;  %v12104_v30 = vpop.permute.xlu0 %6854 }
 0x27e   :  { %v7422_v51 = vsel %vm7024_vm14, %v7421_v49, %v7417_v9 }
 0x27f   :  { %v7427_v52 = vsel %vm7031_vm15, %v7426_v58, %v7422_v51  ;;  %v6828_v46 = vpop.permute.xlu1 %6827 }
 0x280   :  { %v6879_v21 = vpop.permute.xlu0 %6878  ;;  %v12118_v50 = vsel %vm7586_vm0, %v7427_v52, %v11543_v42  ;;  %v7431_v49 = vrot.slane %v6828_v46, %v10709_v38 }
 0x281   :  { %v7591_v23 = vcombine.low %v12114_v62, %v12118_v50  ;;  %v7514_v63 = vrot.slane %v6879_v21, %v10649_v41 }
 0x283   :  { %v6834_v56 = vpop.permute.xlu1 %6833 }
 0x284   :  { %v6885_v60 = vpop.permute.xlu0 %6884  ;;  %v7440_v58 = vrot.slane %v6834_v56, %v10705_v53 }
 0x285   :  { %v7524_v35 = vrot.slane %v6885_v60, %v10783_v16 }
 0x287   :  { %v6840_v11 = vpop.permute.xlu1 %6839 }
 0x288   :  { %v6891_v55 = vpop.permute.xlu0 %6890  ;;  %v7450_v46 = vrot.slane %v6840_v11, %v10963_v43 }
 0x289   :  { %v7534_v18 = vrot.slane %v6891_v55, %v11220_v29  ;;  %v7436_v55 = vsel %vm6933_vm1, %v7435_v3, %v7431_v49  ;;  %v7599_v3 = vrot.slane %v7591_v23, %v8254_v10 }
 0x28b   :  { %v6846_v57 = vpop.permute.xlu1 %6845 }
 0x28c   :  { %v6897_v28 = vpop.permute.xlu0 %6896 }
 0x28d   :  { %v7544_v8 = vrot.slane %v6897_v28, %v11311_v15 }
 0x28f   :  { %v6852_v47 = vpop.permute.xlu1 %6851 }
 0x290   :  { %v6903_v24 = vpop.permute.xlu0 %6902 }
 0x293   :  { %v6876_v44 = vpop.permute.xlu1 %6875 }
 0x294   :  { %v7510_v61 = vrot.slane %v6876_v44, %v10709_v38  ;;  %v6906_v2 = vpop.permute.xlu0 %6905  ;;  %v7554_v44 = vrot.slane %v6903_v24, %v10852_v59  ;;  %v7441_v38 = vsel %vm6940_vm2, %v7440_v58, %v7436_v55 }
 0x295   :  { %v7559_v41 = vrot.slane %v6906_v2, %v11388_v20 }
 0x296   :  { %v7515_v26 = vsel %vm6933_vm1, %v7514_v63, %v7510_v61  ;;  %v7460_v63 = vrot.slane %v6846_v57, %v11252_v14 }
 0x297   :  { %v6882_v27 = vpop.permute.xlu1 %6881 }
 0x298   :  { %v7519_v42 = vrot.slane %v6882_v27, %v10705_v53  ;;  %v6909_v33 = vpop.permute.xlu0 %6908  ;;  %v7445_v53 = vrot.slane %v12069_v48, %v10783_v16 }
 0x299   :  { %v7564_v11 = vrot.slane %v6909_v33, %v11121_v34 }
 0x29a   :  { %v7520_v32 = vsel %vm6940_vm2, %v7519_v42, %v7515_v26  ;;  %v7446_v61 = vsel %vm6947_vm3, %v7445_v53, %v7441_v38  ;;  %v7470_v26 = vrot.slane %v6852_v47, %v11342_v36 }
 0x29b   :  { %v6888_v1 = vpop.permute.xlu1 %6887  ;;  %v7525_v39 = vsel %vm6947_vm3, %v7524_v35, %v7520_v32  ;;  %v7451_v27 = vsel %vm6954_vm4, %v7450_v46, %v7446_v61 }
 0x29c   :  { %v7529_v25 = vrot.slane %v6888_v1, %v10963_v43  ;;  %v6912_v51 = vpop.permute.xlu0 %6911  ;;  %v7455_v43 = vrot.slane %v12081_v7, %v11220_v29 }
 0x29d   :  { %v7569_v32 = vrot.slane %v6912_v51, %v11456_v31 }
 0x29e   :  { %v7530_v40 = vsel %vm6954_vm4, %v7529_v25, %v7525_v39  ;;  %v7456_v48 = vsel %vm6961_vm5, %v7455_v43, %v7451_v27 }
 0x29f   :  { %v6894_v13 = vpop.permute.xlu1 %6893  ;;  %v7535_v5 = vsel %vm6961_vm5, %v7534_v18, %v7530_v40  ;;  %v7461_v2 = vsel %vm6968_vm6, %v7460_v63, %v7456_v48 }
 0x2a0   :  { %v7539_v17 = vrot.slane %v6894_v13, %v11252_v14  ;;  %v7465_v14 = vrot.slane %v12093_v6, %v11311_v15 }
 0x2a1   :  { %v6915_v22 = vpop.permute.xlu0 %6914 }
 0x2a2   :  { %v7540_v9 = vsel %vm6968_vm6, %v7539_v17, %v7535_v5  ;;  %v7466_v7 = vsel %vm6975_vm7, %v7465_v14, %v7461_v2  ;;  %v7574_v35 = vrot.slane %v6915_v22, %v11249_v19 }
 0x2a3   :  { %v7545_v52 = vsel %vm6975_vm7, %v7544_v8, %v7540_v9  ;;  %v7471_v25 = vsel %vm6982_vm8, %v7470_v26, %v7466_v7 }
 0x2a4   :  { %v6900_v37 = vpop.permute.xlu1 %6899 }
 0x2a5   :  { %v7549_v0 = vrot.slane %v6900_v37, %v11342_v36  ;;  %v7475_v36 = vrot.slane %v12104_v30, %v10852_v59 }
 0x2a6   :  { %v6918_v1 = vpop.permute.xlu0 %6917 }
 0x2a7   :  { %v7550_v21 = vsel %vm6982_vm8, %v7549_v0, %v7545_v52  ;;  %v7579_v15 = vrot.slane %v6918_v1, %v11483_v45  ;;  %v7476_v18 = vsel %vm6989_vm9, %v7475_v36, %v7471_v25 }
 0x2a8   :  { %v6858_v60 = vpop.permute.xlu1 %6857  ;;  %v7555_v56 = vsel %vm6989_vm9, %v7554_v44, %v7550_v21 }
 0x2a9   :  { %v7560_v24 = vsel %vm6996_vm10, %v7559_v41, %v7555_v56  ;;  %v7480_v39 = vrot.slane %v6858_v60, %v11388_v20 }
 0x2aa   :  { %v7565_v42 = vsel %vm7003_vm11, %v7564_v11, %v7560_v24 }
 0x2ab   :  { %v7570_v57 = vsel %vm7010_vm12, %v7569_v32, %v7565_v42  ;;  %v6921_v6 = vpop.permute.xlu0 %6920  ;;  %v7481_v20 = vsel %vm6996_vm10, %v7480_v39, %v7476_v18 }
 0x2ac   :  { %v7575_v47 = vsel %vm7017_vm13, %v7574_v35, %v7570_v57  ;;  %v7584_v30 = vrot.slane %v6921_v6, %v11272_v4 }
 0x2ad   :  { %v6861_v28 = vpop.permute.xlu1 %6860  ;;  %v7580_v5 = vsel %vm7024_vm14, %v7579_v15, %v7575_v47 }
 0x2ae   :  { %v7485_v33 = vrot.slane %v6861_v28, %v11121_v34 }
 0x2b0   :  { %v7486_v34 = vsel %vm7003_vm11, %v7485_v33, %v7481_v20 }
 0x2b1   :  { %v6864_v16 = vpop.permute.xlu1 %6863 }
 0x2b2   :  { %v7490_v40 = vrot.slane %v6864_v16, %v11456_v31  ;;  %v7585_v31 = vsel %vm7031_vm15, %v7584_v30, %v7580_v5 }
 0x2b3   :  { %v7590_v58 = vsel %vm7586_vm0, %v7585_v31, %v11985_v12 }
 0x2b4   :  { %v7491_v9 = vsel %vm7010_vm12, %v7490_v40, %v7486_v34 }
 0x2b5   :  { %v6867_v29 = vpop.permute.xlu1 %6866 }
 0x2b6   :  { %v7495_v17 = vrot.slane %v6867_v29, %v11249_v19 }
 0x2b8   :  { %v7496_v49 = vsel %vm7017_vm13, %v7495_v17, %v7491_v9 }
 0x2b9   :  { %v6870_v13 = vpop.permute.xlu1 %6869 }
 0x2ba   :  { %v7500_v59 = vrot.slane %v6870_v13, %v11483_v45 }
 0x2bc   :  { %v7501_v19 = vsel %vm7024_vm14, %v7500_v59, %v7496_v49 }
 0x2bd   :  { %v6873_v37 = vpop.permute.xlu1 %6872 }
 0x2be   :  { %v7505_v8 = vrot.slane %v6873_v37, %v11272_v4 }
 0x2c0   :  { %v7506_v0 = vsel %vm7031_vm15, %v7505_v8, %v7501_v19 }
 0x2c1   :  { %v7589_v45 = vsel %vm7586_vm0, %v7506_v0, %v11861_v54 }
 0x2c2   :  { %v7592_v51 = vcombine.low %v7589_v45, %v7590_v58 }
 0x2c4   :  { %v7606_v4 = vrot.slane %v7592_v51, %v8254_v10 }
 0x2c6   :  { %v7607_v52 = vcombine.low %v7599_v3, %v7606_v4 }
 0x2c8   :  { %7609 = vst [vmem:[#allocation2] sm:$0xff] %v7607_v52 }
 0x2c9   :  { %7644 = shalt.err (!%p7641_p4)
}
 0x2ca   :  { %7619 = dma.vmem_to_hbm [thread:$0]  %s7617_s30, 128, %s12202_s1, [#allocation3]  }
 0x2cb   :  { %7653 = dma.done.wait [#allocation3], 128  }
 0x2cc   :  { %7654 = vsyncadd [#allocation3], 4294967168 }
 0x2cd   :  { %7623 = vsyncpa [#allocation3], 1 }

</bundles_post_ra>
